<compile_context>
chip_gen: v7x
topology: tpu7x:2x2x1
jax: 0.10.0
libtpu: 0.0.40
codegen_flags: <defaults>
</compile_context>

<pallas_src>
import functools

import jax
import jax.numpy as jnp
from jax.experimental import pallas as pl
from jax.experimental.pallas import tpu as pltpu


def _round_up(x, m):
    return ((x + m - 1) // m) * m


def _pad2(a, rows, cols):
    return jnp.pad(a, ((0, rows - a.shape[0]), (0, cols - a.shape[1])))


def make_decoder_kernel(B, T, Hp, Vp, max_len, sos_id):
    def kernel(enc_ref, w_enc_ref, b_attn_ref, v_ref, w_hfused_ref,
               w_gates_ref, b_gates_ref, b_hn_ref, w_out_ref, b_out_ref,
               out_ref, hid_ref):
        f32 = jnp.float32
        enc = enc_ref[...]                                          # (B, T, Hp)

        # --- loop-invariant prep (hoisted once) ---
        # Encoder contribution to the attention energy (includes attn bias).
        encW = jnp.dot(enc.reshape(B * T, Hp), w_enc_ref[...],
                       preferred_element_type=f32).reshape(B, T, Hp)
        encW = encW + b_attn_ref[...][None, :, :]                   # (B, T, Hp)

        vvec = v_ref[...][None, :, :]                               # (1, 1, Hp)
        w_hfused = w_hfused_ref[...]                                # (Hp, 2Hp) = [w_dec | u_n]
        w_gates = w_gates_ref[...]                                  # (Vp+2Hp, 3Hp)
        b_gates = b_gates_ref[...]                                  # (1, 3Hp) = [b_r|b_z|b_in]
        b_hn = b_hn_ref[...]                                        # (1, Hp)
        w_out, b_out = w_out_ref[...], b_out_ref[...]               # (Hp, Vp), (1, Vp)

        iota_v = jax.lax.broadcasted_iota(jnp.int32, (B, Vp), 1)

        # Register-carried decoder state.
        h = jnp.zeros((B, Hp), f32)
        onehot = (iota_v == sos_id).astype(f32)                     # <sos> one-hot

        # Fully unrolled greedy decode (max_len is a compile-time constant).
        for step in range(max_len):
            # MXU push 1: attention hidden proj + GRU hidden->n proj, fused along N.
            hf = jnp.dot(h, w_hfused, preferred_element_type=f32)   # (B, 2Hp)
            hW = hf[:, :Hp]                                          # 128-aligned slices
            g_n = hf[:, Hp:] + b_hn

            # --- Bahdanau attention (VPU/EUP/XLU; T=8 -> keep off the MXU) ---
            energy = jnp.tanh(encW + hW[:, None, :])                 # (B, T, Hp)
            score = jnp.sum(energy * vvec, axis=-1)                  # (B, T)
            score = score - jnp.max(score, axis=-1, keepdims=True)
            es = jnp.exp(score)
            attn = es / jnp.sum(es, axis=-1, keepdims=True)          # (B, T)
            context = jnp.sum(attn[:, :, None] * enc, axis=1)        # (B, Hp)

            # MXU push 2: all gate input/hidden projections fused along K and N.
            xch = jnp.concatenate([onehot, context, h], axis=-1)    # (B, Vp+2Hp)
            gates = jnp.dot(xch, w_gates, preferred_element_type=f32) + b_gates
            r = jax.nn.sigmoid(gates[:, :Hp])
            z = jax.nn.sigmoid(gates[:, Hp:2 * Hp])
            n = jnp.tanh(gates[:, 2 * Hp:] + r * g_n)
            h = (1.0 - z) * n + z * h                                # (B, Hp)

            # MXU push 3: output projection. Store RAW logits; log_softmax deferred.
            logits = jnp.dot(h, w_out, preferred_element_type=f32) + b_out
            out_ref[:, pl.ds(step, 1), :] = logits[:, None, :]

            # Greedy argmax (first-occurrence) -> one-hot of the next input token.
            m = jnp.max(logits, axis=-1, keepdims=True)
            cand = jnp.where(logits == m, iota_v, Vp)
            am = jnp.min(cand, axis=-1, keepdims=True)               # (B, 1)
            onehot = (iota_v == am).astype(f32)

        # Batched log_softmax over all steps (off the serial decode chain),
        # one lane-dense full store.
        la = out_ref[...]                                            # (B, max_len, Vp)
        m_all = jnp.max(la, axis=-1, keepdims=True)
        lse = jnp.log(jnp.sum(jnp.exp(la - m_all), axis=-1, keepdims=True)) + m_all
        out_ref[...] = la - lse
        hid_ref[...] = h

    return kernel


def decoder_forward(params, encoder_outputs, *, max_len, sos_id):
    B, T, H = encoder_outputs.shape
    V = params["emb"].shape[0]
    Vp = max(128, _round_up(V, 128))
    Hp = max(128, _round_up(H, 128))

    w_ih, w_hh = params["w_ih"], params["w_hh"]          # (2H, 3H), (H, 3H)
    b_ih, b_hh = params["b_ih"], params["b_hh"]          # (1, 3H)

    # --- One-time weight prep (in a real model this is done at load time) ---
    # Fuse embedding table into the GRU input projection, then build one stacked
    # gate weight  [[e_r e_z e_n], [c_r c_z c_n], [u_r u_z 0]]  of shape
    # (Vp+2Hp, 3Hp) so a single matmul of concat([onehot, context, h]) produces
    # the r/z pre-activations and x_n. All blocks zero-padded to 128 lanes.
    e_ih = jnp.dot(params["emb"], w_ih[:H], preferred_element_type=jnp.float32)  # (V, 3H)
    c_ih = w_ih[H:]                                                              # (H, 3H)

    def gate(a, g):
        return a[:, g * H:(g + 1) * H]

    w_gates = jnp.concatenate([
        jnp.concatenate([_pad2(gate(e_ih, 0), Vp, Hp),
                         _pad2(gate(e_ih, 1), Vp, Hp),
                         _pad2(gate(e_ih, 2), Vp, Hp)], axis=1),
        jnp.concatenate([_pad2(gate(c_ih, 0), Hp, Hp),
                         _pad2(gate(c_ih, 1), Hp, Hp),
                         _pad2(gate(c_ih, 2), Hp, Hp)], axis=1),
        jnp.concatenate([_pad2(gate(w_hh, 0), Hp, Hp),
                         _pad2(gate(w_hh, 1), Hp, Hp),
                         jnp.zeros((Hp, Hp), jnp.float32)], axis=1),
    ], axis=0)                                                       # (Vp+2Hp, 3Hp)

    padrow = lambda b: _pad2(b, 1, Hp)
    b_gates = jnp.concatenate([padrow(gate(b_ih, 0) + gate(b_hh, 0)),
                               padrow(gate(b_ih, 1) + gate(b_hh, 1)),
                               padrow(gate(b_ih, 2))], axis=1)       # (1, 3Hp)
    b_hn_p = padrow(gate(b_hh, 2))

    # Attention weights; fuse w_dec with u_n along N (both multiply the old h).
    w_dec_p = _pad2(params["w_attn"][:H], Hp, Hp)
    w_enc_p = _pad2(params["w_attn"][H:], Hp, Hp)
    w_hfused = jnp.concatenate([w_dec_p, _pad2(gate(w_hh, 2), Hp, Hp)], axis=1)  # (Hp, 2Hp)
    b_attn_p = padrow(params["b_attn"])
    v_p = padrow(params["v"])

    # Lane-dense output projection: padded vocab columns get weight 0, bias -1e30
    # so softmax/argmax never see them; padded h rows get weight 0.
    w_out_p = _pad2(params["w_out"], Hp, Vp)
    b_out_p = jnp.pad(params["b_out"], ((0, 0), (0, Vp - V)), constant_values=-1e30)

    enc_p = jnp.pad(encoder_outputs, ((0, 0), (0, 0), (0, Hp - H)))

    kernel = make_decoder_kernel(B, T, Hp, Vp, max_len, sos_id)
    vmem = pl.BlockSpec(memory_space=pltpu.MemorySpace.VMEM)

    out_logp, hidden = pl.pallas_call(
        kernel,
        out_shape=(jax.ShapeDtypeStruct((B, max_len, Vp), jnp.float32),
                   jax.ShapeDtypeStruct((B, Hp), jnp.float32)),
        in_specs=[vmem] * 10,
        out_specs=(vmem, vmem),
    )(enc_p, w_enc_p, b_attn_p, v_p, w_hfused,
      w_gates, b_gates, b_hn_p, w_out_p, b_out_p)

    # Already in PyTorch's (B, max_len, V) layout; drop vocab / hidden padding.
    return out_logp[:, :, :V], hidden[None, :, :H]


def decoder_forward_ref(params, encoder_outputs, *, max_len, sos_id):
    """Pure-JAX reference of the same greedy decode (for verification)."""
    B, T, H = encoder_outputs.shape
    V = params["emb"].shape[0]
    enc = encoder_outputs
    h = jnp.zeros((B, H), jnp.float32)
    tok = jnp.full((B,), sos_id, jnp.int32)
    outs = []
    for _ in range(max_len):
        emb = params["emb"][tok]                                       # (B, H)
        hW = h @ params["w_attn"][:H]
        encW = jnp.einsum("bth,hk->btk", enc, params["w_attn"][H:])
        energy = jnp.tanh(encW + hW[:, None, :] + params["b_attn"][None])
        score = jnp.sum(energy * params["v"][None], axis=-1)
        attn = jax.nn.softmax(score, axis=-1)
        context = jnp.einsum("bt,bth->bh", attn, enc)
        gi = emb @ params["w_ih"][:H] + context @ params["w_ih"][H:] + params["b_ih"]
        gh = h @ params["w_hh"] + params["b_hh"]
        r = jax.nn.sigmoid(gi[:, :H] + gh[:, :H])
        z = jax.nn.sigmoid(gi[:, H:2 * H] + gh[:, H:2 * H])
        n = jnp.tanh(gi[:, 2 * H:] + r * gh[:, 2 * H:])
        h = (1.0 - z) * n + z * h
        logits = h @ params["w_out"] + params["b_out"]
        logp = jax.nn.log_softmax(logits, axis=-1)
        outs.append(logp)
        tok = jnp.argmax(logits, axis=-1).astype(jnp.int32)
    return jnp.stack(outs, axis=1), h[None]


def init_params(key, vocab_size, hidden_size):
    H, V = hidden_size, vocab_size
    ks = jax.random.split(key, 8)
    u = lambda k, shape, s: jax.random.uniform(k, shape, jnp.float32, -s, s)
    return {
        # nn.Embedding(V, H)
        "emb": jax.random.normal(ks[0], (V, H), jnp.float32),
        # Attention.attn = Linear(2H, H)  (weight stored transposed: (2H, H))
        "w_attn": u(ks[1], (2 * H, H), 1.0 / (2 * H) ** 0.5),
        "b_attn": u(ks[2], (1, H), 1.0 / (2 * H) ** 0.5),
        # Attention.v
        "v": u(ks[3], (1, H), 1.0 / H ** 0.5),
        # nn.GRU(2H, H): weight_ih (3H,2H)->(2H,3H), weight_hh (3H,H)->(H,3H)
        "w_ih": u(ks[4], (2 * H, 3 * H), 1.0 / H ** 0.5),
        "w_hh": u(ks[5], (H, 3 * H), 1.0 / H ** 0.5),
        "b_ih": u(ks[6], (1, 3 * H), 1.0 / H ** 0.5),
        "b_hh": u(ks[7], (1, 3 * H), 1.0 / H ** 0.5),
        # nn.Linear(H, V)  (weight stored transposed: (H, V))
        "w_out": u(jax.random.fold_in(key, 100), (H, V), 1.0 / H ** 0.5),
        "b_out": u(jax.random.fold_in(key, 101), (1, V), 1.0 / H ** 0.5),
    }


if __name__ == "__main__":
    # Small shapes consistent with the module's forward():
    #   batch=2, encoder seq T=8, hidden=32, vocab=40, max_len=6
    B, T, H, V = 2, 8, 32, 40
    MAX_LEN, SOS_ID, EOS_ID = 6, 1, 2   # eos_id unused by forward() itself

    key = jax.random.PRNGKey(0)
    pkey, ekey = jax.random.split(key)
    params = init_params(pkey, V, H)
    encoder_outputs = jax.random.normal(ekey, (B, T, H), jnp.float32)

    fwd = jax.jit(functools.partial(decoder_forward, max_len=MAX_LEN, sos_id=SOS_ID))
    outputs, hidden = fwd(params, encoder_outputs)
    jax.block_until_ready((outputs, hidden))

    # Verify against a pure-JAX reference of the same greedy decode.
    ref_out, ref_hid = decoder_forward_ref(
        params, encoder_outputs, max_len=MAX_LEN, sos_id=SOS_ID)
    assert outputs.shape == (B, MAX_LEN, V) and hidden.shape == (1, B, H)
    assert jnp.allclose(outputs, ref_out, rtol=2e-4, atol=2e-4)
    assert jnp.allclose(hidden, ref_hid, rtol=2e-4, atol=2e-4)

    print("KERNEL_OK")
</pallas_src>

<mosaic_0001>
module attributes {stable_mosaic.version = 11 : i64} {
  func.func @kernel(%arg0: memref<2x8x128xf32, #tpu.memory_space<vmem>>, %arg1: memref<128x128xf32, #tpu.memory_space<vmem>>, %arg2: memref<1x128xf32, #tpu.memory_space<vmem>>, %arg3: memref<1x128xf32, #tpu.memory_space<vmem>>, %arg4: memref<128x256xf32, #tpu.memory_space<vmem>>, %arg5: memref<384x384xf32, #tpu.memory_space<vmem>>, %arg6: memref<1x384xf32, #tpu.memory_space<vmem>>, %arg7: memref<1x128xf32, #tpu.memory_space<vmem>>, %arg8: memref<128x128xf32, #tpu.memory_space<vmem>>, %arg9: memref<1x128xf32, #tpu.memory_space<vmem>>, %arg10: memref<2x6x128xf32, #tpu.memory_space<vmem>>, %arg11: memref<2x128xf32, #tpu.memory_space<vmem>>) attributes {dimension_semantics = [], scalar_prefetch = 0 : i64, scratch_operands = 0 : i64, tpu.core_type = #tpu.core_type<tc>} {
    %c0 = arith.constant 0 : index
    %c0_0 = arith.constant 0 : index
    %c0_1 = arith.constant 0 : index
    %0 = vector.load %arg0[%c0, %c0_0, %c0_1] : memref<2x8x128xf32, #tpu.memory_space<vmem>>, vector<2x8x128xf32>
    %1 = vector.shape_cast %0 : vector<2x8x128xf32> to vector<16x128xf32>
    %c0_2 = arith.constant 0 : index
    %c0_3 = arith.constant 0 : index
    %2 = vector.load %arg1[%c0_2, %c0_3] : memref<128x128xf32, #tpu.memory_space<vmem>>, vector<128x128xf32>
    %cst = arith.constant dense<0.000000e+00> : vector<16x128xf32>
    %3 = tpu.matmul %1, %2, %cst {dimension_numbers = #tpu.dot_dimension_numbers<[1], [0], [0], [1], [0, 0, 1, 1], [], []>} : vector<16x128xf32>, vector<128x128xf32>, vector<16x128xf32> -> vector<16x128xf32>
    %4 = vector.shape_cast %3 : vector<16x128xf32> to vector<2x8x128xf32>
    %c0_4 = arith.constant 0 : index
    %c0_5 = arith.constant 0 : index
    %5 = vector.load %arg2[%c0_4, %c0_5] : memref<1x128xf32, #tpu.memory_space<vmem>>, vector<1x128xf32>
    %6 = vector.shape_cast %5 : vector<1x128xf32> to vector<1x1x128xf32>
    %7 = vector.broadcast %6 : vector<1x1x128xf32> to vector<2x8x128xf32>
    %8 = arith.addf %4, %7 : vector<2x8x128xf32>
    %c0_6 = arith.constant 0 : index
    %c0_7 = arith.constant 0 : index
    %9 = vector.load %arg3[%c0_6, %c0_7] : memref<1x128xf32, #tpu.memory_space<vmem>>, vector<1x128xf32>
    %10 = vector.shape_cast %9 : vector<1x128xf32> to vector<1x1x128xf32>
    %c0_8 = arith.constant 0 : index
    %c0_9 = arith.constant 0 : index
    %11 = vector.load %arg4[%c0_8, %c0_9] : memref<128x256xf32, #tpu.memory_space<vmem>>, vector<128x256xf32>
    %c0_10 = arith.constant 0 : index
    %c0_11 = arith.constant 0 : index
    %12 = vector.load %arg5[%c0_10, %c0_11] : memref<384x384xf32, #tpu.memory_space<vmem>>, vector<384x384xf32>
    %c0_12 = arith.constant 0 : index
    %c0_13 = arith.constant 0 : index
    %13 = vector.load %arg6[%c0_12, %c0_13] : memref<1x384xf32, #tpu.memory_space<vmem>>, vector<1x384xf32>
    %c0_14 = arith.constant 0 : index
    %c0_15 = arith.constant 0 : index
    %14 = vector.load %arg7[%c0_14, %c0_15] : memref<1x128xf32, #tpu.memory_space<vmem>>, vector<1x128xf32>
    %c0_16 = arith.constant 0 : index
    %c0_17 = arith.constant 0 : index
    %15 = vector.load %arg8[%c0_16, %c0_17] : memref<128x128xf32, #tpu.memory_space<vmem>>, vector<128x128xf32>
    %c0_18 = arith.constant 0 : index
    %c0_19 = arith.constant 0 : index
    %16 = vector.load %arg9[%c0_18, %c0_19] : memref<1x128xf32, #tpu.memory_space<vmem>>, vector<1x128xf32>
    %17 = tpu.iota {dimensions = array<i32: 1>} : vector<2x128xi32>
    %cst_20 = arith.constant 0.000000e+00 : f32
    %18 = vector.broadcast %cst_20 : f32 to vector<2x128xf32>
    %c1_i32 = arith.constant 1 : i32
    %19 = vector.broadcast %c1_i32 : i32 to vector<2x128xi32>
    %20 = arith.cmpi eq, %17, %19 : vector<2x128xi32>
    %21 = arith.extui %20 : vector<2x128xi1> to vector<2x128xi32>
    %22 = arith.sitofp %21 : vector<2x128xi32> to vector<2x128xf32>
    %cst_21 = arith.constant dense<0.000000e+00> : vector<2x256xf32>
    %23 = tpu.matmul %18, %11, %cst_21 {dimension_numbers = #tpu.dot_dimension_numbers<[1], [0], [0], [1], [0, 0, 1, 1], [], []>} : vector<2x128xf32>, vector<128x256xf32>, vector<2x256xf32> -> vector<2x256xf32>
    %24 = vector.extract_strided_slice %23 {offsets = [0, 0], sizes = [2, 128], strides = [1, 1]} : vector<2x256xf32> to vector<2x128xf32>
    %25 = vector.extract_strided_slice %23 {offsets = [0, 128], sizes = [2, 128], strides = [1, 1]} : vector<2x256xf32> to vector<2x128xf32>
    %26 = vector.broadcast %14 : vector<1x128xf32> to vector<2x128xf32>
    %27 = arith.addf %25, %26 : vector<2x128xf32>
    %28 = vector.shape_cast %24 : vector<2x128xf32> to vector<2x1x128xf32>
    %29 = vector.broadcast %28 : vector<2x1x128xf32> to vector<2x8x128xf32>
    %30 = arith.addf %8, %29 : vector<2x8x128xf32>
    %31 = math.tanh %30 : vector<2x8x128xf32>
    %32 = vector.broadcast %10 : vector<1x1x128xf32> to vector<2x8x128xf32>
    %33 = arith.mulf %31, %32 : vector<2x8x128xf32>
    %cst_22 = arith.constant dense<0.000000e+00> : vector<2x8xf32>
    %34 = vector.multi_reduction <add>, %33, %cst_22 [2] : vector<2x8x128xf32> to vector<2x8xf32>
    %cst_23 = arith.constant dense<0xFF800000> : vector<2xf32>
    %35 = vector.multi_reduction <maximumf>, %34, %cst_23 [1] : vector<2x8xf32> to vector<2xf32>
    %36 = vector.shape_cast %35 : vector<2xf32> to vector<2x1xf32>
    %37 = vector.broadcast %36 : vector<2x1xf32> to vector<2x8xf32>
    %38 = arith.subf %34, %37 : vector<2x8xf32>
    %39 = math.exp %38 : vector<2x8xf32>
    %cst_24 = arith.constant dense<0.000000e+00> : vector<2xf32>
    %40 = vector.multi_reduction <add>, %39, %cst_24 [1] : vector<2x8xf32> to vector<2xf32>
    %41 = vector.shape_cast %40 : vector<2xf32> to vector<2x1xf32>
    %42 = vector.broadcast %41 : vector<2x1xf32> to vector<2x8xf32>
    %43 = arith.divf %39, %42 : vector<2x8xf32>
    %44 = vector.shape_cast %43 : vector<2x8xf32> to vector<2x8x1xf32>
    %45 = vector.broadcast %44 : vector<2x8x1xf32> to vector<2x8x128xf32>
    %46 = arith.mulf %45, %0 : vector<2x8x128xf32>
    %cst_25 = arith.constant dense<0.000000e+00> : vector<2x128xf32>
    %47 = vector.multi_reduction <add>, %46, %cst_25 [1] : vector<2x8x128xf32> to vector<2x128xf32>
    %48 = tpu.concatenate %22, %47, %18 in 1 : vector<2x128xf32>, vector<2x128xf32>, vector<2x128xf32> -> vector<2x384xf32>
    %cst_26 = arith.constant dense<0.000000e+00> : vector<2x384xf32>
    %49 = tpu.matmul %48, %12, %cst_26 {dimension_numbers = #tpu.dot_dimension_numbers<[1], [0], [0], [1], [0, 0, 1, 1], [], []>} : vector<2x384xf32>, vector<384x384xf32>, vector<2x384xf32> -> vector<2x384xf32>
    %50 = vector.broadcast %13 : vector<1x384xf32> to vector<2x384xf32>
    %51 = arith.addf %49, %50 : vector<2x384xf32>
    %52 = vector.extract_strided_slice %51 {offsets = [0, 0], sizes = [2, 128], strides = [1, 1]} : vector<2x384xf32> to vector<2x128xf32>
    %53 = arith.negf %52 : vector<2x128xf32>
    %54 = math.exp %53 : vector<2x128xf32>
    %cst_27 = arith.constant 1.000000e+00 : f32
    %55 = vector.broadcast %cst_27 : f32 to vector<2x128xf32>
    %56 = arith.addf %55, %54 : vector<2x128xf32>
    %57 = arith.divf %55, %56 : vector<2x128xf32>
    %58 = vector.extract_strided_slice %51 {offsets = [0, 128], sizes = [2, 128], strides = [1, 1]} : vector<2x384xf32> to vector<2x128xf32>
    %59 = arith.negf %58 : vector<2x128xf32>
    %60 = math.exp %59 : vector<2x128xf32>
    %cst_28 = arith.constant 1.000000e+00 : f32
    %61 = vector.broadcast %cst_28 : f32 to vector<2x128xf32>
    %62 = arith.addf %61, %60 : vector<2x128xf32>
    %63 = arith.divf %61, %62 : vector<2x128xf32>
    %64 = vector.extract_strided_slice %51 {offsets = [0, 256], sizes = [2, 128], strides = [1, 1]} : vector<2x384xf32> to vector<2x128xf32>
    %65 = arith.mulf %57, %27 : vector<2x128xf32>
    %66 = arith.addf %64, %65 : vector<2x128xf32>
    %67 = math.tanh %66 : vector<2x128xf32>
    %cst_29 = arith.constant 1.000000e+00 : f32
    %68 = vector.broadcast %cst_29 : f32 to vector<2x128xf32>
    %69 = arith.subf %68, %63 : vector<2x128xf32>
    %70 = arith.mulf %69, %67 : vector<2x128xf32>
    %71 = arith.mulf %63, %18 : vector<2x128xf32>
    %72 = arith.addf %70, %71 : vector<2x128xf32>
    %cst_30 = arith.constant dense<0.000000e+00> : vector<2x128xf32>
    %73 = tpu.matmul %72, %15, %cst_30 {dimension_numbers = #tpu.dot_dimension_numbers<[1], [0], [0], [1], [0, 0, 1, 1], [], []>} : vector<2x128xf32>, vector<128x128xf32>, vector<2x128xf32> -> vector<2x128xf32>
    %74 = vector.broadcast %16 : vector<1x128xf32> to vector<2x128xf32>
    %75 = arith.addf %73, %74 : vector<2x128xf32>
    %76 = vector.shape_cast %75 : vector<2x128xf32> to vector<2x1x128xf32>
    %c0_31 = arith.constant 0 : index
    %c0_32 = arith.constant 0 : index
    %c0_33 = arith.constant 0 : index
    %77 = vector.load %arg10[%c0_31, %c0_32, %c0_33] : memref<2x6x128xf32, #tpu.memory_space<vmem>>, vector<2x1x128xf32>
    tpu.vector_store %arg10[%c0_31, %c0_32, %c0_33], %76 {strides = array<i32>} : memref<2x6x128xf32, #tpu.memory_space<vmem>>, vector<2x1x128xf32>,
    %cst_34 = arith.constant dense<0xFF800000> : vector<2xf32>
    %78 = vector.multi_reduction <maximumf>, %75, %cst_34 [1] : vector<2x128xf32> to vector<2xf32>
    %79 = vector.shape_cast %78 : vector<2xf32> to vector<2x1xf32>
    %80 = vector.broadcast %79 : vector<2x1xf32> to vector<2x128xf32>
    %81 = arith.cmpf oeq, %75, %80 : vector<2x128xf32>
    %c128_i32 = arith.constant 128 : i32
    %82 = vector.broadcast %c128_i32 : i32 to vector<2x128xi32>
    %83 = arith.select %81, %17, %82 : vector<2x128xi1>, vector<2x128xi32>
    %cst_35 = arith.constant dense<2147483647> : vector<2xi32>
    %84 = vector.multi_reduction <minsi>, %83, %cst_35 [1] : vector<2x128xi32> to vector<2xi32>
    %85 = vector.shape_cast %84 : vector<2xi32> to vector<2x1xi32>
    %86 = vector.broadcast %85 : vector<2x1xi32> to vector<2x128xi32>
    %87 = arith.cmpi eq, %17, %86 : vector<2x128xi32>
    %88 = arith.extui %87 : vector<2x128xi1> to vector<2x128xi32>
    %89 = arith.sitofp %88 : vector<2x128xi32> to vector<2x128xf32>
    %cst_36 = arith.constant dense<0.000000e+00> : vector<2x256xf32>
    %90 = tpu.matmul %72, %11, %cst_36 {dimension_numbers = #tpu.dot_dimension_numbers<[1], [0], [0], [1], [0, 0, 1, 1], [], []>} : vector<2x128xf32>, vector<128x256xf32>, vector<2x256xf32> -> vector<2x256xf32>
    %91 = vector.extract_strided_slice %90 {offsets = [0, 0], sizes = [2, 128], strides = [1, 1]} : vector<2x256xf32> to vector<2x128xf32>
    %92 = vector.extract_strided_slice %90 {offsets = [0, 128], sizes = [2, 128], strides = [1, 1]} : vector<2x256xf32> to vector<2x128xf32>
    %93 = vector.broadcast %14 : vector<1x128xf32> to vector<2x128xf32>
    %94 = arith.addf %92, %93 : vector<2x128xf32>
    %95 = vector.shape_cast %91 : vector<2x128xf32> to vector<2x1x128xf32>
    %96 = vector.broadcast %95 : vector<2x1x128xf32> to vector<2x8x128xf32>
    %97 = arith.addf %8, %96 : vector<2x8x128xf32>
    %98 = math.tanh %97 : vector<2x8x128xf32>
    %99 = vector.broadcast %10 : vector<1x1x128xf32> to vector<2x8x128xf32>
    %100 = arith.mulf %98, %99 : vector<2x8x128xf32>
    %cst_37 = arith.constant dense<0.000000e+00> : vector<2x8xf32>
    %101 = vector.multi_reduction <add>, %100, %cst_37 [2] : vector<2x8x128xf32> to vector<2x8xf32>
    %cst_38 = arith.constant dense<0xFF800000> : vector<2xf32>
    %102 = vector.multi_reduction <maximumf>, %101, %cst_38 [1] : vector<2x8xf32> to vector<2xf32>
    %103 = vector.shape_cast %102 : vector<2xf32> to vector<2x1xf32>
    %104 = vector.broadcast %103 : vector<2x1xf32> to vector<2x8xf32>
    %105 = arith.subf %101, %104 : vector<2x8xf32>
    %106 = math.exp %105 : vector<2x8xf32>
    %cst_39 = arith.constant dense<0.000000e+00> : vector<2xf32>
    %107 = vector.multi_reduction <add>, %106, %cst_39 [1] : vector<2x8xf32> to vector<2xf32>
    %108 = vector.shape_cast %107 : vector<2xf32> to vector<2x1xf32>
    %109 = vector.broadcast %108 : vector<2x1xf32> to vector<2x8xf32>
    %110 = arith.divf %106, %109 : vector<2x8xf32>
    %111 = vector.shape_cast %110 : vector<2x8xf32> to vector<2x8x1xf32>
    %112 = vector.broadcast %111 : vector<2x8x1xf32> to vector<2x8x128xf32>
    %113 = arith.mulf %112, %0 : vector<2x8x128xf32>
    %cst_40 = arith.constant dense<0.000000e+00> : vector<2x128xf32>
    %114 = vector.multi_reduction <add>, %113, %cst_40 [1] : vector<2x8x128xf32> to vector<2x128xf32>
    %115 = tpu.concatenate %89, %114, %72 in 1 : vector<2x128xf32>, vector<2x128xf32>, vector<2x128xf32> -> vector<2x384xf32>
    %cst_41 = arith.constant dense<0.000000e+00> : vector<2x384xf32>
    %116 = tpu.matmul %115, %12, %cst_41 {dimension_numbers = #tpu.dot_dimension_numbers<[1], [0], [0], [1], [0, 0, 1, 1], [], []>} : vector<2x384xf32>, vector<384x384xf32>, vector<2x384xf32> -> vector<2x384xf32>
    %117 = vector.broadcast %13 : vector<1x384xf32> to vector<2x384xf32>
    %118 = arith.addf %116, %117 : vector<2x384xf32>
    %119 = vector.extract_strided_slice %118 {offsets = [0, 0], sizes = [2, 128], strides = [1, 1]} : vector<2x384xf32> to vector<2x128xf32>
    %120 = arith.negf %119 : vector<2x128xf32>
    %121 = math.exp %120 : vector<2x128xf32>
    %cst_42 = arith.constant 1.000000e+00 : f32
    %122 = vector.broadcast %cst_42 : f32 to vector<2x128xf32>
    %123 = arith.addf %122, %121 : vector<2x128xf32>
    %124 = arith.divf %122, %123 : vector<2x128xf32>
    %125 = vector.extract_strided_slice %118 {offsets = [0, 128], sizes = [2, 128], strides = [1, 1]} : vector<2x384xf32> to vector<2x128xf32>
    %126 = arith.negf %125 : vector<2x128xf32>
    %127 = math.exp %126 : vector<2x128xf32>
    %cst_43 = arith.constant 1.000000e+00 : f32
    %128 = vector.broadcast %cst_43 : f32 to vector<2x128xf32>
    %129 = arith.addf %128, %127 : vector<2x128xf32>
    %130 = arith.divf %128, %129 : vector<2x128xf32>
    %131 = vector.extract_strided_slice %118 {offsets = [0, 256], sizes = [2, 128], strides = [1, 1]} : vector<2x384xf32> to vector<2x128xf32>
    %132 = arith.mulf %124, %94 : vector<2x128xf32>
    %133 = arith.addf %131, %132 : vector<2x128xf32>
    %134 = math.tanh %133 : vector<2x128xf32>
    %cst_44 = arith.constant 1.000000e+00 : f32
    %135 = vector.broadcast %cst_44 : f32 to vector<2x128xf32>
    %136 = arith.subf %135, %130 : vector<2x128xf32>
    %137 = arith.mulf %136, %134 : vector<2x128xf32>
    %138 = arith.mulf %130, %72 : vector<2x128xf32>
    %139 = arith.addf %137, %138 : vector<2x128xf32>
    %cst_45 = arith.constant dense<0.000000e+00> : vector<2x128xf32>
    %140 = tpu.matmul %139, %15, %cst_45 {dimension_numbers = #tpu.dot_dimension_numbers<[1], [0], [0], [1], [0, 0, 1, 1], [], []>} : vector<2x128xf32>, vector<128x128xf32>, vector<2x128xf32> -> vector<2x128xf32>
    %141 = vector.broadcast %16 : vector<1x128xf32> to vector<2x128xf32>
    %142 = arith.addf %140, %141 : vector<2x128xf32>
    %143 = vector.shape_cast %142 : vector<2x128xf32> to vector<2x1x128xf32>
    %c0_46 = arith.constant 0 : index
    %c1 = arith.constant 1 : index
    %c0_47 = arith.constant 0 : index
    %144 = vector.load %arg10[%c0_46, %c1, %c0_47] : memref<2x6x128xf32, #tpu.memory_space<vmem>>, vector<2x1x128xf32>
    tpu.vector_store %arg10[%c0_46, %c1, %c0_47], %143 {strides = array<i32>} : memref<2x6x128xf32, #tpu.memory_space<vmem>>, vector<2x1x128xf32>,
    %cst_48 = arith.constant dense<0xFF800000> : vector<2xf32>
    %145 = vector.multi_reduction <maximumf>, %142, %cst_48 [1] : vector<2x128xf32> to vector<2xf32>
    %146 = vector.shape_cast %145 : vector<2xf32> to vector<2x1xf32>
    %147 = vector.broadcast %146 : vector<2x1xf32> to vector<2x128xf32>
    %148 = arith.cmpf oeq, %142, %147 : vector<2x128xf32>
    %c128_i32_49 = arith.constant 128 : i32
    %149 = vector.broadcast %c128_i32_49 : i32 to vector<2x128xi32>
    %150 = arith.select %148, %17, %149 : vector<2x128xi1>, vector<2x128xi32>
    %cst_50 = arith.constant dense<2147483647> : vector<2xi32>
    %151 = vector.multi_reduction <minsi>, %150, %cst_50 [1] : vector<2x128xi32> to vector<2xi32>
    %152 = vector.shape_cast %151 : vector<2xi32> to vector<2x1xi32>
    %153 = vector.broadcast %152 : vector<2x1xi32> to vector<2x128xi32>
    %154 = arith.cmpi eq, %17, %153 : vector<2x128xi32>
    %155 = arith.extui %154 : vector<2x128xi1> to vector<2x128xi32>
    %156 = arith.sitofp %155 : vector<2x128xi32> to vector<2x128xf32>
    %cst_51 = arith.constant dense<0.000000e+00> : vector<2x256xf32>
    %157 = tpu.matmul %139, %11, %cst_51 {dimension_numbers = #tpu.dot_dimension_numbers<[1], [0], [0], [1], [0, 0, 1, 1], [], []>} : vector<2x128xf32>, vector<128x256xf32>, vector<2x256xf32> -> vector<2x256xf32>
    %158 = vector.extract_strided_slice %157 {offsets = [0, 0], sizes = [2, 128], strides = [1, 1]} : vector<2x256xf32> to vector<2x128xf32>
    %159 = vector.extract_strided_slice %157 {offsets = [0, 128], sizes = [2, 128], strides = [1, 1]} : vector<2x256xf32> to vector<2x128xf32>
    %160 = vector.broadcast %14 : vector<1x128xf32> to vector<2x128xf32>
    %161 = arith.addf %159, %160 : vector<2x128xf32>
    %162 = vector.shape_cast %158 : vector<2x128xf32> to vector<2x1x128xf32>
    %163 = vector.broadcast %162 : vector<2x1x128xf32> to vector<2x8x128xf32>
    %164 = arith.addf %8, %163 : vector<2x8x128xf32>
    %165 = math.tanh %164 : vector<2x8x128xf32>
    %166 = vector.broadcast %10 : vector<1x1x128xf32> to vector<2x8x128xf32>
    %167 = arith.mulf %165, %166 : vector<2x8x128xf32>
    %cst_52 = arith.constant dense<0.000000e+00> : vector<2x8xf32>
    %168 = vector.multi_reduction <add>, %167, %cst_52 [2] : vector<2x8x128xf32> to vector<2x8xf32>
    %cst_53 = arith.constant dense<0xFF800000> : vector<2xf32>
    %169 = vector.multi_reduction <maximumf>, %168, %cst_53 [1] : vector<2x8xf32> to vector<2xf32>
    %170 = vector.shape_cast %169 : vector<2xf32> to vector<2x1xf32>
    %171 = vector.broadcast %170 : vector<2x1xf32> to vector<2x8xf32>
    %172 = arith.subf %168, %171 : vector<2x8xf32>
    %173 = math.exp %172 : vector<2x8xf32>
    %cst_54 = arith.constant dense<0.000000e+00> : vector<2xf32>
    %174 = vector.multi_reduction <add>, %173, %cst_54 [1] : vector<2x8xf32> to vector<2xf32>
    %175 = vector.shape_cast %174 : vector<2xf32> to vector<2x1xf32>
    %176 = vector.broadcast %175 : vector<2x1xf32> to vector<2x8xf32>
    %177 = arith.divf %173, %176 : vector<2x8xf32>
    %178 = vector.shape_cast %177 : vector<2x8xf32> to vector<2x8x1xf32>
    %179 = vector.broadcast %178 : vector<2x8x1xf32> to vector<2x8x128xf32>
    %180 = arith.mulf %179, %0 : vector<2x8x128xf32>
    %cst_55 = arith.constant dense<0.000000e+00> : vector<2x128xf32>
    %181 = vector.multi_reduction <add>, %180, %cst_55 [1] : vector<2x8x128xf32> to vector<2x128xf32>
    %182 = tpu.concatenate %156, %181, %139 in 1 : vector<2x128xf32>, vector<2x128xf32>, vector<2x128xf32> -> vector<2x384xf32>
    %cst_56 = arith.constant dense<0.000000e+00> : vector<2x384xf32>
    %183 = tpu.matmul %182, %12, %cst_56 {dimension_numbers = #tpu.dot_dimension_numbers<[1], [0], [0], [1], [0, 0, 1, 1], [], []>} : vector<2x384xf32>, vector<384x384xf32>, vector<2x384xf32> -> vector<2x384xf32>
    %184 = vector.broadcast %13 : vector<1x384xf32> to vector<2x384xf32>
    %185 = arith.addf %183, %184 : vector<2x384xf32>
    %186 = vector.extract_strided_slice %185 {offsets = [0, 0], sizes = [2, 128], strides = [1, 1]} : vector<2x384xf32> to vector<2x128xf32>
    %187 = arith.negf %186 : vector<2x128xf32>
    %188 = math.exp %187 : vector<2x128xf32>
    %cst_57 = arith.constant 1.000000e+00 : f32
    %189 = vector.broadcast %cst_57 : f32 to vector<2x128xf32>
    %190 = arith.addf %189, %188 : vector<2x128xf32>
    %191 = arith.divf %189, %190 : vector<2x128xf32>
    %192 = vector.extract_strided_slice %185 {offsets = [0, 128], sizes = [2, 128], strides = [1, 1]} : vector<2x384xf32> to vector<2x128xf32>
    %193 = arith.negf %192 : vector<2x128xf32>
    %194 = math.exp %193 : vector<2x128xf32>
    %cst_58 = arith.constant 1.000000e+00 : f32
    %195 = vector.broadcast %cst_58 : f32 to vector<2x128xf32>
    %196 = arith.addf %195, %194 : vector<2x128xf32>
    %197 = arith.divf %195, %196 : vector<2x128xf32>
    %198 = vector.extract_strided_slice %185 {offsets = [0, 256], sizes = [2, 128], strides = [1, 1]} : vector<2x384xf32> to vector<2x128xf32>
    %199 = arith.mulf %191, %161 : vector<2x128xf32>
    %200 = arith.addf %198, %199 : vector<2x128xf32>
    %201 = math.tanh %200 : vector<2x128xf32>
    %cst_59 = arith.constant 1.000000e+00 : f32
    %202 = vector.broadcast %cst_59 : f32 to vector<2x128xf32>
    %203 = arith.subf %202, %197 : vector<2x128xf32>
    %204 = arith.mulf %203, %201 : vector<2x128xf32>
    %205 = arith.mulf %197, %139 : vector<2x128xf32>
    %206 = arith.addf %204, %205 : vector<2x128xf32>
    %cst_60 = arith.constant dense<0.000000e+00> : vector<2x128xf32>
    %207 = tpu.matmul %206, %15, %cst_60 {dimension_numbers = #tpu.dot_dimension_numbers<[1], [0], [0], [1], [0, 0, 1, 1], [], []>} : vector<2x128xf32>, vector<128x128xf32>, vector<2x128xf32> -> vector<2x128xf32>
    %208 = vector.broadcast %16 : vector<1x128xf32> to vector<2x128xf32>
    %209 = arith.addf %207, %208 : vector<2x128xf32>
    %210 = vector.shape_cast %209 : vector<2x128xf32> to vector<2x1x128xf32>
    %c0_61 = arith.constant 0 : index
    %c2 = arith.constant 2 : index
    %c0_62 = arith.constant 0 : index
    %211 = vector.load %arg10[%c0_61, %c2, %c0_62] : memref<2x6x128xf32, #tpu.memory_space<vmem>>, vector<2x1x128xf32>
    tpu.vector_store %arg10[%c0_61, %c2, %c0_62], %210 {strides = array<i32>} : memref<2x6x128xf32, #tpu.memory_space<vmem>>, vector<2x1x128xf32>,
    %cst_63 = arith.constant dense<0xFF800000> : vector<2xf32>
    %212 = vector.multi_reduction <maximumf>, %209, %cst_63 [1] : vector<2x128xf32> to vector<2xf32>
    %213 = vector.shape_cast %212 : vector<2xf32> to vector<2x1xf32>
    %214 = vector.broadcast %213 : vector<2x1xf32> to vector<2x128xf32>
    %215 = arith.cmpf oeq, %209, %214 : vector<2x128xf32>
    %c128_i32_64 = arith.constant 128 : i32
    %216 = vector.broadcast %c128_i32_64 : i32 to vector<2x128xi32>
    %217 = arith.select %215, %17, %216 : vector<2x128xi1>, vector<2x128xi32>
    %cst_65 = arith.constant dense<2147483647> : vector<2xi32>
    %218 = vector.multi_reduction <minsi>, %217, %cst_65 [1] : vector<2x128xi32> to vector<2xi32>
    %219 = vector.shape_cast %218 : vector<2xi32> to vector<2x1xi32>
    %220 = vector.broadcast %219 : vector<2x1xi32> to vector<2x128xi32>
    %221 = arith.cmpi eq, %17, %220 : vector<2x128xi32>
    %222 = arith.extui %221 : vector<2x128xi1> to vector<2x128xi32>
    %223 = arith.sitofp %222 : vector<2x128xi32> to vector<2x128xf32>
    %cst_66 = arith.constant dense<0.000000e+00> : vector<2x256xf32>
    %224 = tpu.matmul %206, %11, %cst_66 {dimension_numbers = #tpu.dot_dimension_numbers<[1], [0], [0], [1], [0, 0, 1, 1], [], []>} : vector<2x128xf32>, vector<128x256xf32>, vector<2x256xf32> -> vector<2x256xf32>
    %225 = vector.extract_strided_slice %224 {offsets = [0, 0], sizes = [2, 128], strides = [1, 1]} : vector<2x256xf32> to vector<2x128xf32>
    %226 = vector.extract_strided_slice %224 {offsets = [0, 128], sizes = [2, 128], strides = [1, 1]} : vector<2x256xf32> to vector<2x128xf32>
    %227 = vector.broadcast %14 : vector<1x128xf32> to vector<2x128xf32>
    %228 = arith.addf %226, %227 : vector<2x128xf32>
    %229 = vector.shape_cast %225 : vector<2x128xf32> to vector<2x1x128xf32>
    %230 = vector.broadcast %229 : vector<2x1x128xf32> to vector<2x8x128xf32>
    %231 = arith.addf %8, %230 : vector<2x8x128xf32>
    %232 = math.tanh %231 : vector<2x8x128xf32>
    %233 = vector.broadcast %10 : vector<1x1x128xf32> to vector<2x8x128xf32>
    %234 = arith.mulf %232, %233 : vector<2x8x128xf32>
    %cst_67 = arith.constant dense<0.000000e+00> : vector<2x8xf32>
    %235 = vector.multi_reduction <add>, %234, %cst_67 [2] : vector<2x8x128xf32> to vector<2x8xf32>
    %cst_68 = arith.constant dense<0xFF800000> : vector<2xf32>
    %236 = vector.multi_reduction <maximumf>, %235, %cst_68 [1] : vector<2x8xf32> to vector<2xf32>
    %237 = vector.shape_cast %236 : vector<2xf32> to vector<2x1xf32>
    %238 = vector.broadcast %237 : vector<2x1xf32> to vector<2x8xf32>
    %239 = arith.subf %235, %238 : vector<2x8xf32>
    %240 = math.exp %239 : vector<2x8xf32>
    %cst_69 = arith.constant dense<0.000000e+00> : vector<2xf32>
    %241 = vector.multi_reduction <add>, %240, %cst_69 [1] : vector<2x8xf32> to vector<2xf32>
    %242 = vector.shape_cast %241 : vector<2xf32> to vector<2x1xf32>
    %243 = vector.broadcast %242 : vector<2x1xf32> to vector<2x8xf32>
    %244 = arith.divf %240, %243 : vector<2x8xf32>
    %245 = vector.shape_cast %244 : vector<2x8xf32> to vector<2x8x1xf32>
    %246 = vector.broadcast %245 : vector<2x8x1xf32> to vector<2x8x128xf32>
    %247 = arith.mulf %246, %0 : vector<2x8x128xf32>
    %cst_70 = arith.constant dense<0.000000e+00> : vector<2x128xf32>
    %248 = vector.multi_reduction <add>, %247, %cst_70 [1] : vector<2x8x128xf32> to vector<2x128xf32>
    %249 = tpu.concatenate %223, %248, %206 in 1 : vector<2x128xf32>, vector<2x128xf32>, vector<2x128xf32> -> vector<2x384xf32>
    %cst_71 = arith.constant dense<0.000000e+00> : vector<2x384xf32>
    %250 = tpu.matmul %249, %12, %cst_71 {dimension_numbers = #tpu.dot_dimension_numbers<[1], [0], [0], [1], [0, 0, 1, 1], [], []>} : vector<2x384xf32>, vector<384x384xf32>, vector<2x384xf32> -> vector<2x384xf32>
    %251 = vector.broadcast %13 : vector<1x384xf32> to vector<2x384xf32>
    %252 = arith.addf %250, %251 : vector<2x384xf32>
    %253 = vector.extract_strided_slice %252 {offsets = [0, 0], sizes = [2, 128], strides = [1, 1]} : vector<2x384xf32> to vector<2x128xf32>
    %254 = arith.negf %253 : vector<2x128xf32>
    %255 = math.exp %254 : vector<2x128xf32>
    %cst_72 = arith.constant 1.000000e+00 : f32
    %256 = vector.broadcast %cst_72 : f32 to vector<2x128xf32>
    %257 = arith.addf %256, %255 : vector<2x128xf32>
    %258 = arith.divf %256, %257 : vector<2x128xf32>
    %259 = vector.extract_strided_slice %252 {offsets = [0, 128], sizes = [2, 128], strides = [1, 1]} : vector<2x384xf32> to vector<2x128xf32>
    %260 = arith.negf %259 : vector<2x128xf32>
    %261 = math.exp %260 : vector<2x128xf32>
    %cst_73 = arith.constant 1.000000e+00 : f32
    %262 = vector.broadcast %cst_73 : f32 to vector<2x128xf32>
    %263 = arith.addf %262, %261 : vector<2x128xf32>
    %264 = arith.divf %262, %263 : vector<2x128xf32>
    %265 = vector.extract_strided_slice %252 {offsets = [0, 256], sizes = [2, 128], strides = [1, 1]} : vector<2x384xf32> to vector<2x128xf32>
    %266 = arith.mulf %258, %228 : vector<2x128xf32>
    %267 = arith.addf %265, %266 : vector<2x128xf32>
    %268 = math.tanh %267 : vector<2x128xf32>
    %cst_74 = arith.constant 1.000000e+00 : f32
    %269 = vector.broadcast %cst_74 : f32 to vector<2x128xf32>
    %270 = arith.subf %269, %264 : vector<2x128xf32>
    %271 = arith.mulf %270, %268 : vector<2x128xf32>
    %272 = arith.mulf %264, %206 : vector<2x128xf32>
    %273 = arith.addf %271, %272 : vector<2x128xf32>
    %cst_75 = arith.constant dense<0.000000e+00> : vector<2x128xf32>
    %274 = tpu.matmul %273, %15, %cst_75 {dimension_numbers = #tpu.dot_dimension_numbers<[1], [0], [0], [1], [0, 0, 1, 1], [], []>} : vector<2x128xf32>, vector<128x128xf32>, vector<2x128xf32> -> vector<2x128xf32>
    %275 = vector.broadcast %16 : vector<1x128xf32> to vector<2x128xf32>
    %276 = arith.addf %274, %275 : vector<2x128xf32>
    %277 = vector.shape_cast %276 : vector<2x128xf32> to vector<2x1x128xf32>
    %c0_76 = arith.constant 0 : index
    %c3 = arith.constant 3 : index
    %c0_77 = arith.constant 0 : index
    %278 = vector.load %arg10[%c0_76, %c3, %c0_77] : memref<2x6x128xf32, #tpu.memory_space<vmem>>, vector<2x1x128xf32>
    tpu.vector_store %arg10[%c0_76, %c3, %c0_77], %277 {strides = array<i32>} : memref<2x6x128xf32, #tpu.memory_space<vmem>>, vector<2x1x128xf32>,
    %cst_78 = arith.constant dense<0xFF800000> : vector<2xf32>
    %279 = vector.multi_reduction <maximumf>, %276, %cst_78 [1] : vector<2x128xf32> to vector<2xf32>
    %280 = vector.shape_cast %279 : vector<2xf32> to vector<2x1xf32>
    %281 = vector.broadcast %280 : vector<2x1xf32> to vector<2x128xf32>
    %282 = arith.cmpf oeq, %276, %281 : vector<2x128xf32>
    %c128_i32_79 = arith.constant 128 : i32
    %283 = vector.broadcast %c128_i32_79 : i32 to vector<2x128xi32>
    %284 = arith.select %282, %17, %283 : vector<2x128xi1>, vector<2x128xi32>
    %cst_80 = arith.constant dense<2147483647> : vector<2xi32>
    %285 = vector.multi_reduction <minsi>, %284, %cst_80 [1] : vector<2x128xi32> to vector<2xi32>
    %286 = vector.shape_cast %285 : vector<2xi32> to vector<2x1xi32>
    %287 = vector.broadcast %286 : vector<2x1xi32> to vector<2x128xi32>
    %288 = arith.cmpi eq, %17, %287 : vector<2x128xi32>
    %289 = arith.extui %288 : vector<2x128xi1> to vector<2x128xi32>
    %290 = arith.sitofp %289 : vector<2x128xi32> to vector<2x128xf32>
    %cst_81 = arith.constant dense<0.000000e+00> : vector<2x256xf32>
    %291 = tpu.matmul %273, %11, %cst_81 {dimension_numbers = #tpu.dot_dimension_numbers<[1], [0], [0], [1], [0, 0, 1, 1], [], []>} : vector<2x128xf32>, vector<128x256xf32>, vector<2x256xf32> -> vector<2x256xf32>
    %292 = vector.extract_strided_slice %291 {offsets = [0, 0], sizes = [2, 128], strides = [1, 1]} : vector<2x256xf32> to vector<2x128xf32>
    %293 = vector.extract_strided_slice %291 {offsets = [0, 128], sizes = [2, 128], strides = [1, 1]} : vector<2x256xf32> to vector<2x128xf32>
    %294 = vector.broadcast %14 : vector<1x128xf32> to vector<2x128xf32>
    %295 = arith.addf %293, %294 : vector<2x128xf32>
    %296 = vector.shape_cast %292 : vector<2x128xf32> to vector<2x1x128xf32>
    %297 = vector.broadcast %296 : vector<2x1x128xf32> to vector<2x8x128xf32>
    %298 = arith.addf %8, %297 : vector<2x8x128xf32>
    %299 = math.tanh %298 : vector<2x8x128xf32>
    %300 = vector.broadcast %10 : vector<1x1x128xf32> to vector<2x8x128xf32>
    %301 = arith.mulf %299, %300 : vector<2x8x128xf32>
    %cst_82 = arith.constant dense<0.000000e+00> : vector<2x8xf32>
    %302 = vector.multi_reduction <add>, %301, %cst_82 [2] : vector<2x8x128xf32> to vector<2x8xf32>
    %cst_83 = arith.constant dense<0xFF800000> : vector<2xf32>
    %303 = vector.multi_reduction <maximumf>, %302, %cst_83 [1] : vector<2x8xf32> to vector<2xf32>
    %304 = vector.shape_cast %303 : vector<2xf32> to vector<2x1xf32>
    %305 = vector.broadcast %304 : vector<2x1xf32> to vector<2x8xf32>
    %306 = arith.subf %302, %305 : vector<2x8xf32>
    %307 = math.exp %306 : vector<2x8xf32>
    %cst_84 = arith.constant dense<0.000000e+00> : vector<2xf32>
    %308 = vector.multi_reduction <add>, %307, %cst_84 [1] : vector<2x8xf32> to vector<2xf32>
    %309 = vector.shape_cast %308 : vector<2xf32> to vector<2x1xf32>
    %310 = vector.broadcast %309 : vector<2x1xf32> to vector<2x8xf32>
    %311 = arith.divf %307, %310 : vector<2x8xf32>
    %312 = vector.shape_cast %311 : vector<2x8xf32> to vector<2x8x1xf32>
    %313 = vector.broadcast %312 : vector<2x8x1xf32> to vector<2x8x128xf32>
    %314 = arith.mulf %313, %0 : vector<2x8x128xf32>
    %cst_85 = arith.constant dense<0.000000e+00> : vector<2x128xf32>
    %315 = vector.multi_reduction <add>, %314, %cst_85 [1] : vector<2x8x128xf32> to vector<2x128xf32>
    %316 = tpu.concatenate %290, %315, %273 in 1 : vector<2x128xf32>, vector<2x128xf32>, vector<2x128xf32> -> vector<2x384xf32>
    %cst_86 = arith.constant dense<0.000000e+00> : vector<2x384xf32>
    %317 = tpu.matmul %316, %12, %cst_86 {dimension_numbers = #tpu.dot_dimension_numbers<[1], [0], [0], [1], [0, 0, 1, 1], [], []>} : vector<2x384xf32>, vector<384x384xf32>, vector<2x384xf32> -> vector<2x384xf32>
    %318 = vector.broadcast %13 : vector<1x384xf32> to vector<2x384xf32>
    %319 = arith.addf %317, %318 : vector<2x384xf32>
    %320 = vector.extract_strided_slice %319 {offsets = [0, 0], sizes = [2, 128], strides = [1, 1]} : vector<2x384xf32> to vector<2x128xf32>
    %321 = arith.negf %320 : vector<2x128xf32>
    %322 = math.exp %321 : vector<2x128xf32>
    %cst_87 = arith.constant 1.000000e+00 : f32
    %323 = vector.broadcast %cst_87 : f32 to vector<2x128xf32>
    %324 = arith.addf %323, %322 : vector<2x128xf32>
    %325 = arith.divf %323, %324 : vector<2x128xf32>
    %326 = vector.extract_strided_slice %319 {offsets = [0, 128], sizes = [2, 128], strides = [1, 1]} : vector<2x384xf32> to vector<2x128xf32>
    %327 = arith.negf %326 : vector<2x128xf32>
    %328 = math.exp %327 : vector<2x128xf32>
    %cst_88 = arith.constant 1.000000e+00 : f32
    %329 = vector.broadcast %cst_88 : f32 to vector<2x128xf32>
    %330 = arith.addf %329, %328 : vector<2x128xf32>
    %331 = arith.divf %329, %330 : vector<2x128xf32>
    %332 = vector.extract_strided_slice %319 {offsets = [0, 256], sizes = [2, 128], strides = [1, 1]} : vector<2x384xf32> to vector<2x128xf32>
    %333 = arith.mulf %325, %295 : vector<2x128xf32>
    %334 = arith.addf %332, %333 : vector<2x128xf32>
    %335 = math.tanh %334 : vector<2x128xf32>
    %cst_89 = arith.constant 1.000000e+00 : f32
    %336 = vector.broadcast %cst_89 : f32 to vector<2x128xf32>
    %337 = arith.subf %336, %331 : vector<2x128xf32>
    %338 = arith.mulf %337, %335 : vector<2x128xf32>
    %339 = arith.mulf %331, %273 : vector<2x128xf32>
    %340 = arith.addf %338, %339 : vector<2x128xf32>
    %cst_90 = arith.constant dense<0.000000e+00> : vector<2x128xf32>
    %341 = tpu.matmul %340, %15, %cst_90 {dimension_numbers = #tpu.dot_dimension_numbers<[1], [0], [0], [1], [0, 0, 1, 1], [], []>} : vector<2x128xf32>, vector<128x128xf32>, vector<2x128xf32> -> vector<2x128xf32>
    %342 = vector.broadcast %16 : vector<1x128xf32> to vector<2x128xf32>
    %343 = arith.addf %341, %342 : vector<2x128xf32>
    %344 = vector.shape_cast %343 : vector<2x128xf32> to vector<2x1x128xf32>
    %c0_91 = arith.constant 0 : index
    %c4 = arith.constant 4 : index
    %c0_92 = arith.constant 0 : index
    %345 = vector.load %arg10[%c0_91, %c4, %c0_92] : memref<2x6x128xf32, #tpu.memory_space<vmem>>, vector<2x1x128xf32>
    tpu.vector_store %arg10[%c0_91, %c4, %c0_92], %344 {strides = array<i32>} : memref<2x6x128xf32, #tpu.memory_space<vmem>>, vector<2x1x128xf32>,
    %cst_93 = arith.constant dense<0xFF800000> : vector<2xf32>
    %346 = vector.multi_reduction <maximumf>, %343, %cst_93 [1] : vector<2x128xf32> to vector<2xf32>
    %347 = vector.shape_cast %346 : vector<2xf32> to vector<2x1xf32>
    %348 = vector.broadcast %347 : vector<2x1xf32> to vector<2x128xf32>
    %349 = arith.cmpf oeq, %343, %348 : vector<2x128xf32>
    %c128_i32_94 = arith.constant 128 : i32
    %350 = vector.broadcast %c128_i32_94 : i32 to vector<2x128xi32>
    %351 = arith.select %349, %17, %350 : vector<2x128xi1>, vector<2x128xi32>
    %cst_95 = arith.constant dense<2147483647> : vector<2xi32>
    %352 = vector.multi_reduction <minsi>, %351, %cst_95 [1] : vector<2x128xi32> to vector<2xi32>
    %353 = vector.shape_cast %352 : vector<2xi32> to vector<2x1xi32>
    %354 = vector.broadcast %353 : vector<2x1xi32> to vector<2x128xi32>
    %355 = arith.cmpi eq, %17, %354 : vector<2x128xi32>
    %356 = arith.extui %355 : vector<2x128xi1> to vector<2x128xi32>
    %357 = arith.sitofp %356 : vector<2x128xi32> to vector<2x128xf32>
    %cst_96 = arith.constant dense<0.000000e+00> : vector<2x256xf32>
    %358 = tpu.matmul %340, %11, %cst_96 {dimension_numbers = #tpu.dot_dimension_numbers<[1], [0], [0], [1], [0, 0, 1, 1], [], []>} : vector<2x128xf32>, vector<128x256xf32>, vector<2x256xf32> -> vector<2x256xf32>
    %359 = vector.extract_strided_slice %358 {offsets = [0, 0], sizes = [2, 128], strides = [1, 1]} : vector<2x256xf32> to vector<2x128xf32>
    %360 = vector.extract_strided_slice %358 {offsets = [0, 128], sizes = [2, 128], strides = [1, 1]} : vector<2x256xf32> to vector<2x128xf32>
    %361 = vector.broadcast %14 : vector<1x128xf32> to vector<2x128xf32>
    %362 = arith.addf %360, %361 : vector<2x128xf32>
    %363 = vector.shape_cast %359 : vector<2x128xf32> to vector<2x1x128xf32>
    %364 = vector.broadcast %363 : vector<2x1x128xf32> to vector<2x8x128xf32>
    %365 = arith.addf %8, %364 : vector<2x8x128xf32>
    %366 = math.tanh %365 : vector<2x8x128xf32>
    %367 = vector.broadcast %10 : vector<1x1x128xf32> to vector<2x8x128xf32>
    %368 = arith.mulf %366, %367 : vector<2x8x128xf32>
    %cst_97 = arith.constant dense<0.000000e+00> : vector<2x8xf32>
    %369 = vector.multi_reduction <add>, %368, %cst_97 [2] : vector<2x8x128xf32> to vector<2x8xf32>
    %cst_98 = arith.constant dense<0xFF800000> : vector<2xf32>
    %370 = vector.multi_reduction <maximumf>, %369, %cst_98 [1] : vector<2x8xf32> to vector<2xf32>
    %371 = vector.shape_cast %370 : vector<2xf32> to vector<2x1xf32>
    %372 = vector.broadcast %371 : vector<2x1xf32> to vector<2x8xf32>
    %373 = arith.subf %369, %372 : vector<2x8xf32>
    %374 = math.exp %373 : vector<2x8xf32>
    %cst_99 = arith.constant dense<0.000000e+00> : vector<2xf32>
    %375 = vector.multi_reduction <add>, %374, %cst_99 [1] : vector<2x8xf32> to vector<2xf32>
    %376 = vector.shape_cast %375 : vector<2xf32> to vector<2x1xf32>
    %377 = vector.broadcast %376 : vector<2x1xf32> to vector<2x8xf32>
    %378 = arith.divf %374, %377 : vector<2x8xf32>
    %379 = vector.shape_cast %378 : vector<2x8xf32> to vector<2x8x1xf32>
    %380 = vector.broadcast %379 : vector<2x8x1xf32> to vector<2x8x128xf32>
    %381 = arith.mulf %380, %0 : vector<2x8x128xf32>
    %cst_100 = arith.constant dense<0.000000e+00> : vector<2x128xf32>
    %382 = vector.multi_reduction <add>, %381, %cst_100 [1] : vector<2x8x128xf32> to vector<2x128xf32>
    %383 = tpu.concatenate %357, %382, %340 in 1 : vector<2x128xf32>, vector<2x128xf32>, vector<2x128xf32> -> vector<2x384xf32>
    %cst_101 = arith.constant dense<0.000000e+00> : vector<2x384xf32>
    %384 = tpu.matmul %383, %12, %cst_101 {dimension_numbers = #tpu.dot_dimension_numbers<[1], [0], [0], [1], [0, 0, 1, 1], [], []>} : vector<2x384xf32>, vector<384x384xf32>, vector<2x384xf32> -> vector<2x384xf32>
    %385 = vector.broadcast %13 : vector<1x384xf32> to vector<2x384xf32>
    %386 = arith.addf %384, %385 : vector<2x384xf32>
    %387 = vector.extract_strided_slice %386 {offsets = [0, 0], sizes = [2, 128], strides = [1, 1]} : vector<2x384xf32> to vector<2x128xf32>
    %388 = arith.negf %387 : vector<2x128xf32>
    %389 = math.exp %388 : vector<2x128xf32>
    %cst_102 = arith.constant 1.000000e+00 : f32
    %390 = vector.broadcast %cst_102 : f32 to vector<2x128xf32>
    %391 = arith.addf %390, %389 : vector<2x128xf32>
    %392 = arith.divf %390, %391 : vector<2x128xf32>
    %393 = vector.extract_strided_slice %386 {offsets = [0, 128], sizes = [2, 128], strides = [1, 1]} : vector<2x384xf32> to vector<2x128xf32>
    %394 = arith.negf %393 : vector<2x128xf32>
    %395 = math.exp %394 : vector<2x128xf32>
    %cst_103 = arith.constant 1.000000e+00 : f32
    %396 = vector.broadcast %cst_103 : f32 to vector<2x128xf32>
    %397 = arith.addf %396, %395 : vector<2x128xf32>
    %398 = arith.divf %396, %397 : vector<2x128xf32>
    %399 = vector.extract_strided_slice %386 {offsets = [0, 256], sizes = [2, 128], strides = [1, 1]} : vector<2x384xf32> to vector<2x128xf32>
    %400 = arith.mulf %392, %362 : vector<2x128xf32>
    %401 = arith.addf %399, %400 : vector<2x128xf32>
    %402 = math.tanh %401 : vector<2x128xf32>
    %cst_104 = arith.constant 1.000000e+00 : f32
    %403 = vector.broadcast %cst_104 : f32 to vector<2x128xf32>
    %404 = arith.subf %403, %398 : vector<2x128xf32>
    %405 = arith.mulf %404, %402 : vector<2x128xf32>
    %406 = arith.mulf %398, %340 : vector<2x128xf32>
    %407 = arith.addf %405, %406 : vector<2x128xf32>
    %cst_105 = arith.constant dense<0.000000e+00> : vector<2x128xf32>
    %408 = tpu.matmul %407, %15, %cst_105 {dimension_numbers = #tpu.dot_dimension_numbers<[1], [0], [0], [1], [0, 0, 1, 1], [], []>} : vector<2x128xf32>, vector<128x128xf32>, vector<2x128xf32> -> vector<2x128xf32>
    %409 = vector.broadcast %16 : vector<1x128xf32> to vector<2x128xf32>
    %410 = arith.addf %408, %409 : vector<2x128xf32>
    %411 = vector.shape_cast %410 : vector<2x128xf32> to vector<2x1x128xf32>
    %c0_106 = arith.constant 0 : index
    %c5 = arith.constant 5 : index
    %c0_107 = arith.constant 0 : index
    %412 = vector.load %arg10[%c0_106, %c5, %c0_107] : memref<2x6x128xf32, #tpu.memory_space<vmem>>, vector<2x1x128xf32>
    tpu.vector_store %arg10[%c0_106, %c5, %c0_107], %411 {strides = array<i32>} : memref<2x6x128xf32, #tpu.memory_space<vmem>>, vector<2x1x128xf32>,
    %c0_108 = arith.constant 0 : index
    %c0_109 = arith.constant 0 : index
    %c0_110 = arith.constant 0 : index
    %413 = vector.load %arg10[%c0_108, %c0_109, %c0_110] : memref<2x6x128xf32, #tpu.memory_space<vmem>>, vector<2x6x128xf32>
    %cst_111 = arith.constant dense<0xFF800000> : vector<2x6xf32>
    %414 = vector.multi_reduction <maximumf>, %413, %cst_111 [2] : vector<2x6x128xf32> to vector<2x6xf32>
    %415 = vector.shape_cast %414 : vector<2x6xf32> to vector<2x6x1xf32>
    %416 = vector.broadcast %415 : vector<2x6x1xf32> to vector<2x6x128xf32>
    %417 = arith.subf %413, %416 : vector<2x6x128xf32>
    %418 = math.exp %417 : vector<2x6x128xf32>
    %cst_112 = arith.constant dense<0.000000e+00> : vector<2x6xf32>
    %419 = vector.multi_reduction <add>, %418, %cst_112 [2] : vector<2x6x128xf32> to vector<2x6xf32>
    %420 = vector.shape_cast %419 : vector<2x6xf32> to vector<2x6x1xf32>
    %421 = math.log %420 : vector<2x6x1xf32>
    %422 = arith.addf %421, %415 : vector<2x6x1xf32>
    %423 = vector.broadcast %422 : vector<2x6x1xf32> to vector<2x6x128xf32>
    %424 = arith.subf %413, %423 : vector<2x6x128xf32>
    %c0_113 = arith.constant 0 : index
    %c0_114 = arith.constant 0 : index
    %c0_115 = arith.constant 0 : index
    %425 = vector.load %arg10[%c0_113, %c0_114, %c0_115] : memref<2x6x128xf32, #tpu.memory_space<vmem>>, vector<2x6x128xf32>
    tpu.vector_store %arg10[%c0_113, %c0_114, %c0_115], %424 {strides = array<i32>} : memref<2x6x128xf32, #tpu.memory_space<vmem>>, vector<2x6x128xf32>,
    %c0_116 = arith.constant 0 : index
    %c0_117 = arith.constant 0 : index
    %426 = vector.load %arg11[%c0_116, %c0_117] : memref<2x128xf32, #tpu.memory_space<vmem>>, vector<2x128xf32>
    tpu.vector_store %arg11[%c0_116, %c0_117], %407 {strides = array<i32>} : memref<2x128xf32, #tpu.memory_space<vmem>>, vector<2x128xf32>,
    return
  }
}

</mosaic_0001>

<bundles_post_ra>
// kernel: decoder_forward.1
= control target key start
LH: loop header
LB: loop body
LE: loop exit
PB: predicated region body
PF: predicated region fallthrough
CT: control target
= control target key end

     0   :  { %v8632_v3 = vmov 0.0   ;;  %vm477_vm0 = vcmask 1041409   ;;  %vm480_vm1 = vcmask 58368   ;;  %vm6589_vm3 = vmmov 0   ;;  %s8620_s4 = inlined_call_operand.vmem [shape: f32[128,256], index: 4, kind: input, shape index: {}]   ;;  %s8621_s1 = inlined_call_operand.vmem [shape: f32[128,128], index: 1, kind: input, shape index: {}]   ;;  %s8622_s0 = inlined_call_operand.vmem [shape: f32[2,8,128], index: 0, kind: input, shape index: {}]   ;;  %s8623_s2 = inlined_call_operand.vmem [shape: f32[1,128], index: 2, kind: input, shape index: {}]   ;;  %s8624_s3 = inlined_call_operand.vmem [shape: f32[1,128], index: 3, kind: input, shape index: {}]   ;;  %s8625_s5 = inlined_call_operand.vmem [shape: f32[384,384], index: 5, kind: input, shape index: {}]   ;;  %s8626_s8 = inlined_call_operand.vmem [shape: f32[128,128], index: 8, kind: input, shape index: {}]   ;;  %s8627_s6 = inlined_call_operand.vmem [shape: f32[1,384], index: 6, kind: input, shape index: {}]   ;;  %s8628_s7 = inlined_call_operand.vmem [shape: f32[1,128], index: 7, kind: input, shape index: {}]   ;;  %s8629_s9 = inlined_call_operand.vmem [shape: f32[1,128], index: 9, kind: input, shape index: {}]   ;;  %s8630_s10 = inlined_call_operand.vmem [shape: f32[2,6,128], index: 10, kind: output, shape index: {0}]   ;;  %s8631_s11 = inlined_call_operand.vmem [shape: f32[2,128], index: 11, kind: output, shape index: {1}]  }
   0x1   :  { %v141_v0 = vld [vmem:[%s8620_s4 + $0x8] sm:$0xff]  ;;  %v143_v1 = vld [vmem:[%s8620_s4 + $0x18] sm:$0xff]  ;;  %v140_v2 = vld [vmem:[%s8620_s4] sm:$0xff]  ;;  %404 = vmatprep.mubr.f32.mxu1 %v8632_v3  ;;  %vm985_vm4 = vcmask 1041408  }
   0x2   :  { %v6660_v4 = vpack.c.bf16 %v143_v1, %v141_v0  ;;  %v142_v5 = vld [vmem:[%s8620_s4 + $0x10] sm:$0xff]  ;;  %v39_v6 = vld [vmem:[%s8621_s1] sm:$0xff]  ;;  %v40_v7 = vld [vmem:[%s8621_s1 + $0x8] sm:$0xff] }
   0x3   :  { %v6671_v8 = vpack.c.bf16 %v142_v5, %v140_v2  ;;  %v5119_v9 = vpack.c.bf16 %v40_v7, %v39_v6  ;;  %v145_v10 = vld [vmem:[%s8620_s4 + $0x28] sm:$0xff]  ;;  %v147_v11 = vld [vmem:[%s8620_s4 + $0x38] sm:$0xff]  ;;  %v144_v12 = vld [vmem:[%s8620_s4 + $0x20] sm:$0xff] }
   0x4   :  { %8837 = vst [vmem:[#allocation2_spill] sm:$0xff] %v6660_v4  ;;  %5152 = vmatprep.subr.bf16.mxu1 %v6660_v4  ;;  %v6683_v13 = vpack.c.bf16 %v147_v11, %v145_v10  ;;  %v146_v14 = vld [vmem:[%s8620_s4 + $0x30] sm:$0xff]  ;;  %v42_v16 = vld [vmem:[%s8621_s1 + $0x18] sm:$0xff]  ;;  %v149_v19 = vld [vmem:[%s8620_s4 + $0x48] sm:$0xff] }
   0x5   :  { %8838 = vst [vmem:[#allocation3_spill] sm:$0xff] %v6671_v8  ;;  %v41_v15 = vld [vmem:[%s8621_s1 + $0x10] sm:$0xff]  ;;  %5154 = vmatpush1.bf16.msra.mxu1 %v6671_v8  ;;  %5120 = vmatprep.subr.bf16.mxu0 %v5119_v9  ;;  %v6695_v17 = vpack.c.bf16 %v146_v14, %v144_v12  ;;  %v151_v20 = vld [vmem:[%s8620_s4 + $0x58] sm:$0xff]  ;;  %v148_v21 = vld [vmem:[%s8620_s4 + $0x40] sm:$0xff] }
   0x6   :  { %8839 = vst [vmem:[#allocation4_spill] sm:$0xff] %v6683_v13  ;;  %v5123_v18 = vpack.c.bf16 %v42_v16, %v41_v15  ;;  %5122 = vmatpush3.bf16.msra.mxu0 %v5119_v9  ;;  %5156 = vmatprep.subr.bf16.mxu1 %v6683_v13  ;;  %v6707_v22 = vpack.c.bf16 %v151_v20, %v149_v19  ;;  %v150_v23 = vld [vmem:[%s8620_s4 + $0x50] sm:$0xff]  ;;  %v43_v24 = vld [vmem:[%s8621_s1 + $0x20] sm:$0xff]  ;;  %v44_v25 = vld [vmem:[%s8621_s1 + $0x28] sm:$0xff]  ;;  %v335_v15 = vlaneseq  ;;  %v6585_v16 = vmov 1966171168  }
   0x7   :  { %8840 = vst [vmem:[#allocation5_spill] sm:$0xff] %v6695_v17  ;;  %v5127_v26 = vpack.c.bf16 %v44_v25, %v43_v24  ;;  %v153_v27 = vld [vmem:[%s8620_s4 + $0x68] sm:$0xff]  ;;  %v155_v28 = vld [vmem:[%s8620_s4 + $0x78] sm:$0xff]  ;;  %v45_v29 = vld [vmem:[%s8621_s1 + $0x30] sm:$0xff]  ;;  %v6731_v31 = vpack.c.bf16 %v150_v23, %v148_v21 }
   0x8   :  { %8841 = vst [vmem:[#allocation6_spill] sm:$0xff] %v6707_v22  ;;  %5124 = vmatprep.subr.bf16.mxu0 %v5123_v18  ;;  %v46_v30 = vld [vmem:[%s8621_s1 + $0x38] sm:$0xff]  ;;  %v6734_v32 = vpack.c.bf16 %v155_v28, %v153_v27  ;;  %v152_v33 = vld [vmem:[%s8620_s4 + $0x60] sm:$0xff]  ;;  %v154_v34 = vld [vmem:[%s8620_s4 + $0x70] sm:$0xff]  ;;  %v6856_v20 = vshrl.u32 %v335_v15, 7 }
   0x9   :  { %5158 = vmatpush1.bf16.msra.mxu1 %v6695_v17  ;;  %8842 = vst [vmem:[#allocation7_spill] sm:$0xff] %v6731_v31  ;;  %v5131_v35 = vpack.c.bf16 %v46_v30, %v45_v29  ;;  %v157_v36 = vld [vmem:[%s8620_s4 + $0x88] sm:$0xff]  ;;  %v159_v37 = vld [vmem:[%s8620_s4 + $0x98] sm:$0xff]  ;;  %v47_v38 = vld [vmem:[%s8621_s1 + $0x40] sm:$0xff]  ;;  %v6755_v40 = vpack.c.bf16 %v154_v34, %v152_v33 }
   0xa   :  { %5126 = vmatpush3.bf16.msra.mxu0 %v5123_v18  ;;  %5160 = vmatprep.subr.bf16.mxu1 %v6707_v22  ;;  %8843 = vst [vmem:[#allocation8_spill] sm:$0xff] %v6734_v32  ;;  %v48_v39 = vld [vmem:[%s8621_s1 + $0x48] sm:$0xff]  ;;  %v6758_v41 = vpack.c.bf16 %v159_v37, %v157_v36  ;;  %v156_v42 = vld [vmem:[%s8620_s4 + $0x80] sm:$0xff]  ;;  %v158_v43 = vld [vmem:[%s8620_s4 + $0x90] sm:$0xff]  ;;  %v420_v18 = vunpack.c.l.s4 %v6585_v16 }
   0xb   :  { %5128 = vmatprep.subr.bf16.mxu0 %v5127_v26  ;;  %8844 = vst [vmem:[#allocation9_spill] sm:$0xff] %v6755_v40  ;;  %v5135_v44 = vpack.c.bf16 %v48_v39, %v47_v38  ;;  %v161_v45 = vld [vmem:[%s8620_s4 + $0xa8] sm:$0xff]  ;;  %v163_v46 = vld [vmem:[%s8620_s4 + $0xb8] sm:$0xff]  ;;  %v49_v47 = vld [vmem:[%s8621_s1 + $0x50] sm:$0xff]  ;;  %v6779_v49 = vpack.c.bf16 %v158_v43, %v156_v42 }
   0xc   :  { %8845 = vst [vmem:[#allocation10_spill] sm:$0xff] %v6758_v41  ;;  %v50_v48 = vld [vmem:[%s8621_s1 + $0x58] sm:$0xff]  ;;  %v6784_v50 = vld [vmem:[%s8622_s0] sm:$0xff]  ;;  %v6787_v51 = vpack.c.bf16 %v163_v46, %v161_v45  ;;  %v162_v53 = vld [vmem:[%s8620_s4 + $0xb0] sm:$0xff]  ;;  %v421_v19 = vunpack.c.0.s8 %v420_v18 }
   0xd   :  { %5162 = vmatpush1.bf16.msra.mxu1 %v6731_v31  ;;  %8846 = vst [vmem:[#allocation11_spill] sm:$0xff] %v6779_v49  ;;  %v160_v52 = vld [vmem:[%s8620_s4 + $0xa0] sm:$0xff]  ;;  %v5139_v54 = vpack.c.bf16 %v50_v48, %v49_v47  ;;  %v165_v55 = vld [vmem:[%s8620_s4 + $0xc8] sm:$0xff]  ;;  %v167_v56 = vld [vmem:[%s8620_s4 + $0xd8] sm:$0xff]  ;;  %4696 = vmatprep.mubr.f32.mxu0 %v6784_v50  ;;  %v6883_v48 = vand.u32 127, %v335_v15 }
   0xe   :  { %5130 = vmatpush3.bf16.msra.mxu0 %v5127_v26  ;;  %5164 = vmatprep.subr.bf16.mxu1 %v6734_v32  ;;  %8847 = vst [vmem:[#allocation12_spill] sm:$0xff] %v6787_v51  ;;  %v51_v57 = vld [vmem:[%s8621_s1 + $0x60] sm:$0xff]  ;;  %v52_v58 = vld [vmem:[%s8621_s1 + $0x68] sm:$0xff]  ;;  %v6809_v59 = vpack.c.bf16 %v162_v53, %v160_v52  ;;  %v6812_v60 = vpack.c.bf16 %v167_v56, %v165_v55  ;;  %v166_v62 = vld [vmem:[%s8620_s4 + $0xd0] sm:$0xff]  ;;  %v6866_v26 = vsub.s32 0, %v6856_v20 }
   0xf   :  { %5132 = vmatprep.subr.bf16.mxu0 %v5131_v35  ;;  %v164_v61 = vld [vmem:[%s8620_s4 + $0xc0] sm:$0xff]  ;;  %v5143_v63 = vpack.c.bf16 %v52_v58, %v51_v57  ;;  %v169_v0 = vld [vmem:[%s8620_s4 + $0xe8] sm:$0xff]  ;;  %v171_v1 = vld [vmem:[%s8620_s4 + $0xf8] sm:$0xff]  ;;  %v6859_v21 = vsub.s32 %v421_v19, %v6856_v20  ;;  %v6887_v53 = vsub.s32 %v6883_v48, %v6856_v20  ;;  %vm337_vm2 = vcmp.eq.s32.totalorder %v6883_v48, 1 }
  0x10   :  { %8848 = vst [vmem:[#allocation13_spill] sm:$0xff] %v6809_v59  ;;  %8849 = vst [vmem:[#allocation14_spill] sm:$0xff] %v6812_v60  ;;  %v53_v2 = vld [vmem:[%s8621_s1 + $0x70] sm:$0xff]  ;;  %v54_v5 = vld [vmem:[%s8621_s1 + $0x78] sm:$0xff]  ;;  %v6833_v6 = vpack.c.bf16 %v166_v62, %v164_v61  ;;  %v6836_v7 = vpack.c.bf16 %v171_v1, %v169_v0  ;;  %v6586_v61 = vmov 0   ;;  %v6894_v62 = vsub.s32 1, %v6856_v20 }
  0x11   :  { %5166 = vmatpush1.bf16.msra.mxu1 %v6755_v40  ;;  %v168_v9 = vld [vmem:[%s8620_s4 + $0xe0] sm:$0xff]  ;;  %v170_v10 = vld [vmem:[%s8620_s4 + $0xf0] sm:$0xff]  ;;  %v5147_v11 = vpack.c.bf16 %v54_v5, %v53_v2  ;;  %v6852_v14 = vld [vmem:[%s8622_s0 + $0x8] sm:$0xff]  ;;  %8853 = vst [vmem:[#allocation18_spill] sm:$0xff] %v6859_v21  ;;  %6430 = vset.pattern.permute.xlu0 %v6586_v61 }
  0x12   :  { %5134 = vmatpush3.bf16.msra.mxu0 %v5131_v35  ;;  %5168 = vmatprep.subr.bf16.mxu1 %v6758_v41  ;;  %8850 = vst [vmem:[#allocation15_spill] sm:$0xff] %v6833_v6  ;;  %8851 = vst [vmem:[#allocation16_spill] sm:$0xff] %v6836_v7  ;;  %v6845_v12 = vpack.c.bf16 %v170_v10, %v168_v9  ;;  %v4186_v24 = vld [vmem:[%s8623_s2] ss:$0 sm:$0xff] }
  0x13   :  { %5136 = vmatprep.subr.bf16.mxu0 %v5135_v44  ;;  %8854 = vst [vmem:[#allocation19_spill] sm:$0xff] %v6866_v26  ;;  %v4189_v43 = vld [vmem:[%s8624_s3] ss:$0 sm:$0xff]  ;;  %8857 = vst [vmem:[#allocation22_spill] sm:$0xff] %v6887_v53  ;;  %6429 = vset.pattern.permute.xlu1 %v6586_v61 }
  0x14   :  { %8852 = vst [vmem:[#allocation17_spill] sm:$0xff] %v6845_v12  ;;  %8858 = vst [vmem:[#allocation23_spill] sm:$0xff] %v6894_v62 }
  0x15   :  { %5170 = vmatpush1.bf16.msra.mxu1 %v6779_v49 }
  0x16   :  { %5138 = vmatpush3.bf16.msra.mxu0 %v5135_v44  ;;  %5172 = vmatprep.subr.bf16.mxu1 %v6787_v51 }
  0x17   :  { %5140 = vmatprep.subr.bf16.mxu0 %v5139_v54 }
  0x19   :  { %5174 = vmatpush1.bf16.msra.mxu1 %v6809_v59 }
  0x1a   :  { %5142 = vmatpush3.bf16.msra.mxu0 %v5139_v54  ;;  %5176 = vmatprep.subr.bf16.mxu1 %v6812_v60 }
  0x1b   :  { %5144 = vmatprep.subr.bf16.mxu0 %v5143_v63 }
  0x1d   :  { %5178 = vmatpush1.bf16.msra.mxu1 %v6833_v6 }
  0x1e   :  { %5146 = vmatpush3.bf16.msra.mxu0 %v5143_v63  ;;  %5180 = vmatprep.subr.bf16.mxu1 %v6836_v7 }
  0x1f   :  { %5148 = vmatprep.subr.bf16.mxu0 %v5147_v11 }
  0x21   :  { %5182 = vmatpush1.bf16.msra.mxu1 %v6845_v12 }
  0x22   :  { %5150 = vmatpush3.bf16.msra.mxu0 %v5147_v11 }
  0x24   :  { %405 = vmatmul.mubr.f32.vlgmr.msra.gmra.mrb[0].mxu1 %v8632_v3 }
  0x25   :  { %4697 = vmatmul.mubr.f32.vlgmr.msra.gmra.mrb[0].mxu0 %v6852_v14 }
  0xf7   :  { %v406_v23 = vpop.f32.mrb[0].mxu1 }
  0xf8   :  { %v425_v25 = vrot.slane %v406_v23, %v6859_v21  ;;  %v6868_v27 = vpop.f32.mrb[1].mxu1  ;;  %v4698_v28 = vpop.f32.mrb[0].mxu0 }
  0xf9   :  { %v121_v29 = vpop.f32.mrb[1].mxu0  ;;  %v6876_v38 = vadd.f32 %v4698_v28, %v4186_v24  ;;  %v173_v28 = vld [vmem:[%s8625_s5 + $0x8] sm:$0xff] }
  0xfa   :  { %v426_v30 = vcombine.high %v425_v25, %v425_v25  ;;  %v433_v33 = vrot.slane %v425_v25, %v6859_v21  ;;  %v6871_v34 = vadd.f32 %v4186_v24, %v121_v29  ;;  %v176_v29 = vld [vmem:[%s8625_s5 + $0x20] sm:$0xff] }
  0xfb   :  { %8856 = vst [vmem:[#allocation21_spill] sm:$0xff] %v6876_v38 }
  0xfc   :  { %8855 = vst [vmem:[#allocation20_spill] sm:$0xff] %v6871_v34  ;;  %v440_v35 = vrot.slane %v426_v30, %v6859_v21  ;;  %v444_v36 = vrot.slane %v433_v33, %v6866_v26  ;;  %v172_v30 = vld [vmem:[%s8625_s5] sm:$0xff]  ;;  %v6917_v33 = vpack.c.bf16 %v176_v29, %v173_v28  ;;  %v203_v28 = vld [vmem:[%s8625_s5 + $0xf8] sm:$0xff]  ;;  %v206_v29 = vld [vmem:[%s8625_s5 + $0x110] sm:$0xff] }
  0xfe   :  { %v448_v37 = vrot.slane %v440_v35, %v6866_v26  ;;  %v451_v39 = vadd.f32 %v444_v36, %v6871_v34  ;;  %8859 = vst [vmem:[#allocation24_spill] sm:$0xff] %v6917_v33  ;;  %v175_v35 = vld [vmem:[%s8625_s5 + $0x18] sm:$0xff]  ;;  %5184 = vmatprep.subr.bf16.mxu0 %v6917_v33 }
  0xff   :  { %v179_v36 = vld [vmem:[%s8625_s5 + $0x38] sm:$0xff] }
 0x100   :  { %6431 = vtanh.f32 %v451_v39  ;;  %v452_v42 = vadd.f32 %v448_v37, %v6876_v38  ;;  %v182_v37 = vld [vmem:[%s8625_s5 + $0x50] sm:$0xff]  ;;  %v6928_v39 = vpack.c.bf16 %v175_v35, %v172_v30  ;;  %v228_v35 = vld [vmem:[%s8625_s5 + $0x1c0] sm:$0xff] }
 0x102   :  { %6433 = vtanh.f32 %v452_v42  ;;  %v6930_v42 = vpack.c.bf16 %v182_v37, %v179_v36  ;;  %5186 = vmatpush1.bf16.msra.mxu0 %v6928_v39  ;;  %v231_v36 = vld [vmem:[%s8625_s5 + $0x1d8] sm:$0xff]  ;;  %v180_v37 = vld [vmem:[%s8625_s5 + $0x40] sm:$0xff] }
 0x104   :  { %5188 = vmatprep.subr.bf16.mxu0 %v6930_v42 }
 0x10a   :  { %v6432_v44 = vpop.eup %6431 }
 0x10b   :  { %v461_v45 = vmul.f32 %v6432_v44, %v4189_v43  ;;  %v181_v44 = vld [vmem:[%s8625_s5 + $0x48] sm:$0xff] }
 0x10c   :  { %v6434_v46 = vpop.eup %6433 }
 0x10d   :  { %463 = vadd.xlane.f32.xlu0 %v461_v45  ;;  %v462_v47 = vmul.f32 %v6434_v46, %v4189_v43  ;;  %v178_v43 = vld [vmem:[%s8625_s5 + $0x30] sm:$0xff]  ;;  %v185_v45 = vld [vmem:[%s8625_s5 + $0x68] sm:$0xff]  ;;  %v188_v46 = vld [vmem:[%s8625_s5 + $0x80] sm:$0xff] }
 0x111   :  { %465 = vadd.xlane.f32.xlu0 %v462_v47  ;;  %v6946_v47 = vpack.c.bf16 %v181_v44, %v178_v43  ;;  %v183_v43 = vld [vmem:[%s8625_s5 + $0x58] sm:$0xff] }
 0x113   :  { %5190 = vmatpush1.bf16.msra.mxu0 %v6946_v47 }
 0x19a   :  { %v464_v52 = vpop.xlane.xlu0 %463 }
 0x19b   :  { %v472_v55 = vrot.slane %v464_v52, %v6887_v53 }
 0x19e   :  { %v466_v54 = vpop.xlane.xlu0 %465 }
 0x19f   :  { %v476_v56 = vrot.slane %v466_v54, %v6887_v53 }
 0x1a1   :  { %v478_v57 = vsel %vm477_vm0, %v476_v56, %v472_v55  ;;  %v187_v55 = vld [vmem:[%s8625_s5 + $0x78] sm:$0xff] }
 0x1a2   :  { %v481_v58 = vsel %vm480_vm1, %v478_v57, -inf  ;;  %v191_v56 = vld [vmem:[%s8625_s5 + $0x98] sm:$0xff]  ;;  %v194_v57 = vld [vmem:[%s8625_s5 + $0xb0] sm:$0xff] }
 0x1a3   :  { %482 = vmax.xlane.f32.xlu1 %v481_v58  ;;  %v6967_v61 = vpack.c.bf16 %v194_v57, %v191_v56  ;;  %v7043_v56 = vpack.c.bf16 %v206_v29, %v203_v28  ;;  %v209_v57 = vld [vmem:[%s8625_s5 + $0x128] sm:$0xff]  ;;  %v211_v28 = vld [vmem:[%s8625_s5 + $0x138] sm:$0xff] }
 0x1a4   :  { %v215_v29 = vld [vmem:[%s8625_s5 + $0x158] sm:$0xff] }
 0x1a5   :  { %8862 = vst [vmem:[#allocation27_spill] sm:$0xff] %v6967_v61  ;;  %8867 = vst [vmem:[#allocation32_spill] sm:$0xff] %v7043_v56 }
 0x230   :  { %v483_v63 = vpop.xlane.xlu1 %482 }
 0x231   :  { %v488_v0 = vrot.slane %v483_v63, %v6866_v26  ;;  %v492_v1 = vrot.slane %v483_v63, %v6894_v62  ;;  %v190_v63 = vld [vmem:[%s8625_s5 + $0x90] sm:$0xff] }
 0x233   :  { %v495_v2 = vsub.f32 %v464_v52, %v488_v0  ;;  %v496_v5 = vsub.f32 %v466_v54, %v492_v1  ;;  %v6949_v52 = vpack.c.bf16 %v188_v46, %v185_v45  ;;  %v184_v54 = vld [vmem:[%s8625_s5 + $0x60] sm:$0xff]  ;;  %v193_v0 = vld [vmem:[%s8625_s5 + $0xa8] sm:$0xff]  ;;  %v202_v45 = vld [vmem:[%s8625_s5 + $0xf0] sm:$0xff] }
 0x234   :  { %v6964_v58 = vpack.c.bf16 %v187_v55, %v184_v54  ;;  %v197_v1 = vld [vmem:[%s8625_s5 + $0xc8] sm:$0xff]  ;;  %v7038_v54 = vpack.c.bf16 %v231_v36, %v228_v35  ;;  %v7040_v55 = vpack.c.bf16 %v183_v43, %v180_v37  ;;  %v218_v35 = vld [vmem:[%s8625_s5 + $0x170] sm:$0xff] }
 0x235   :  { %v497_v9 = vmul.f32 1.442695, %v495_v2  ;;  %v499_v10 = vmul.f32 1.442695, %v496_v5  ;;  %8860 = vst [vmem:[#allocation25_spill] sm:$0xff] %v6949_v52  ;;  %5192 = vmatprep.subr.bf16.mxu0 %v6949_v52  ;;  %v200_v2 = vld [vmem:[%s8625_s5 + $0xe0] sm:$0xff]  ;;  %v6982_v5 = vpack.c.bf16 %v193_v0, %v190_v63  ;;  %v7093_v37 = vpack.c.bf16 %v218_v35, %v215_v29 }
 0x236   :  { %8861 = vst [vmem:[#allocation26_spill] sm:$0xff] %v6964_v58  ;;  %5194 = vmatpush1.bf16.msra.mxu0 %v6964_v58  ;;  %v205_v46 = vld [vmem:[%s8625_s5 + $0x108] sm:$0xff]  ;;  %v234_v63 = vld [vmem:[%s8625_s5 + $0x1f0] sm:$0xff] }
 0x237   :  { %6435 = vpow2.f32 %v497_v9  ;;  %8863 = vst [vmem:[#allocation28_spill] sm:$0xff] %v6982_v5  ;;  %v222_v9 = vld [vmem:[%s8625_s5 + $0x190] sm:$0xff]  ;;  %5196 = vmatprep.subr.bf16.mxu0 %v6967_v61  ;;  %v237_v0 = vld [vmem:[%s8625_s5 + $0x208] sm:$0xff]  ;;  %8873 = vst [vmem:[#allocation38_spill] sm:$0xff] %v7093_v37 }
 0x238   :  { %6437 = vpow2.f32 %v499_v10  ;;  %v225_v10 = vld [vmem:[%s8625_s5 + $0x1a8] sm:$0xff]  ;;  %v214_v43 = vld [vmem:[%s8625_s5 + $0x150] sm:$0xff] }
 0x239   :  { %v226_v35 = vld [vmem:[%s8625_s5 + $0x1b0] sm:$0xff] }
 0x23a   :  { %5198 = vmatpush1.bf16.msra.mxu0 %v6982_v5 }
 0x241   :  { %v6898_v11 = vpop.eup %6435 }
 0x242   :  { %v6900_v15 = vpop.eup %6437  ;;  %504 = vperm.xlu1 %6429, %v6898_v11  }
 0x243   :  { %507 = vperm.xlu0 %6430, %v6900_v15  }
 0x2c1   :  { %v505_v16 = vpop.permute.xlu1 %504 }
 0x2c2   :  { %v508_v18 = vpop.permute.xlu0 %507  ;;  %v512_v19 = vrot.slane %v505_v16, %v6887_v53  ;;  %v174_v16 = vld [vmem:[%s8625_s5 + $0x10] sm:$0xff] }
 0x2c3   :  { %v516_v23 = vrot.slane %v508_v18, %v6887_v53  ;;  %v6994_v18 = vpack.c.bf16 %v200_v2, %v197_v1  ;;  %v212_v1 = vld [vmem:[%s8625_s5 + $0x140] sm:$0xff]  ;;  %v7058_v2 = vpack.c.bf16 %v237_v0, %v234_v63 }
 0x2c5   :  { %v517_v24 = vsel %vm477_vm0, %v516_v23, %v512_v19  ;;  %8864 = vst [vmem:[#allocation29_spill] sm:$0xff] %v6994_v18  ;;  %v196_v19 = vld [vmem:[%s8625_s5 + $0xc0] sm:$0xff]  ;;  %v199_v23 = vld [vmem:[%s8625_s5 + $0xd8] sm:$0xff]  ;;  %5200 = vmatprep.subr.bf16.mxu0 %v6994_v18  ;;  %8868 = vst [vmem:[#allocation33_spill] sm:$0xff] %v7058_v2 }
 0x2c6   :  { %v519_v25 = vsel %vm480_vm1, %v517_v24, 0.0  ;;  %v7002_v24 = vpack.c.bf16 %v225_v10, %v222_v9  ;;  %v7029_v44 = vpack.c.bf16 %v199_v23, %v196_v19  ;;  %v186_v9 = vld [vmem:[%s8625_s5 + $0x70] sm:$0xff]  ;;  %v189_v10 = vld [vmem:[%s8625_s5 + $0x88] sm:$0xff]  ;;  %v7073_v23 = vpack.c.bf16 %v212_v1, %v209_v57  ;;  %v224_v57 = vld [vmem:[%s8625_s5 + $0x1a0] sm:$0xff] }
 0x2c7   :  { %520 = vadd.xlane.f32.xlu1 %v519_v25  ;;  %v177_v25 = vld [vmem:[%s8625_s5 + $0x28] sm:$0xff]  ;;  %v7070_v19 = vpack.c.bf16 %v189_v10, %v186_v9  ;;  %v220_v1 = vld [vmem:[%s8625_s5 + $0x180] sm:$0xff]  ;;  %v223_v9 = vld [vmem:[%s8625_s5 + $0x198] sm:$0xff] }
 0x2c8   :  { %8865 = vst [vmem:[#allocation30_spill] sm:$0xff] %v7002_v24  ;;  %v7013_v30 = vpack.c.bf16 %v177_v25, %v174_v16  ;;  %5280 = vmatprep.subr.bf16.mxu1 %v7002_v24  ;;  %8866 = vst [vmem:[#allocation31_spill] sm:$0xff] %v7029_v44  ;;  %5202 = vmatpush1.bf16.msra.mxu0 %v7029_v44  ;;  %v7067_v16 = vpack.c.bf16 %v205_v46, %v202_v45  ;;  %v208_v25 = vld [vmem:[%s8625_s5 + $0x120] sm:$0xff]  ;;  %v217_v45 = vld [vmem:[%s8625_s5 + $0x168] sm:$0xff] }
 0x2c9   :  { %8870 = vst [vmem:[#allocation35_spill] sm:$0xff] %v7070_v19  ;;  %5204 = vmatprep.subr.bf16.mxu0 %v7043_v56  ;;  %8871 = vst [vmem:[#allocation36_spill] sm:$0xff] %v7073_v23  ;;  %v7089_v36 = vpack.c.bf16 %v211_v28, %v208_v25  ;;  %v221_v46 = vld [vmem:[%s8625_s5 + $0x188] sm:$0xff]  ;;  %v7108_v63 = vpack.c.bf16 %v217_v45, %v214_v43  ;;  %v227_v10 = vld [vmem:[%s8625_s5 + $0x1b8] sm:$0xff]  ;;  %v7126_v28 = vpack.c.bf16 %v223_v9, %v220_v1 }
 0x2ca   :  { %5282 = vmatpush3.bf16.msra.mxu1 %v7013_v30  ;;  %8869 = vst [vmem:[#allocation34_spill] sm:$0xff] %v7067_v16  ;;  %v7111_v0 = vpack.c.bf16 %v224_v57, %v221_v46  ;;  %v230_v25 = vld [vmem:[%s8625_s5 + $0x1d0] sm:$0xff]  ;;  %v229_v43 = vld [vmem:[%s8625_s5 + $0x1c8] sm:$0xff]  ;;  %v236_v46 = vld [vmem:[%s8625_s5 + $0x200] sm:$0xff] }
 0x2cb   :  { %5284 = vmatprep.subr.bf16.mxu1 %v7038_v54  ;;  %8872 = vst [vmem:[#allocation37_spill] sm:$0xff] %v7089_v36  ;;  %8874 = vst [vmem:[#allocation39_spill] sm:$0xff] %v7108_v63  ;;  %v7129_v29 = vpack.c.bf16 %v230_v25, %v227_v10  ;;  %v233_v45 = vld [vmem:[%s8625_s5 + $0x1e8] sm:$0xff]  ;;  %v7144_v57 = vpack.c.bf16 %v229_v43, %v226_v35  ;;  %v232_v9 = vld [vmem:[%s8625_s5 + $0x1e0] sm:$0xff] }
 0x2cc   :  { %5206 = vmatpush1.bf16.msra.mxu0 %v7067_v16  ;;  %8875 = vst [vmem:[#allocation40_spill] sm:$0xff] %v7111_v0  ;;  %8876 = vst [vmem:[#allocation41_spill] sm:$0xff] %v7126_v28  ;;  %v7147_v1 = vpack.c.bf16 %v236_v46, %v233_v45  ;;  %v235_v10 = vld [vmem:[%s8625_s5 + $0x1f8] sm:$0xff]  ;;  %v242_v35 = vld [vmem:[%s8625_s5 + $0x230] sm:$0xff] }
 0x2cd   :  { %5208 = vmatprep.subr.bf16.mxu0 %v7073_v23  ;;  %8877 = vst [vmem:[#allocation42_spill] sm:$0xff] %v7129_v29  ;;  %8878 = vst [vmem:[#allocation43_spill] sm:$0xff] %v7144_v57  ;;  %v239_v25 = vld [vmem:[%s8625_s5 + $0x218] sm:$0xff]  ;;  %v7162_v43 = vpack.c.bf16 %v235_v10, %v232_v9  ;;  %v238_v9 = vld [vmem:[%s8625_s5 + $0x210] sm:$0xff] }
 0x2ce   :  { %5286 = vmatpush3.bf16.msra.mxu1 %v7040_v55  ;;  %8879 = vst [vmem:[#allocation44_spill] sm:$0xff] %v7147_v1  ;;  %v7165_v45 = vpack.c.bf16 %v242_v35, %v239_v25  ;;  %v241_v10 = vld [vmem:[%s8625_s5 + $0x228] sm:$0xff]  ;;  %v240_v25 = vld [vmem:[%s8625_s5 + $0x220] sm:$0xff] }
 0x2cf   :  { %5288 = vmatprep.subr.bf16.mxu1 %v7058_v2  ;;  %8880 = vst [vmem:[#allocation45_spill] sm:$0xff] %v7162_v43  ;;  %v7181_v21 = vpack.c.bf16 %v241_v10, %v238_v9  ;;  %v245_v9 = vld [vmem:[%s8625_s5 + $0x248] sm:$0xff]  ;;  %v248_v10 = vld [vmem:[%s8625_s5 + $0x260] sm:$0xff] }
 0x2d0   :  { %5210 = vmatpush1.bf16.msra.mxu0 %v7089_v36  ;;  %8881 = vst [vmem:[#allocation46_spill] sm:$0xff] %v7165_v45 }
 0x2d1   :  { %5212 = vmatprep.subr.bf16.mxu0 %v7093_v37  ;;  %8882 = vst [vmem:[#allocation47_spill] sm:$0xff] %v7181_v21 }
 0x2d2   :  { %5290 = vmatpush3.bf16.msra.mxu1 %v7070_v19 }
 0x2d4   :  { %5214 = vmatpush1.bf16.msra.mxu0 %v7108_v63 }
 0x2d5   :  { %5216 = vmatprep.subr.bf16.mxu0 %v7111_v0 }
 0x2d8   :  { %5218 = vmatpush1.bf16.msra.mxu0 %v7126_v28 }
 0x2d9   :  { %5220 = vmatprep.subr.bf16.mxu0 %v7129_v29 }
 0x2dc   :  { %5222 = vmatpush1.bf16.msra.mxu0 %v7144_v57 }
 0x2dd   :  { %5224 = vmatprep.subr.bf16.mxu0 %v7147_v1 }
 0x2e0   :  { %5226 = vmatpush1.bf16.msra.mxu0 %v7162_v43  ;;  %v7205_v43 = vpack.c.bf16 %v248_v10, %v245_v9 }
 0x2e1   :  { %5228 = vmatprep.subr.bf16.mxu0 %v7165_v45 }
 0x2e2   :  { %8885 = vst [vmem:[#allocation50_spill] sm:$0xff] %v7205_v43 }
 0x2e4   :  { %5230 = vmatpush1.bf16.msra.mxu0 %v7181_v21 }
 0x2e5   :  { %5232 = vmatprep.subr.bf16.mxu0 %v7205_v43 }
 0x354   :  { %v521_v46 = vpop.xlane.xlu1 %520 }
 0x355   :  { %v526_v3 = vrot.slane %v521_v46, %v6866_v26  ;;  %v530_v53 = vrot.slane %v521_v46, %v6894_v62 }
 0x357   :  { %6439 = vrcp.f32 %v526_v3  ;;  %v243_v3 = vld [vmem:[%s8625_s5 + $0x238] sm:$0xff] }
 0x358   :  { %6441 = vrcp.f32 %v530_v53  ;;  %v195_v53 = vld [vmem:[%s8625_s5 + $0xb8] sm:$0xff] }
 0x361   :  { %v6440_v38 = vpop.eup %6439 }
 0x362   :  { %v534_v34 = vmul.f32 %v6440_v38, %v6898_v11  ;;  %v6442_v35 = vpop.eup %6441  ;;  %v192_v38 = vld [vmem:[%s8625_s5 + $0xa0] sm:$0xff]  ;;  %v7192_v11 = vpack.c.bf16 %v243_v3, %v240_v25  ;;  %v247_v25 = vld [vmem:[%s8625_s5 + $0x258] sm:$0xff]  ;;  %v246_v3 = vld [vmem:[%s8625_s5 + $0x250] sm:$0xff] }
 0x363   :  { %v7194_v46 = vpack.c.bf16 %v195_v53, %v192_v38  ;;  %v536_v45 = vmul.f32 %v6442_v35, %v6900_v15  ;;  %v249_v15 = vld [vmem:[%s8625_s5 + $0x268] sm:$0xff]  ;;  %v198_v35 = vld [vmem:[%s8625_s5 + $0xd0] sm:$0xff] }
 0x364   :  { %539 = vperm.xlu0 %6430, %v534_v34   ;;  %8883 = vst [vmem:[#allocation48_spill] sm:$0xff] %v7192_v11  ;;  %5292 = vmatprep.subr.bf16.mxu1 %v7192_v11  ;;  %v244_v34 = vld [vmem:[%s8625_s5 + $0x240] sm:$0xff]  ;;  %v201_v53 = vld [vmem:[%s8625_s5 + $0xe8] sm:$0xff]  ;;  %v7229_v9 = vpack.c.bf16 %v249_v15, %v246_v3 }
 0x365   :  { %8884 = vst [vmem:[#allocation49_spill] sm:$0xff] %v7194_v46  ;;  %5294 = vmatpush3.bf16.msra.mxu1 %v7194_v46  ;;  %v7217_v38 = vpack.c.bf16 %v247_v25, %v244_v34  ;;  %v7231_v10 = vpack.c.bf16 %v201_v53, %v198_v35  ;;  %v251_v34 = vld [vmem:[%s8625_s5 + $0x278] sm:$0xff]  ;;  %v254_v25 = vld [vmem:[%s8625_s5 + $0x290] sm:$0xff]  ;;  %v253_v3 = vld [vmem:[%s8625_s5 + $0x288] sm:$0xff] }
 0x366   :  { %8887 = vst [vmem:[#allocation52_spill] sm:$0xff] %v7229_v9  ;;  %5296 = vmatprep.subr.bf16.mxu1 %v7229_v9  ;;  %v7241_v21 = vpack.c.bf16 %v254_v25, %v251_v34  ;;  %v252_v15 = vld [vmem:[%s8625_s5 + $0x280] sm:$0xff]  ;;  %v255_v53 = vld [vmem:[%s8625_s5 + $0x298] sm:$0xff] }
 0x367   :  { %8886 = vst [vmem:[#allocation51_spill] sm:$0xff] %v7217_v38  ;;  %8888 = vst [vmem:[#allocation53_spill] sm:$0xff] %v7231_v10  ;;  %5234 = vmatpush1.bf16.msra.mxu0 %v7217_v38  ;;  %v204_v34 = vld [vmem:[%s8625_s5 + $0x100] sm:$0xff]  ;;  %v207_v25 = vld [vmem:[%s8625_s5 + $0x118] sm:$0xff]  ;;  %v7265_v38 = vpack.c.bf16 %v255_v53, %v252_v15 }
 0x368   :  { %544 = vperm.xlu0 %6430, %v536_v45   ;;  %8889 = vst [vmem:[#allocation54_spill] sm:$0xff] %v7241_v21  ;;  %v250_v45 = vld [vmem:[%s8625_s5 + $0x270] sm:$0xff]  ;;  %5236 = vmatprep.subr.bf16.mxu0 %v7241_v21  ;;  %v7267_v43 = vpack.c.bf16 %v207_v25, %v204_v34  ;;  %v256_v15 = vld [vmem:[%s8625_s5 + $0x2a0] sm:$0xff]  ;;  %v259_v53 = vld [vmem:[%s8625_s5 + $0x2b8] sm:$0xff] }
 0x369   :  { %5298 = vmatpush3.bf16.msra.mxu1 %v7231_v10  ;;  %v7253_v35 = vpack.c.bf16 %v253_v3, %v250_v45  ;;  %8891 = vst [vmem:[#allocation56_spill] sm:$0xff] %v7265_v38  ;;  %v257_v45 = vld [vmem:[%s8625_s5 + $0x2a8] sm:$0xff]  ;;  %v260_v3 = vld [vmem:[%s8625_s5 + $0x2c0] sm:$0xff]  ;;  %v258_v34 = vld [vmem:[%s8625_s5 + $0x2b0] sm:$0xff]  ;;  %v7289_v25 = vpack.c.bf16 %v259_v53, %v256_v15 }
 0x36a   :  { %8892 = vst [vmem:[#allocation57_spill] sm:$0xff] %v7267_v43  ;;  %5300 = vmatprep.subr.bf16.mxu1 %v7265_v38  ;;  %v7277_v1 = vpack.c.bf16 %v260_v3, %v257_v45  ;;  %v261_v45 = vld [vmem:[%s8625_s5 + $0x2c8] sm:$0xff]  ;;  %v210_v3 = vld [vmem:[%s8625_s5 + $0x130] sm:$0xff]  ;;  %v263_v15 = vld [vmem:[%s8625_s5 + $0x2d8] sm:$0xff] }
 0x36b   :  { %8890 = vst [vmem:[#allocation55_spill] sm:$0xff] %v7253_v35  ;;  %5238 = vmatpush1.bf16.msra.mxu0 %v7253_v35  ;;  %8894 = vst [vmem:[#allocation59_spill] sm:$0xff] %v7289_v25  ;;  %v213_v35 = vld [vmem:[%s8625_s5 + $0x148] sm:$0xff]  ;;  %v7301_v21 = vpack.c.bf16 %v261_v45, %v258_v34  ;;  %v266_v53 = vld [vmem:[%s8625_s5 + $0x2f0] sm:$0xff] }
 0x36c   :  { %8893 = vst [vmem:[#allocation58_spill] sm:$0xff] %v7277_v1  ;;  %5240 = vmatprep.subr.bf16.mxu0 %v7277_v1  ;;  %v7303_v57 = vpack.c.bf16 %v213_v35, %v210_v3  ;;  %v7313_v29 = vpack.c.bf16 %v266_v53, %v263_v15  ;;  %v262_v34 = vld [vmem:[%s8625_s5 + $0x2d0] sm:$0xff]  ;;  %v265_v35 = vld [vmem:[%s8625_s5 + $0x2e8] sm:$0xff]  ;;  %v264_v45 = vld [vmem:[%s8625_s5 + $0x2e0] sm:$0xff] }
 0x36d   :  { %5302 = vmatpush3.bf16.msra.mxu1 %v7267_v43  ;;  %8895 = vst [vmem:[#allocation60_spill] sm:$0xff] %v7301_v21  ;;  %v7325_v3 = vpack.c.bf16 %v265_v35, %v262_v34  ;;  %v267_v15 = vld [vmem:[%s8625_s5 + $0x2f8] sm:$0xff]  ;;  %v216_v53 = vld [vmem:[%s8625_s5 + $0x160] sm:$0xff]  ;;  %v269_v34 = vld [vmem:[%s8625_s5 + $0x308] sm:$0xff] }
 0x36e   :  { %8896 = vst [vmem:[#allocation61_spill] sm:$0xff] %v7303_v57  ;;  %5304 = vmatprep.subr.bf16.mxu1 %v7301_v21  ;;  %8897 = vst [vmem:[#allocation62_spill] sm:$0xff] %v7313_v29  ;;  %v7337_v1 = vpack.c.bf16 %v267_v15, %v264_v45  ;;  %v272_v35 = vld [vmem:[%s8625_s5 + $0x320] sm:$0xff]  ;;  %v277_v21 = vld [vmem:[%s8625_s5 + $0x348] sm:$0xff] }
 0x36f   :  { %5242 = vmatpush1.bf16.msra.mxu0 %v7289_v25  ;;  %8898 = vst [vmem:[#allocation63_spill] sm:$0xff] %v7325_v3  ;;  %v219_v25 = vld [vmem:[%s8625_s5 + $0x178] sm:$0xff]  ;;  %v7349_v0 = vpack.c.bf16 %v272_v35, %v269_v34 }
 0x370   :  { %5244 = vmatprep.subr.bf16.mxu0 %v7313_v29  ;;  %8899 = vst [vmem:[#allocation64_spill] sm:$0xff] %v7337_v1  ;;  %v7339_v28 = vpack.c.bf16 %v219_v25, %v216_v53  ;;  %v8688_v25 = vmov 0.0|0.0  }
 0x371   :  { %5306 = vmatpush3.bf16.msra.mxu1 %v7303_v57  ;;  %8901 = vst [vmem:[#allocation66_spill] sm:$0xff] %v7349_v0 }
 0x372   :  { %8900 = vst [vmem:[#allocation65_spill] sm:$0xff] %v7339_v28  ;;  %5308 = vmatprep.subr.bf16.mxu1 %v7337_v1 }
 0x373   :  { %5246 = vmatpush1.bf16.msra.mxu0 %v7325_v3 }
 0x374   :  { %5248 = vmatprep.subr.bf16.mxu0 %v7349_v0  ;;  %v268_v0 = vld [vmem:[%s8625_s5 + $0x300] sm:$0xff] }
 0x375   :  { %5310 = vmatpush3.bf16.msra.mxu1 %v7339_v28 }
 0x376   :  { %5311 = vmatprep.subr.bf16.mxu1 %v8688_v25 }
 0x3e3   :  { %v540_v45 = vpop.permute.xlu0 %539 }
 0x3e4   :  { %v547_v15 = vmul.f32 %v540_v45, %v6784_v50  ;;  %v271_v50 = vld [vmem:[%s8625_s5 + $0x318] sm:$0xff] }
 0x3e5   :  { %v7375_v45 = vpack.c.bf16 %v271_v50, %v268_v0  ;;  %v279_v0 = vld [vmem:[%s8625_s5 + $0x358] sm:$0xff] }
 0x3e6   :  { %v549_v53 = vrot.slane %v547_v15, 4 }
 0x3e7   :  { %v545_v3 = vpop.permute.xlu0 %544 }
 0x3e8   :  { %v550_v29 = vadd.f32 %v549_v53, %v547_v15  ;;  %v548_v63 = vmul.f32 %v545_v3, %v6852_v14  ;;  %v270_v14 = vld [vmem:[%s8625_s5 + $0x310] sm:$0xff] }
 0x3e9   :  { %v274_v53 = vld [vmem:[%s8625_s5 + $0x330] sm:$0xff] }
 0x3ea   :  { %v551_v37 = vrot.slane %v550_v29, 2  ;;  %v555_v57 = vrot.slane %v548_v63, 4  ;;  %v7404_v50 = vpack.c.bf16 %v277_v21, %v274_v53  ;;  %v282_v21 = vld [vmem:[%s8625_s5 + $0x370] sm:$0xff]  ;;  %v287_v53 = vld [vmem:[%s8625_s5 + $0x398] sm:$0xff] }
 0x3ec   :  { %v552_v1 = vadd.f32 %v551_v37, %v550_v29  ;;  %v556_v34 = vadd.f32 %v555_v57, %v548_v63  ;;  %v273_v37 = vld [vmem:[%s8625_s5 + $0x328] sm:$0xff]  ;;  %v275_v63 = vld [vmem:[%s8625_s5 + $0x338] sm:$0xff]  ;;  %v278_v29 = vld [vmem:[%s8625_s5 + $0x350] sm:$0xff]  ;;  %8902 = vst [vmem:[#allocation67_spill] sm:$0xff] %v7404_v50 }
 0x3ed   :  { %v7377_v15 = vpack.c.bf16 %v273_v37, %v270_v14  ;;  %v280_v37 = vld [vmem:[%s8625_s5 + $0x360] sm:$0xff] }
 0x3ee   :  { %v557_v35 = vrot.slane %v556_v34, 2  ;;  %v553_v36 = vrot.slane %v552_v1, 1 }
 0x3f0   :  { %v558_v28 = vadd.f32 %v557_v35, %v556_v34  ;;  %v554_v57 = vadd.f32 %v553_v36, %v552_v1  ;;  %v7383_v35 = vpack.c.bf16 %v278_v29, %v275_v63  ;;  %v276_v36 = vld [vmem:[%s8625_s5 + $0x340] sm:$0xff]  ;;  %v8904_v63 = vmov 0.0|0.0  }
 0x3f1   :  { %v284_v1 = vld [vmem:[%s8625_s5 + $0x380] sm:$0xff]  ;;  %v7406_v14 = vpack.c.bf16 %v279_v0, %v276_v36  ;;  %v8906_v36 = vmov 0.0  }
 0x3f2   :  { %v559_v25 = vrot.slane %v558_v28, 1 }
 0x3f3   :  { %8903 = vst [vmem:[#allocation68_spill] sm:$0xff] %v7406_v14 }
 0x3f4   :  { %v560_v3 = vadd.f32 %v559_v25, %v558_v28  ;;  %v281_v28 = vld [vmem:[%s8625_s5 + $0x368] sm:$0xff]  ;;  %v8692_v25 = vmov 1.0  }
 0x3f5   :  { %v7413_v29 = vpack.c.bf16 %v284_v1, %v281_v28  ;;  %v286_v1 = vld [vmem:[%s8625_s5 + $0x390] sm:$0xff] }
 0x3f6   :  { %v563_v34 = vsel %vm477_vm0, %v560_v3, %v554_v57  ;;  %v283_v57 = vld [vmem:[%s8625_s5 + $0x378] sm:$0xff]  ;;  %v285_v3 = vld [vmem:[%s8625_s5 + $0x388] sm:$0xff] }
 0x3f7   :  { %645 = vmatprep.mubr.f32.mxu0 %v563_v34  ;;  %787 = vmatprep.mubr.f32.mxu1 %v563_v34  ;;  %8905 = vst [vmem:[#allocation69_spill] sm:$0xff] %v7413_v29  ;;  %v290_v34 = vld [vmem:[%s8625_s5 + $0x3b0] sm:$0xff]  ;;  %v7435_v0 = vpack.c.bf16 %v283_v57, %v280_v37  ;;  %v7437_v28 = vpack.c.bf16 %v285_v3, %v282_v21  ;;  %v288_v37 = vld [vmem:[%s8625_s5 + $0x3a0] sm:$0xff]  ;;  %v291_v57 = vld [vmem:[%s8625_s5 + $0x3b8] sm:$0xff] }
 0x3f8   :  { %4190 = vmatmul.mubr.msk.f32.vlgmr.msra.gmra.mrb[2].mxu0 %vm337_vm2, %v8692_v25  ;;  %4191 = vmatmul.mubr.msk.f32.vlgmr.msra.gmra.mrb[2].mxu1 %vm337_vm2, %v8692_v25  ;;  %v7444_v25 = vpack.c.bf16 %v290_v34, %v287_v53  ;;  %v293_v21 = vld [vmem:[%s8625_s5 + $0x3c8] sm:$0xff]  ;;  %v296_v3 = vld [vmem:[%s8625_s5 + $0x3e0] sm:$0xff]  ;;  %v7465_v34 = vpack.c.bf16 %v291_v57, %v288_v37  ;;  %v299_v37 = vld [vmem:[%s8625_s5 + $0x3f8] sm:$0xff] }
 0x3f9   :  { %5250 = vmatpush1.bf16.msra.mxu0 %v7375_v45  ;;  %5313 = vmatpush3.bf16.msra.mxu1 %v7377_v15  ;;  %8907 = vst [vmem:[#allocation70_spill] sm:$0xff] %v7435_v0  ;;  %8908 = vst [vmem:[#allocation71_spill] sm:$0xff] %v7437_v28  ;;  %v302_v57 = vld [vmem:[%s8625_s5 + $0x410] sm:$0xff] }
 0x3fa   :  { %5252 = vmatprep.subr.bf16.mxu0 %v7383_v35  ;;  %5314 = vmatprep.subr.bf16.mxu1 %v8904_v63  ;;  %8909 = vst [vmem:[#allocation72_spill] sm:$0xff] %v7444_v25  ;;  %8911 = vst [vmem:[#allocation74_spill] sm:$0xff] %v7465_v34 }
 0x3fb   :  { %716 = vmatprep.mubr.f32.mxu0 %v8906_v36  ;;  %4731 = vmatprep.mubr.msk.f32.mxu1 %vm6589_vm3, %v8906_v36 }
 0x3fd   :  { %5254 = vmatpush1.bf16.msra.mxu0 %v7404_v50  ;;  %5316 = vmatpush3.bf16.msra.mxu1 %v7406_v14  ;;  %v289_v50 = vld [vmem:[%s8625_s5 + $0x3a8] sm:$0xff]  ;;  %v7472_v14 = vpack.c.bf16 %v296_v3, %v293_v21 }
 0x3fe   :  { %5256 = vmatprep.subr.bf16.mxu0 %v7413_v29  ;;  %5317 = vmatprep.subr.bf16.mxu1 %v8904_v63  ;;  %v7463_v53 = vpack.c.bf16 %v289_v50, %v286_v1  ;;  %v292_v29 = vld [vmem:[%s8625_s5 + $0x3c0] sm:$0xff]  ;;  %v294_v50 = vld [vmem:[%s8625_s5 + $0x3d0] sm:$0xff]  ;;  %v297_v1 = vld [vmem:[%s8625_s5 + $0x3e8] sm:$0xff] }
 0x3ff   :  { %8912 = vst [vmem:[#allocation75_spill] sm:$0xff] %v7472_v14  ;;  %v7493_v3 = vpack.c.bf16 %v297_v1, %v294_v50  ;;  %v305_v50 = vld [vmem:[%s8625_s5 + $0x428] sm:$0xff]  ;;  %v308_v1 = vld [vmem:[%s8625_s5 + $0x440] sm:$0xff] }
 0x400   :  { %8910 = vst [vmem:[#allocation73_spill] sm:$0xff] %v7463_v53 }
 0x401   :  { %5258 = vmatpush1.bf16.msra.mxu0 %v7435_v0  ;;  %5319 = vmatpush3.bf16.msra.mxu1 %v7437_v28  ;;  %v295_v0 = vld [vmem:[%s8625_s5 + $0x3d8] sm:$0xff]  ;;  %8914 = vst [vmem:[#allocation77_spill] sm:$0xff] %v7493_v3  ;;  %v7500_v28 = vpack.c.bf16 %v302_v57, %v299_v37 }
 0x402   :  { %5260 = vmatprep.subr.bf16.mxu0 %v7444_v25  ;;  %5320 = vmatprep.subr.bf16.mxu1 %v8904_v63  ;;  %v7491_v21 = vpack.c.bf16 %v295_v0, %v292_v29  ;;  %v298_v25 = vld [vmem:[%s8625_s5 + $0x3f0] sm:$0xff]  ;;  %v300_v29 = vld [vmem:[%s8625_s5 + $0x400] sm:$0xff]  ;;  %v303_v0 = vld [vmem:[%s8625_s5 + $0x418] sm:$0xff] }
 0x403   :  { %8915 = vst [vmem:[#allocation78_spill] sm:$0xff] %v7500_v28  ;;  %v7521_v57 = vpack.c.bf16 %v303_v0, %v300_v29  ;;  %v311_v29 = vld [vmem:[%s8625_s5 + $0x458] sm:$0xff]  ;;  %v314_v0 = vld [vmem:[%s8625_s5 + $0x470] sm:$0xff] }
 0x404   :  { %8913 = vst [vmem:[#allocation76_spill] sm:$0xff] %v7491_v21 }
 0x405   :  { %5262 = vmatpush1.bf16.msra.mxu0 %v7463_v53  ;;  %5322 = vmatpush3.bf16.msra.mxu1 %v7465_v34  ;;  %v301_v53 = vld [vmem:[%s8625_s5 + $0x408] sm:$0xff]  ;;  %v7528_v34 = vpack.c.bf16 %v308_v1, %v305_v50 }
 0x406   :  { %5264 = vmatprep.subr.bf16.mxu0 %v7472_v14  ;;  %5323 = vmatprep.subr.bf16.mxu1 %v8904_v63  ;;  %v7519_v37 = vpack.c.bf16 %v301_v53, %v298_v25  ;;  %v304_v14 = vld [vmem:[%s8625_s5 + $0x420] sm:$0xff]  ;;  %v306_v25 = vld [vmem:[%s8625_s5 + $0x430] sm:$0xff]  ;;  %v309_v53 = vld [vmem:[%s8625_s5 + $0x448] sm:$0xff] }
 0x407   :  { %v7549_v1 = vpack.c.bf16 %v309_v53, %v306_v25 }
 0x408   :  { %8916 = vst [vmem:[#allocation79_spill] sm:$0xff] %v7519_v37 }
 0x409   :  { %5266 = vmatpush1.bf16.msra.mxu0 %v7491_v21  ;;  %5325 = vmatpush3.bf16.msra.mxu1 %v7493_v3  ;;  %v307_v21 = vld [vmem:[%s8625_s5 + $0x438] sm:$0xff]  ;;  %v7556_v3 = vpack.c.bf16 %v314_v0, %v311_v29  ;;  %v320_v0 = vld [vmem:[%s8626_s8 + $0x10] sm:$0xff] }
 0x40a   :  { %5268 = vmatprep.subr.bf16.mxu0 %v7500_v28  ;;  %5326 = vmatprep.subr.bf16.mxu1 %v8904_v63  ;;  %v7547_v50 = vpack.c.bf16 %v307_v21, %v304_v14  ;;  %v310_v28 = vld [vmem:[%s8625_s5 + $0x450] sm:$0xff]  ;;  %v312_v14 = vld [vmem:[%s8625_s5 + $0x460] sm:$0xff]  ;;  %v315_v21 = vld [vmem:[%s8625_s5 + $0x478] sm:$0xff] }
 0x40b   :  { %8917 = vst [vmem:[#allocation80_spill] sm:$0xff] %v7556_v3  ;;  %v7571_v53 = vpack.c.bf16 %v315_v21, %v312_v14  ;;  %v321_v14 = vld [vmem:[%s8626_s8 + $0x18] sm:$0xff] }
 0x40c   :  { %v7616_v21 = vpack.c.bf16 %v321_v14, %v320_v0  ;;  %v324_v0 = vld [vmem:[%s8626_s8 + $0x30] sm:$0xff]  ;;  %v325_v14 = vld [vmem:[%s8626_s8 + $0x38] sm:$0xff] }
 0x40d   :  { %5270 = vmatpush1.bf16.msra.mxu0 %v7519_v37  ;;  %5328 = vmatpush3.bf16.msra.mxu1 %v7521_v57  ;;  %v313_v37 = vld [vmem:[%s8625_s5 + $0x468] sm:$0xff]  ;;  %8919 = vst [vmem:[#allocation82_spill] sm:$0xff] %v7571_v53 }
 0x40e   :  { %5272 = vmatprep.subr.bf16.mxu0 %v7528_v34  ;;  %5329 = vmatprep.subr.bf16.mxu1 %v8904_v63  ;;  %v7569_v25 = vpack.c.bf16 %v313_v37, %v310_v28  ;;  %v318_v28 = vld [vmem:[%s8626_s8] sm:$0xff]  ;;  %v319_v37 = vld [vmem:[%s8626_s8 + $0x8] sm:$0xff]  ;;  %8921 = vst [vmem:[#allocation84_spill] sm:$0xff] %v7616_v21 }
 0x40f   :  { %v7606_v29 = vpack.c.bf16 %v319_v37, %v318_v28  ;;  %v322_v28 = vld [vmem:[%s8626_s8 + $0x20] sm:$0xff]  ;;  %v323_v37 = vld [vmem:[%s8626_s8 + $0x28] sm:$0xff] }
 0x410   :  { %8918 = vst [vmem:[#allocation81_spill] sm:$0xff] %v7569_v25 }
 0x411   :  { %5274 = vmatpush1.bf16.msra.mxu0 %v7547_v50  ;;  %5331 = vmatpush3.bf16.msra.mxu1 %v7549_v1  ;;  %8920 = vst [vmem:[#allocation83_spill] sm:$0xff] %v7606_v29 }
 0x412   :  { %5276 = vmatprep.subr.bf16.mxu0 %v7556_v3  ;;  %5332 = vmatprep.subr.bf16.mxu1 %v8904_v63 }
 0x415   :  { %5278 = vmatpush1.bf16.msra.mxu0 %v7569_v25  ;;  %5334 = vmatpush3.bf16.msra.mxu1 %v7571_v53 }
 0x416   :  { %5335 = vmatprep.subr.bf16.mxu1 %v8904_v63  ;;  %5360 = vmatprep.subr.bf16.mxu0 %v6660_v4 }
 0x418   :  { %717 = vmatmul.mubr.f32.vlgmr.msra.gmra.mrb[2].mxu0 %v8906_v36  ;;  %4732 = vmatmul.mubr.f32.vlgmr.msra.gmra.mrb[4].mxu1 %v8906_v36 }
 0x419   :  { %5362 = vmatpush1.bf16.msra.mxu0 %v6671_v8  ;;  %4766 = vmatprep.mubr.msk.f32.mxu1 %vm6589_vm3, %v8906_v36 }
 0x41a   :  { %5364 = vmatprep.subr.bf16.mxu0 %v6683_v13  ;;  %1073 = vmatprep.mubr.f32.mxu0 %v8906_v36 }
 0x41b   :  { %5337 = vmatpush3.bf16.msra.mxu1 %v7606_v29 }
 0x41c   :  { %5338 = vmatprep.subr.bf16.mxu1 %v8904_v63 }
 0x41d   :  { %5366 = vmatpush1.bf16.msra.mxu0 %v6695_v17 }
 0x41e   :  { %5368 = vmatprep.subr.bf16.mxu0 %v6707_v22 }
 0x41f   :  { %5340 = vmatpush3.bf16.msra.mxu1 %v7616_v21 }
 0x420   :  { %5341 = vmatprep.subr.bf16.mxu1 %v8904_v63 }
 0x421   :  { %5370 = vmatpush1.bf16.msra.mxu0 %v6731_v31 }
 0x422   :  { %5372 = vmatprep.subr.bf16.mxu0 %v6734_v32 }
 0x425   :  { %5374 = vmatpush1.bf16.msra.mxu0 %v6755_v40 }
 0x426   :  { %5376 = vmatprep.subr.bf16.mxu0 %v6758_v41 }
 0x429   :  { %5378 = vmatpush1.bf16.msra.mxu0 %v6779_v49  ;;  %v316_v49 = vld [vmem:[%s8627_s6] sm:$0x7] }
 0x42a   :  { %5380 = vmatprep.subr.bf16.mxu0 %v6787_v51  ;;  %v576_v51 = vsub.s32 2, %v6856_v20 }
 0x42d   :  { %5382 = vmatpush1.bf16.msra.mxu0 %v6809_v59  ;;  %v332_v59 = vld [vmem:[%s8626_s8 + $0x70] sm:$0xff] }
 0x42e   :  { %5384 = vmatprep.subr.bf16.mxu0 %v6812_v60  ;;  %v330_v60 = vld [vmem:[%s8626_s8 + $0x60] sm:$0xff] }
 0x431   :  { %5386 = vmatpush1.bf16.msra.mxu0 %v6833_v6 }
 0x432   :  { %5388 = vmatprep.subr.bf16.mxu0 %v6836_v7 }
 0x435   :  { %5390 = vmatpush1.bf16.msra.mxu0 %v6845_v12  ;;  %v7636_v12 = vpack.c.bf16 %v325_v14, %v324_v0  ;;  %v328_v0 = vld [vmem:[%s8626_s8 + $0x50] sm:$0xff]  ;;  %v329_v14 = vld [vmem:[%s8626_s8 + $0x58] sm:$0xff] }
 0x436   :  { %5488 = vmatprep.subr.bf16.mxu0 %v7002_v24  ;;  %v7626_v24 = vpack.c.bf16 %v323_v37, %v322_v28  ;;  %v326_v28 = vld [vmem:[%s8626_s8 + $0x40] sm:$0xff]  ;;  %v327_v37 = vld [vmem:[%s8626_s8 + $0x48] sm:$0xff]  ;;  %v7656_v6 = vpack.c.bf16 %v329_v14, %v328_v0  ;;  %v333_v0 = vld [vmem:[%s8626_s8 + $0x78] sm:$0xff] }
 0x437   :  { %8923 = vst [vmem:[#allocation86_spill] sm:$0xff] %v7636_v12  ;;  %v7646_v7 = vpack.c.bf16 %v327_v37, %v326_v28  ;;  %v331_v28 = vld [vmem:[%s8626_s8 + $0x68] sm:$0xff]  ;;  %v7675_v14 = vpack.c.bf16 %v333_v0, %v332_v59  ;;  %v7687_v59 = vrot.slane %v316_v49, %v6866_v26 }
 0x438   :  { %8922 = vst [vmem:[#allocation85_spill] sm:$0xff] %v7626_v24  ;;  %5343 = vmatpush3.bf16.msra.mxu1 %v7626_v24  ;;  %8925 = vst [vmem:[#allocation88_spill] sm:$0xff] %v7656_v6  ;;  %v7665_v37 = vpack.c.bf16 %v331_v28, %v330_v60 }
 0x439   :  { %5344 = vmatprep.subr.bf16.mxu1 %v8904_v63  ;;  %8924 = vst [vmem:[#allocation87_spill] sm:$0xff] %v7646_v7  ;;  %8927 = vst [vmem:[#allocation90_spill] sm:$0xff] %v7675_v14 }
 0x43a   :  { %8926 = vst [vmem:[#allocation89_spill] sm:$0xff] %v7665_v37 }
 0x43c   :  { %5346 = vmatpush3.bf16.msra.mxu1 %v7636_v12 }
 0x43d   :  { %5347 = vmatprep.subr.bf16.mxu1 %v8904_v63 }
 0x440   :  { %5349 = vmatpush3.bf16.msra.mxu1 %v7646_v7  ;;  %v7684_v7 = vrot.slane %v316_v49, %v576_v51 }
 0x441   :  { %5350 = vmatprep.subr.bf16.mxu1 %v8904_v63 }
 0x442   :  { %8928 = vst [vmem:[#allocation91_spill] sm:$0xff] %v7684_v7 }
 0x444   :  { %5352 = vmatpush3.bf16.msra.mxu1 %v7656_v6 }
 0x445   :  { %5353 = vmatprep.subr.bf16.mxu1 %v8904_v63 }
 0x448   :  { %5355 = vmatpush3.bf16.msra.mxu1 %v7665_v37 }
 0x449   :  { %5356 = vmatprep.subr.bf16.mxu1 %v8904_v63 }
 0x44c   :  { %5358 = vmatpush3.bf16.msra.mxu1 %v7675_v14  ;;  %v7691_v14 = vrot.slane %v316_v49, %v6894_v62  ;;  %v7698_v49 = vld [vmem:[%s8628_s7] ss:$0 sm:$0xff] }
 0x44d   :  { %5392 = vmatprep.subr.bf16.mxu1 %v6917_v33 }
 0x4cb   :  { %v4282_v60 = vpop.f32.mrb[2].mxu1 }
 0x4cc   :  { %v4283_v28 = vpop.f32.mrb[3].mxu1 }
 0x4cd   :  { %v4284_v6 = vadd.f32 %v4283_v28, %v4282_v60 }
 0x4cf   :  { %v790_v0 = vadd.f32 %v4284_v6, %v7684_v7 }
 0x4eb   :  { %v718_v37 = vpop.f32.mrb[2].mxu0  ;;  %v859_v33 = vpop.f32.mrb[4].mxu1 }
 0x4ec   :  { %v6399_v60 = vadd.f32 %v718_v37, %v7687_v59  ;;  %v720_v28 = vpop.f32.mrb[3].mxu0  ;;  %v860_v20 = vadd.f32 %v859_v33, %v790_v0  ;;  %v4733_v41 = vpop.f32.mrb[5].mxu1  ;;  %v417_v33 = vadd.f32 %v7698_v49, %v6868_v27  ;;  %v8930_v27 = vld [vmem:[#allocation37_spill] sm:$0xff] }
 0x4ed   :  { %v6400_v12 = vadd.f32 %v720_v28, %v7691_v14 }
 0x4ee   :  { %v4192_v40 = vmul.f32 -1.442695, %v6399_v60 }
 0x4ef   :  { %v4193_v51 = vmul.f32 -1.442695, %v6400_v12 }
 0x4f0   :  { %6443 = vpow2.f32 %v4192_v40 }
 0x4f1   :  { %6445 = vpow2.f32 %v4193_v51  ;;  %v8932_v51 = vld [vmem:[#allocation38_spill] sm:$0xff] }
 0x4fa   :  { %v6444_v32 = vpop.eup %6443 }
 0x4fb   :  { %v866_v31 = vadd.f32 1.0, %v6444_v32  ;;  %v6446_v6 = vpop.eup %6445 }
 0x4fc   :  { %v872_v7 = vadd.f32 1.0, %v6446_v6  ;;  %v8933_v6 = vld [vmem:[#allocation64_spill] sm:$0xff] }
 0x4fd   :  { %6447 = vrcp.f32 %v866_v31 }
 0x4fe   :  { %6449 = vrcp.f32 %v872_v7  ;;  %v8929_v7 = vld [vmem:[#allocation60_spill] sm:$0xff] }
 0x507   :  { %v6448_v41 = vpop.eup %6447 }
 0x508   :  { %v875_v37 = vmul.f32 %v6448_v41, %v417_v33  ;;  %v6450_v40 = vpop.eup %6449  ;;  %v8934_v33 = vld [vmem:[#allocation39_spill] sm:$0xff]  ;;  %v8935_v41 = vld [vmem:[#allocation65_spill] sm:$0xff] }
 0x509   :  { %v878_v12 = vsub.f32 1.0, %v6450_v40  ;;  %v880_v31 = vmul.f32 0.0, %v6450_v40  ;;  %v8938_v40 = vld [vmem:[#allocation42_spill] sm:$0xff] }
 0x50a   :  { %v876_v0 = vadd.f32 %v875_v37, %v860_v20  ;;  %v8931_v20 = vld [vmem:[#allocation61_spill] sm:$0xff]  ;;  %v8936_v37 = vld [vmem:[#allocation40_spill] sm:$0xff] }
 0x50c   :  { %6451 = vtanh.f32 %v876_v0  ;;  %v8937_v0 = vld [vmem:[#allocation41_spill] sm:$0xff] }
 0x516   :  { %v6452_v60 = vpop.eup %6451 }
 0x517   :  { %v879_v32 = vmul.f32 %v6452_v60, %v878_v12  ;;  %v8939_v12 = vld [vmem:[#allocation43_spill] sm:$0xff]  ;;  %v8940_v60 = vld [vmem:[#allocation44_spill] sm:$0xff] }
 0x519   :  { %v7702_v28 = vadd.f32 %v880_v31, %v879_v32  ;;  %v8941_v32 = vld [vmem:[#allocation45_spill] sm:$0xff]  ;;  %v8942_v31 = vld [vmem:[#allocation46_spill] sm:$0xff] }
 0x51b   :  { %4767 = vmatmul.mubr.f32.vlgmr.msra.gmra.mrb[6].mxu1 %v7702_v28  ;;  %1074 = vmatmul.mubr.f32.vlgmr.msra.gmra.mrb[4].mxu0 %v7702_v28 }
 0x51c   :  { %5394 = vmatpush1.bf16.msra.mxu1 %v6928_v39  ;;  %5490 = vmatpush3.bf16.msra.mxu0 %v7013_v30 }
 0x51d   :  { %5396 = vmatprep.subr.bf16.mxu1 %v6930_v42  ;;  %5492 = vmatprep.subr.bf16.mxu0 %v7038_v54 }
 0x520   :  { %5398 = vmatpush1.bf16.msra.mxu1 %v6946_v47  ;;  %5494 = vmatpush3.bf16.msra.mxu0 %v7040_v55 }
 0x521   :  { %5400 = vmatprep.subr.bf16.mxu1 %v6949_v52  ;;  %5496 = vmatprep.subr.bf16.mxu0 %v7058_v2 }
 0x524   :  { %5402 = vmatpush1.bf16.msra.mxu1 %v6964_v58  ;;  %5498 = vmatpush3.bf16.msra.mxu0 %v7070_v19 }
 0x525   :  { %5404 = vmatprep.subr.bf16.mxu1 %v6967_v61  ;;  %5500 = vmatprep.subr.bf16.mxu0 %v7192_v11 }
 0x528   :  { %5406 = vmatpush1.bf16.msra.mxu1 %v6982_v5  ;;  %5502 = vmatpush3.bf16.msra.mxu0 %v7194_v46 }
 0x529   :  { %5408 = vmatprep.subr.bf16.mxu1 %v6994_v18  ;;  %5504 = vmatprep.subr.bf16.mxu0 %v7229_v9 }
 0x52c   :  { %5410 = vmatpush1.bf16.msra.mxu1 %v7029_v44  ;;  %5506 = vmatpush3.bf16.msra.mxu0 %v7231_v10 }
 0x52d   :  { %5412 = vmatprep.subr.bf16.mxu1 %v7043_v56  ;;  %5508 = vmatprep.subr.bf16.mxu0 %v7265_v38 }
 0x530   :  { %5414 = vmatpush1.bf16.msra.mxu1 %v7067_v16  ;;  %5510 = vmatpush3.bf16.msra.mxu0 %v7267_v43 }
 0x531   :  { %5416 = vmatprep.subr.bf16.mxu1 %v7073_v23  ;;  %5512 = vmatprep.subr.bf16.mxu0 %v8929_v7 }
 0x534   :  { %5418 = vmatpush1.bf16.msra.mxu1 %v8930_v27  ;;  %5514 = vmatpush3.bf16.msra.mxu0 %v8931_v20 }
 0x535   :  { %5420 = vmatprep.subr.bf16.mxu1 %v8932_v51  ;;  %5516 = vmatprep.subr.bf16.mxu0 %v8933_v6  ;;  %v8943_v6 = vld [vmem:[#allocation47_spill] sm:$0xff] }
 0x536   :  { %v8947_v51 = vld [vmem:[#allocation55_spill] sm:$0xff] }
 0x538   :  { %5422 = vmatpush1.bf16.msra.mxu1 %v8934_v33  ;;  %5518 = vmatpush3.bf16.msra.mxu0 %v8935_v41  ;;  %v8944_v33 = vld [vmem:[#allocation50_spill] sm:$0xff]  ;;  %v8945_v41 = vld [vmem:[#allocation51_spill] sm:$0xff] }
 0x539   :  { %5424 = vmatprep.subr.bf16.mxu1 %v8936_v37  ;;  %5519 = vmatprep.subr.bf16.mxu0 %v8904_v63  ;;  %v8946_v37 = vld [vmem:[#allocation54_spill] sm:$0xff] }
 0x53c   :  { %5426 = vmatpush1.bf16.msra.mxu1 %v8937_v0  ;;  %v8948_v0 = vld [vmem:[#allocation58_spill] sm:$0xff] }
 0x53d   :  { %5428 = vmatprep.subr.bf16.mxu1 %v8938_v40  ;;  %v8949_v40 = vld [vmem:[#allocation59_spill] sm:$0xff] }
 0x540   :  { %5430 = vmatpush1.bf16.msra.mxu1 %v8939_v12  ;;  %v8950_v12 = vld [vmem:[#allocation62_spill] sm:$0xff] }
 0x541   :  { %5432 = vmatprep.subr.bf16.mxu1 %v8940_v60  ;;  %v8951_v60 = vld [vmem:[#allocation63_spill] sm:$0xff] }
 0x544   :  { %5434 = vmatpush1.bf16.msra.mxu1 %v8941_v32  ;;  %v8952_v32 = vld [vmem:[#allocation66_spill] sm:$0xff] }
 0x545   :  { %5436 = vmatprep.subr.bf16.mxu1 %v8942_v31 }
 0x548   :  { %5438 = vmatpush1.bf16.msra.mxu1 %v8943_v6 }
 0x549   :  { %5440 = vmatprep.subr.bf16.mxu1 %v8944_v33  ;;  %v7757_v33 = vld [vmem:[%s8629_s9] ss:$0 sm:$0xff] }
 0x54a   :  { %8953 = vst [vmem:[#allocation92_spill] sm:$0xff] %v7757_v33 }
 0x54c   :  { %5442 = vmatpush1.bf16.msra.mxu1 %v8945_v41 }
 0x54d   :  { %5444 = vmatprep.subr.bf16.mxu1 %v8946_v37 }
 0x550   :  { %5446 = vmatpush1.bf16.msra.mxu1 %v8947_v51  ;;  %v8954_v51 = vld [vmem:[#allocation18_spill] sm:$0xff] }
 0x551   :  { %5448 = vmatprep.subr.bf16.mxu1 %v8948_v0 }
 0x554   :  { %5450 = vmatpush1.bf16.msra.mxu1 %v8949_v40 }
 0x555   :  { %5452 = vmatprep.subr.bf16.mxu1 %v8950_v12 }
 0x558   :  { %5454 = vmatpush1.bf16.msra.mxu1 %v8951_v60 }
 0x559   :  { %5456 = vmatprep.subr.bf16.mxu1 %v8952_v32 }
 0x5ee   :  { %v954_v41 = vpop.f32.mrb[6].mxu1  ;;  %v1075_v6 = vpop.f32.mrb[4].mxu0 }
 0x5ef   :  { %v955_v37 = vadd.f32 %v7757_v33, %v954_v41  ;;  %v1088_v31 = vrot.slane %v1075_v6, %v8954_v51  ;;  %v4768_v0 = vpop.f32.mrb[7].mxu1  ;;  %v7761_v20 = vpop.f32.mrb[5].mxu0  ;;  %v8955_v41 = vld [vmem:[#allocation20_spill] sm:$0xff]  ;;  %v8956_v33 = vld [vmem:[#allocation21_spill] sm:$0xff] }
 0x5f1   :  { %v965_v12 = vrot.slane %v955_v37, %v8954_v51  ;;  %v1089_v40 = vcombine.high %v1088_v31, %v1088_v31  ;;  %v1096_v60 = vrot.slane %v1088_v31, %v8954_v51 }
 0x5f3   :  { %v966_v32 = vcombine.high %v965_v12, %v965_v12  ;;  %4195 = vst.sshfl [vmem:[%s8630_s10] sm:$0x1 pattern:$0x73625140] %v965_v12  ;;  %v1103_v27 = vrot.slane %v1089_v40, %v8954_v51  ;;  %v1107_v7 = vrot.slane %v1096_v60, %v6866_v26  ;;  %v7779_v12 = vld [vmem:[%s8624_s3] ss:$0 sm:$0xff] }
 0x5f4   :  { %8957 = vst [vmem:[#allocation93_spill] sm:$0xff] %v7779_v12 }
 0x5f5   :  { %4196 = vst.sshfl [vmem:[%s8630_s10 + $0x8] sm:$0x1 pattern:$0x73625140] %v966_v32  ;;  %v1111_v6 = vrot.slane %v1103_v27, %v6866_v26  ;;  %v1114_v0 = vadd.f32 %v1107_v7, %v8955_v41  ;;  %v8958_v7 = vld [vmem:[#allocation22_spill] sm:$0xff] }
 0x5f7   :  { %v1115_v23 = vadd.f32 %v1111_v6, %v8956_v33  ;;  %6453 = vtanh.f32 %v1114_v0 }
 0x5f9   :  { %6455 = vtanh.f32 %v1115_v23 }
 0x601   :  { %v6454_v31 = vpop.eup %6453 }
 0x602   :  { %v1118_v40 = vmul.f32 %v7779_v12, %v6454_v31 }
 0x603   :  { %v6456_v60 = vpop.eup %6455 }
 0x604   :  { %1120 = vadd.xlane.f32.xlu1 %v1118_v40  ;;  %v1119_v32 = vmul.f32 %v7779_v12, %v6456_v60 }
 0x606   :  { %1122 = vadd.xlane.f32.xlu0 %v1119_v32 }
 0x691   :  { %v1121_v27 = vpop.xlane.xlu1 %1120 }
 0x692   :  { %v1129_v41 = vrot.slane %v1121_v27, %v8958_v7 }
 0x693   :  { %v1123_v51 = vpop.xlane.xlu0 %1122 }
 0x694   :  { %v1133_v6 = vrot.slane %v1123_v51, %v8958_v7 }
 0x696   :  { %v1134_v23 = vsel %vm477_vm0, %v1133_v6, %v1129_v41  ;;  %v986_v41 = vsel %vm985_vm4, %v955_v37, -inf }
 0x697   :  { %v1136_v0 = vsel %vm480_vm1, %v1134_v23, -inf }
 0x698   :  { %1137 = vmax.xlane.f32.xlu1 %v1136_v0 }
 0x725   :  { %v1138_v33 = vpop.xlane.xlu1 %1137 }
 0x726   :  { %v1143_v43 = vrot.slane %v1138_v33, %v6866_v26  ;;  %v1147_v31 = vrot.slane %v1138_v33, %v6894_v62 }
 0x728   :  { %v1150_v40 = vsub.f32 %v1121_v27, %v1143_v43  ;;  %v1151_v16 = vsub.f32 %v1123_v51, %v1147_v31 }
 0x72a   :  { %v1152_v60 = vmul.f32 1.442695, %v1150_v40  ;;  %v1154_v32 = vmul.f32 1.442695, %v1151_v16 }
 0x72c   :  { %6457 = vpow2.f32 %v1152_v60 }
 0x72d   :  { %6459 = vpow2.f32 %v1154_v32 }
 0x736   :  { %v6458_v12 = vpop.eup %6457 }
 0x737   :  { %1159 = vperm.xlu1 %6429, %v6458_v12   ;;  %v6460_v38 = vpop.eup %6459 }
 0x73b   :  { %1162 = vperm.xlu1 %6429, %v6460_v38  }
 0x75f   :  { %987 = vmax.xlane.f32.xlu1 %v986_v41 }
 0x7b6   :  { %v1160_v6 = vpop.permute.xlu1 %1159 }
 0x7b7   :  { %v1167_v0 = vrot.slane %v1160_v6, %v8958_v7 }
 0x7ba   :  { %v1163_v23 = vpop.permute.xlu1 %1162 }
 0x7bb   :  { %v1171_v33 = vrot.slane %v1163_v23, %v8958_v7  ;;  %v7801_v7 = vld [vmem:[%s8622_s0] sm:$0xff] }
 0x7bc   :  { %8959 = vst [vmem:[#allocation94_spill] sm:$0xff] %v7801_v7 }
 0x7bd   :  { %v1172_v43 = vsel %vm477_vm0, %v1171_v33, %v1167_v0 }
 0x7be   :  { %v1174_v51 = vsel %vm480_vm1, %v1172_v43, 0.0 }
 0x7bf   :  { %1175 = vadd.xlane.f32.xlu0 %v1174_v51 }
 0x7ec   :  { %v988_v16 = vpop.xlane.xlu1 %987 }
 0x7ed   :  { %vm989_vm5 = vcmp.eq.f32.partialorder %v955_v37, %v988_v16 }
 0x7ee   :  { %v990_v27 = vsel %vm989_vm5, %v6883_v48, 128 }
 0x7ef   :  { %v991_v31 = vsel %vm985_vm4, %v990_v27, 2147483647 }
 0x7f0   :  { %v993_v40 = vshra.s32 %v991_v31, 16  ;;  %v992_v37 = vand.u32 65535, %v991_v31 }
 0x7f2   :  { %v995_v60 = vcvt.s32.f32 %v993_v40  ;;  %v994_v16 = vcvt.s32.f32 %v992_v37 }
 0x7f4   :  { %996 = vmin.xlane.f32.xlu0 %v995_v60 }
 0x84c   :  { %v1176_v32 = vpop.xlane.xlu0 %1175 }
 0x84d   :  { %v1181_v41 = vrot.slane %v1176_v32, %v6866_v26  ;;  %v1185_v6 = vrot.slane %v1176_v32, %v6894_v62 }
 0x84f   :  { %6461 = vrcp.f32 %v1181_v41 }
 0x850   :  { %6463 = vrcp.f32 %v1185_v6 }
 0x859   :  { %v6462_v23 = vpop.eup %6461 }
 0x85a   :  { %v1189_v0 = vmul.f32 %v6462_v23, %v6458_v12  ;;  %v6464_v33 = vpop.eup %6463 }
 0x85b   :  { %v1191_v43 = vmul.f32 %v6464_v33, %v6460_v38  ;;  %v7807_v38 = vld [vmem:[%s8622_s0 + $0x8] sm:$0xff] }
 0x85c   :  { %1194 = vperm.xlu0 %6430, %v1189_v0  }
 0x860   :  { %1199 = vperm.xlu0 %6430, %v1191_v43  }
 0x881   :  { %v997_v51 = vpop.xlane.xlu0 %996 }
 0x882   :  { %vm998_vm6 = vcmp.eq.f32.partialorder %v995_v60, %v997_v51 }
 0x883   :  { %v999_v27 = vsel %vm998_vm6, %v994_v16, inf }
 0x884   :  { %1000 = vmin.xlane.f32.xlu1 %v999_v27 }
 0x8db   :  { %v1195_v40 = vpop.permute.xlu0 %1194 }
 0x8dc   :  { %v1202_v32 = vmul.f32 %v7801_v7, %v1195_v40 }
 0x8de   :  { %v1204_v41 = vrot.slane %v1202_v32, 4 }
 0x8df   :  { %v1200_v12 = vpop.permute.xlu0 %1199 }
 0x8e0   :  { %v1205_v6 = vadd.f32 %v1204_v41, %v1202_v32  ;;  %v1203_v31 = vmul.f32 %v7807_v38, %v1200_v12  ;;  %v1003_v32 = vcvt.f32.s32 %v997_v51  ;;  %v8960_v12 = vmov 1.0   ;;  %v8966_v51 = vld [vmem:[#allocation72_spill] sm:$0xff] }
 0x8e2   :  { %v1206_v60 = vrot.slane %v1205_v6, 2  ;;  %v1210_v23 = vrot.slane %v1203_v31, 4  ;;  %v1004_v26 = vshll.u32 %v1003_v32, 16  ;;  %v8978_v32 = vld [vmem:[#allocation10_spill] sm:$0xff] }
 0x8e4   :  { %v1207_v0 = vadd.f32 %v1206_v60, %v1205_v6  ;;  %v1211_v33 = vadd.f32 %v1210_v23, %v1203_v31  ;;  %v8967_v6 = vld [vmem:[#allocation73_spill] sm:$0xff]  ;;  %v8968_v31 = vld [vmem:[#allocation74_spill] sm:$0xff]  ;;  %v8969_v60 = vld [vmem:[#allocation75_spill] sm:$0xff] }
 0x8e5   :  { %v8970_v23 = vld [vmem:[#allocation76_spill] sm:$0xff] }
 0x8e6   :  { %v1212_v43 = vrot.slane %v1211_v33, 2  ;;  %v1208_v37 = vrot.slane %v1207_v0, 1 }
 0x8e8   :  { %v1213_v16 = vadd.f32 %v1212_v43, %v1211_v33  ;;  %v1209_v62 = vadd.f32 %v1208_v37, %v1207_v0  ;;  %v8971_v0 = vld [vmem:[#allocation77_spill] sm:$0xff]  ;;  %v8972_v33 = vld [vmem:[#allocation78_spill] sm:$0xff]  ;;  %v8973_v43 = vld [vmem:[#allocation79_spill] sm:$0xff] }
 0x8e9   :  { %v8974_v37 = vld [vmem:[#allocation7_spill] sm:$0xff] }
 0x8ea   :  { %v1214_v27 = vrot.slane %v1213_v16, 1 }
 0x8ec   :  { %v1215_v40 = vadd.f32 %v1214_v27, %v1213_v16  ;;  %v8975_v16 = vld [vmem:[#allocation8_spill] sm:$0xff]  ;;  %v8976_v27 = vld [vmem:[#allocation86_spill] sm:$0xff] }
 0x8ee   :  { %v1218_v7 = vsel %vm477_vm0, %v1215_v40, %v1209_v62  ;;  %v8962_v62 = vld [vmem:[#allocation68_spill] sm:$0xff]  ;;  %v8977_v40 = vld [vmem:[#allocation9_spill] sm:$0xff] }
 0x8ef   :  { %1284 = vmatprep.mubr.f32.mxu1 %v1218_v7  ;;  %1426 = vmatprep.mubr.f32.mxu0 %v1218_v7  ;;  %v8965_v7 = vld [vmem:[#allocation71_spill] sm:$0xff] }
 0x911   :  { %v1001_v41 = vpop.xlane.xlu1 %1000 }
 0x912   :  { %v1002_v56 = vcvt.f32.s32 %v1001_v41  ;;  %v8979_v41 = vld [vmem:[#allocation87_spill] sm:$0xff] }
 0x914   :  { %v1005_v10 = vadd.s32 %v1004_v26, %v1002_v56  ;;  %v8961_v26 = vld [vmem:[#allocation67_spill] sm:$0xff]  ;;  %v8963_v56 = vld [vmem:[#allocation69_spill] sm:$0xff] }
 0x916   :  { %vm1006_vm7 = vcmp.eq.s32.totalorder %v6883_v48, %v1005_v10  ;;  %v8964_v10 = vld [vmem:[#allocation70_spill] sm:$0xff] }
 0x917   :  { %4198 = vmatmul.mubr.msk.f32.vlgmr.msra.gmra.mrb[8].mxu1 %vm1006_vm7, %v8960_v12  ;;  %4199 = vmatmul.mubr.msk.f32.vlgmr.msra.gmra.mrb[6].mxu0 %vm1006_vm7, %v8960_v12 }
 0x918   :  { %5458 = vmatpush1.bf16.msra.mxu1 %v7375_v45  ;;  %5521 = vmatpush3.bf16.msra.mxu0 %v7377_v15 }
 0x919   :  { %5460 = vmatprep.subr.bf16.mxu1 %v7383_v35  ;;  %5522 = vmatprep.subr.bf16.mxu0 %v8904_v63 }
 0x91a   :  { %1355 = vmatprep.mubr.f32.mxu1 %v8906_v36  ;;  %4801 = vmatprep.mubr.msk.f32.mxu0 %vm6589_vm3, %v8906_v36 }
 0x91c   :  { %5462 = vmatpush1.bf16.msra.mxu1 %v8961_v26  ;;  %5524 = vmatpush3.bf16.msra.mxu0 %v8962_v62 }
 0x91d   :  { %5464 = vmatprep.subr.bf16.mxu1 %v8963_v56  ;;  %5525 = vmatprep.subr.bf16.mxu0 %v8904_v63 }
 0x920   :  { %5466 = vmatpush1.bf16.msra.mxu1 %v8964_v10  ;;  %5527 = vmatpush3.bf16.msra.mxu0 %v8965_v7 }
 0x921   :  { %5468 = vmatprep.subr.bf16.mxu1 %v8966_v51  ;;  %5528 = vmatprep.subr.bf16.mxu0 %v8904_v63 }
 0x924   :  { %5470 = vmatpush1.bf16.msra.mxu1 %v8967_v6  ;;  %5530 = vmatpush3.bf16.msra.mxu0 %v8968_v31 }
 0x925   :  { %5472 = vmatprep.subr.bf16.mxu1 %v8969_v60  ;;  %5531 = vmatprep.subr.bf16.mxu0 %v8904_v63 }
 0x928   :  { %5474 = vmatpush1.bf16.msra.mxu1 %v8970_v23  ;;  %5533 = vmatpush3.bf16.msra.mxu0 %v8971_v0 }
 0x929   :  { %5476 = vmatprep.subr.bf16.mxu1 %v8972_v33  ;;  %5534 = vmatprep.subr.bf16.mxu0 %v8904_v63 }
 0x92c   :  { %5478 = vmatpush1.bf16.msra.mxu1 %v8973_v43  ;;  %5536 = vmatpush3.bf16.msra.mxu0 %v7521_v57 }
 0x92d   :  { %5480 = vmatprep.subr.bf16.mxu1 %v7528_v34  ;;  %5537 = vmatprep.subr.bf16.mxu0 %v8904_v63 }
 0x930   :  { %5482 = vmatpush1.bf16.msra.mxu1 %v7547_v50  ;;  %5539 = vmatpush3.bf16.msra.mxu0 %v7549_v1 }
 0x931   :  { %5484 = vmatprep.subr.bf16.mxu1 %v7556_v3  ;;  %5540 = vmatprep.subr.bf16.mxu0 %v8904_v63 }
 0x934   :  { %5486 = vmatpush1.bf16.msra.mxu1 %v7569_v25  ;;  %5542 = vmatpush3.bf16.msra.mxu0 %v7571_v53 }
 0x935   :  { %5543 = vmatprep.subr.bf16.mxu0 %v8904_v63  ;;  %5568 = vmatprep.subr.bf16.mxu1 %v6660_v4 }
 0x937   :  { %1356 = vmatmul.mubr.f32.vlgmr.msra.gmra.mrb[8].mxu1 %v7702_v28  ;;  %4802 = vmatmul.mubr.f32.vlgmr.msra.gmra.mrb[8].mxu0 %v7702_v28 }
 0x938   :  { %5545 = vmatpush3.bf16.msra.mxu0 %v7606_v29  ;;  %5570 = vmatpush1.bf16.msra.mxu1 %v6671_v8 }
 0x939   :  { %5546 = vmatprep.subr.bf16.mxu0 %v8904_v63  ;;  %5572 = vmatprep.subr.bf16.mxu1 %v6683_v13 }
 0x93a   :  { %4836 = vmatprep.mubr.msk.f32.mxu0 %vm6589_vm3, %v8906_v36  ;;  %1705 = vmatprep.mubr.f32.mxu1 %v8906_v36 }
 0x93c   :  { %5548 = vmatpush3.bf16.msra.mxu0 %v7616_v21  ;;  %5574 = vmatpush1.bf16.msra.mxu1 %v6695_v17  ;;  %v8980_v17 = vld [vmem:[#allocation11_spill] sm:$0xff] }
 0x93d   :  { %5549 = vmatprep.subr.bf16.mxu0 %v8904_v63  ;;  %5576 = vmatprep.subr.bf16.mxu1 %v6707_v22  ;;  %v8983_v22 = vld [vmem:[#allocation13_spill] sm:$0xff] }
 0x940   :  { %5551 = vmatpush3.bf16.msra.mxu0 %v7626_v24  ;;  %5578 = vmatpush1.bf16.msra.mxu1 %v8974_v37  ;;  %v8981_v24 = vld [vmem:[#allocation12_spill] sm:$0xff] }
 0x941   :  { %5552 = vmatprep.subr.bf16.mxu0 %v8904_v63  ;;  %5580 = vmatprep.subr.bf16.mxu1 %v8975_v16  ;;  %v8982_v37 = vld [vmem:[#allocation88_spill] sm:$0xff]  ;;  %v8986_v16 = vld [vmem:[#allocation15_spill] sm:$0xff] }
 0x944   :  { %5554 = vmatpush3.bf16.msra.mxu0 %v8976_v27  ;;  %5582 = vmatpush1.bf16.msra.mxu1 %v8977_v40  ;;  %v8984_v27 = vld [vmem:[#allocation14_spill] sm:$0xff]  ;;  %v8985_v40 = vld [vmem:[#allocation89_spill] sm:$0xff] }
 0x945   :  { %5555 = vmatprep.subr.bf16.mxu0 %v8904_v63  ;;  %5584 = vmatprep.subr.bf16.mxu1 %v8978_v32  ;;  %v8989_v32 = vld [vmem:[#allocation17_spill] sm:$0xff] }
 0x948   :  { %5557 = vmatpush3.bf16.msra.mxu0 %v8979_v41  ;;  %5586 = vmatpush1.bf16.msra.mxu1 %v8980_v17  ;;  %v8987_v41 = vld [vmem:[#allocation16_spill] sm:$0xff]  ;;  %v8988_v17 = vld [vmem:[#allocation90_spill] sm:$0xff] }
 0x949   :  { %5558 = vmatprep.subr.bf16.mxu0 %v8904_v63  ;;  %5588 = vmatprep.subr.bf16.mxu1 %v8981_v24  ;;  %v8990_v24 = vld [vmem:[#allocation24_spill] sm:$0xff] }
 0x94c   :  { %5560 = vmatpush3.bf16.msra.mxu0 %v8982_v37  ;;  %5590 = vmatpush1.bf16.msra.mxu1 %v8983_v22  ;;  %v8991_v37 = vld [vmem:[#allocation30_spill] sm:$0xff] }
 0x94d   :  { %5561 = vmatprep.subr.bf16.mxu0 %v8904_v63  ;;  %5592 = vmatprep.subr.bf16.mxu1 %v8984_v27  ;;  %v8992_v27 = vld [vmem:[#allocation91_spill] sm:$0xff] }
 0x950   :  { %5563 = vmatpush3.bf16.msra.mxu0 %v8985_v40  ;;  %5594 = vmatpush1.bf16.msra.mxu1 %v8986_v16 }
 0x951   :  { %5564 = vmatprep.subr.bf16.mxu0 %v8904_v63  ;;  %5596 = vmatprep.subr.bf16.mxu1 %v8987_v41 }
 0x954   :  { %5566 = vmatpush3.bf16.msra.mxu0 %v8988_v17  ;;  %5598 = vmatpush1.bf16.msra.mxu1 %v8989_v32 }
 0x955   :  { %5600 = vmatprep.subr.bf16.mxu0 %v8990_v24  ;;  %5696 = vmatprep.subr.bf16.mxu1 %v8991_v37 }
 0x9ea   :  { %v4351_v22 = vpop.f32.mrb[6].mxu0 }
 0x9eb   :  { %v4352_v21 = vpop.f32.mrb[7].mxu0 }
 0x9ec   :  { %v4353_v13 = vadd.f32 %v4352_v21, %v4351_v22 }
 0x9ee   :  { %v1429_v8 = vadd.f32 %v4353_v13, %v8992_v27  ;;  %v1080_v13 = vadd.f32 %v7698_v49, %v7761_v20  ;;  %v8996_v49 = vld [vmem:[#allocation34_spill] sm:$0xff]  ;;  %v8998_v20 = vld [vmem:[#allocation36_spill] sm:$0xff] }
 0xa0a   :  { %v1357_v40 = vpop.f32.mrb[8].mxu1  ;;  %v1498_v29 = vpop.f32.mrb[8].mxu0 }
 0xa0b   :  { %v6401_v16 = vadd.f32 %v1357_v40, %v7687_v59  ;;  %v1499_v4 = vadd.f32 %v1498_v29, %v1429_v8  ;;  %v1359_v53 = vpop.f32.mrb[9].mxu1  ;;  %v4803_v41 = vpop.f32.mrb[9].mxu0 }
 0xa0c   :  { %v6402_v17 = vadd.f32 %v1359_v53, %v7691_v14  ;;  %v9002_v41 = vld [vmem:[#allocation38_spill] sm:$0xff] }
 0xa0d   :  { %v4200_v25 = vmul.f32 -1.442695, %v6401_v16 }
 0xa0e   :  { %v4201_v32 = vmul.f32 -1.442695, %v6402_v17 }
 0xa0f   :  { %6465 = vpow2.f32 %v4200_v25 }
 0xa10   :  { %6467 = vpow2.f32 %v4201_v32  ;;  %v9001_v32 = vld [vmem:[#allocation61_spill] sm:$0xff] }
 0xa19   :  { %v6466_v24 = vpop.eup %6465 }
 0xa1a   :  { %v1505_v37 = vadd.f32 1.0, %v6466_v24  ;;  %v6468_v3 = vpop.eup %6467  ;;  %v8994_v24 = vld [vmem:[#allocation32_spill] sm:$0xff] }
 0xa1b   :  { %v1511_v22 = vadd.f32 1.0, %v6468_v3  ;;  %v8995_v3 = vld [vmem:[#allocation56_spill] sm:$0xff] }
 0xa1c   :  { %6469 = vrcp.f32 %v1505_v37  ;;  %v8999_v37 = vld [vmem:[#allocation60_spill] sm:$0xff] }
 0xa1d   :  { %6471 = vrcp.f32 %v1511_v22  ;;  %v9003_v22 = vld [vmem:[#allocation64_spill] sm:$0xff] }
 0xa26   :  { %v6470_v21 = vpop.eup %6469 }
 0xa27   :  { %v1514_v27 = vmul.f32 %v6470_v21, %v1080_v13  ;;  %v6472_v29 = vpop.eup %6471  ;;  %v9004_v13 = vld [vmem:[#allocation39_spill] sm:$0xff]  ;;  %v9005_v21 = vld [vmem:[#allocation65_spill] sm:$0xff] }
 0xa28   :  { %v1517_v16 = vsub.f32 1.0, %v6472_v29  ;;  %v1519_v17 = vmul.f32 %v6472_v29, %v7702_v28  ;;  %v8997_v28 = vld [vmem:[#allocation57_spill] sm:$0xff] }
 0xa29   :  { %v1515_v8 = vadd.f32 %v1514_v27, %v1499_v4  ;;  %v8993_v4 = vld [vmem:[#allocation53_spill] sm:$0xff] }
 0xa2a   :  { %v9000_v27 = vld [vmem:[#allocation37_spill] sm:$0xff] }
 0xa2b   :  { %6473 = vtanh.f32 %v1515_v8  ;;  %v9006_v8 = vld [vmem:[#allocation40_spill] sm:$0xff]  ;;  %v9007_v29 = vld [vmem:[#allocation41_spill] sm:$0xff] }
 0xa35   :  { %v6474_v40 = vpop.eup %6473 }
 0xa36   :  { %v1518_v53 = vmul.f32 %v6474_v40, %v1517_v16  ;;  %v9008_v16 = vld [vmem:[#allocation42_spill] sm:$0xff]  ;;  %v9009_v40 = vld [vmem:[#allocation43_spill] sm:$0xff] }
 0xa38   :  { %v7892_v25 = vadd.f32 %v1519_v17, %v1518_v53  ;;  %v9010_v53 = vld [vmem:[#allocation44_spill] sm:$0xff]  ;;  %v9011_v17 = vld [vmem:[#allocation45_spill] sm:$0xff] }
 0xa3a   :  { %4837 = vmatmul.mubr.f32.vlgmr.msra.gmra.mrb[10].mxu0 %v7892_v25  ;;  %1706 = vmatmul.mubr.f32.vlgmr.msra.gmra.mrb[10].mxu1 %v7892_v25 }
 0xa3b   :  { %5602 = vmatpush1.bf16.msra.mxu0 %v6928_v39  ;;  %5698 = vmatpush3.bf16.msra.mxu1 %v7013_v30 }
 0xa3c   :  { %5604 = vmatprep.subr.bf16.mxu0 %v6930_v42  ;;  %5700 = vmatprep.subr.bf16.mxu1 %v7038_v54 }
 0xa3f   :  { %5606 = vmatpush1.bf16.msra.mxu0 %v6946_v47  ;;  %5702 = vmatpush3.bf16.msra.mxu1 %v7040_v55 }
 0xa40   :  { %5608 = vmatprep.subr.bf16.mxu0 %v6949_v52  ;;  %5704 = vmatprep.subr.bf16.mxu1 %v7058_v2 }
 0xa43   :  { %5610 = vmatpush1.bf16.msra.mxu0 %v6964_v58  ;;  %5706 = vmatpush3.bf16.msra.mxu1 %v7070_v19 }
 0xa44   :  { %5612 = vmatprep.subr.bf16.mxu0 %v6967_v61  ;;  %5708 = vmatprep.subr.bf16.mxu1 %v7192_v11 }
 0xa47   :  { %5614 = vmatpush1.bf16.msra.mxu0 %v6982_v5  ;;  %5710 = vmatpush3.bf16.msra.mxu1 %v7194_v46 }
 0xa48   :  { %5616 = vmatprep.subr.bf16.mxu0 %v6994_v18  ;;  %5712 = vmatprep.subr.bf16.mxu1 %v7229_v9 }
 0xa4b   :  { %5618 = vmatpush1.bf16.msra.mxu0 %v7029_v44  ;;  %5714 = vmatpush3.bf16.msra.mxu1 %v8993_v4  ;;  %v9029_v4 = vld [vmem:[#allocation22_spill] sm:$0xff] }
 0xa4c   :  { %5620 = vmatprep.subr.bf16.mxu0 %v8994_v24  ;;  %5716 = vmatprep.subr.bf16.mxu1 %v8995_v3  ;;  %v9028_v3 = vld [vmem:[#allocation93_spill] sm:$0xff] }
 0xa4f   :  { %5622 = vmatpush1.bf16.msra.mxu0 %v8996_v49  ;;  %5718 = vmatpush3.bf16.msra.mxu1 %v8997_v28 }
 0xa50   :  { %5624 = vmatprep.subr.bf16.mxu0 %v8998_v20  ;;  %5720 = vmatprep.subr.bf16.mxu1 %v8999_v37  ;;  %v9024_v37 = vld [vmem:[#allocation18_spill] sm:$0xff] }
 0xa53   :  { %5626 = vmatpush1.bf16.msra.mxu0 %v9000_v27  ;;  %5722 = vmatpush3.bf16.msra.mxu1 %v9001_v32  ;;  %v9017_v32 = vld [vmem:[#allocation55_spill] sm:$0xff]  ;;  %v9023_v27 = vld [vmem:[#allocation92_spill] sm:$0xff] }
 0xa54   :  { %5628 = vmatprep.subr.bf16.mxu0 %v9002_v41  ;;  %5724 = vmatprep.subr.bf16.mxu1 %v9003_v22  ;;  %v9012_v41 = vld [vmem:[#allocation46_spill] sm:$0xff]  ;;  %v9013_v22 = vld [vmem:[#allocation47_spill] sm:$0xff] }
 0xa57   :  { %5630 = vmatpush1.bf16.msra.mxu0 %v9004_v13  ;;  %5726 = vmatpush3.bf16.msra.mxu1 %v9005_v21  ;;  %v9014_v13 = vld [vmem:[#allocation50_spill] sm:$0xff]  ;;  %v9015_v21 = vld [vmem:[#allocation51_spill] sm:$0xff] }
 0xa58   :  { %5632 = vmatprep.subr.bf16.mxu0 %v9006_v8  ;;  %5727 = vmatprep.subr.bf16.mxu1 %v8904_v63  ;;  %v9016_v8 = vld [vmem:[#allocation54_spill] sm:$0xff] }
 0xa5b   :  { %5634 = vmatpush1.bf16.msra.mxu0 %v9007_v29  ;;  %v9018_v29 = vld [vmem:[#allocation58_spill] sm:$0xff] }
 0xa5c   :  { %5636 = vmatprep.subr.bf16.mxu0 %v9008_v16  ;;  %v9019_v16 = vld [vmem:[#allocation59_spill] sm:$0xff] }
 0xa5f   :  { %5638 = vmatpush1.bf16.msra.mxu0 %v9009_v40  ;;  %v9020_v40 = vld [vmem:[#allocation62_spill] sm:$0xff] }
 0xa60   :  { %5640 = vmatprep.subr.bf16.mxu0 %v9010_v53  ;;  %v9021_v53 = vld [vmem:[#allocation63_spill] sm:$0xff] }
 0xa63   :  { %5642 = vmatpush1.bf16.msra.mxu0 %v9011_v17  ;;  %v9022_v17 = vld [vmem:[#allocation66_spill] sm:$0xff] }
 0xa64   :  { %5644 = vmatprep.subr.bf16.mxu0 %v9012_v41 }
 0xa67   :  { %5646 = vmatpush1.bf16.msra.mxu0 %v9013_v22 }
 0xa68   :  { %5648 = vmatprep.subr.bf16.mxu0 %v9014_v13 }
 0xa6b   :  { %5650 = vmatpush1.bf16.msra.mxu0 %v9015_v21 }
 0xa6c   :  { %5652 = vmatprep.subr.bf16.mxu0 %v9016_v8 }
 0xa6f   :  { %5654 = vmatpush1.bf16.msra.mxu0 %v9017_v32 }
 0xa70   :  { %5656 = vmatprep.subr.bf16.mxu0 %v9018_v29 }
 0xa73   :  { %5658 = vmatpush1.bf16.msra.mxu0 %v9019_v16 }
 0xa74   :  { %5660 = vmatprep.subr.bf16.mxu0 %v9020_v40 }
 0xa77   :  { %5662 = vmatpush1.bf16.msra.mxu0 %v9021_v53  ;;  %v9025_v53 = vld [vmem:[#allocation19_spill] sm:$0xff] }
 0xa78   :  { %5664 = vmatprep.subr.bf16.mxu0 %v9022_v17 }
 0xb0d   :  { %v1587_v41 = vpop.f32.mrb[10].mxu0  ;;  %v1707_v22 = vpop.f32.mrb[10].mxu1 }
 0xb0e   :  { %v1588_v13 = vadd.f32 %v9023_v27, %v1587_v41  ;;  %v1720_v21 = vrot.slane %v1707_v22, %v9024_v37  ;;  %v4838_v20 = vpop.f32.mrb[11].mxu0  ;;  %v7946_v8 = vpop.f32.mrb[11].mxu1  ;;  %v9026_v27 = vld [vmem:[#allocation20_spill] sm:$0xff]  ;;  %v9027_v22 = vld [vmem:[#allocation21_spill] sm:$0xff] }
 0xb10   :  { %v1598_v32 = vrot.slane %v1588_v13, %v9024_v37  ;;  %v1721_v29 = vcombine.high %v1720_v21, %v1720_v21  ;;  %v1728_v16 = vrot.slane %v1720_v21, %v9024_v37 }
 0xb12   :  { %v1599_v28 = vcombine.high %v1598_v32, %v1598_v32  ;;  %4202 = vst.sshfl [vmem:[%s8630_s10 + $0x1] sm:$0x1 pattern:$0x73625140] %v1598_v32  ;;  %v1735_v17 = vrot.slane %v1721_v29, %v9024_v37  ;;  %v1739_v40 = vrot.slane %v1728_v16, %v9025_v53 }
 0xb14   :  { %4203 = vst.sshfl [vmem:[%s8630_s10 + $0x9] sm:$0x1 pattern:$0x73625140] %v1599_v28  ;;  %v1743_v20 = vrot.slane %v1735_v17, %v9025_v53  ;;  %v1746_v41 = vadd.f32 %v1739_v40, %v9026_v27 }
 0xb16   :  { %v1747_v49 = vadd.f32 %v1743_v20, %v9027_v22  ;;  %6475 = vtanh.f32 %v1746_v41 }
 0xb18   :  { %6477 = vtanh.f32 %v1747_v49 }
 0xb20   :  { %v6476_v21 = vpop.eup %6475 }
 0xb21   :  { %v1750_v24 = vmul.f32 %v9028_v3, %v6476_v21  ;;  %v9030_v21 = vld [vmem:[#allocation23_spill] sm:$0xff] }
 0xb22   :  { %v6478_v32 = vpop.eup %6477 }
 0xb23   :  { %1752 = vadd.xlane.f32.xlu0 %v1750_v24  ;;  %v1751_v29 = vmul.f32 %v9028_v3, %v6478_v32 }
 0xb25   :  { %1754 = vadd.xlane.f32.xlu1 %v1751_v29 }
 0xbb0   :  { %v1753_v16 = vpop.xlane.xlu0 %1752 }
 0xbb1   :  { %v1761_v28 = vrot.slane %v1753_v16, %v9029_v4 }
 0xbb2   :  { %v1755_v37 = vpop.xlane.xlu1 %1754 }
 0xbb3   :  { %v1765_v17 = vrot.slane %v1755_v37, %v9029_v4 }
 0xbb5   :  { %v1766_v40 = vsel %vm477_vm0, %v1765_v17, %v1761_v28  ;;  %v1618_v28 = vsel %vm985_vm4, %v1588_v13, -inf }
 0xbb6   :  { %v1768_v20 = vsel %vm480_vm1, %v1766_v40, -inf }
 0xbb7   :  { %1769 = vmax.xlane.f32.xlu1 %v1768_v20 }
 0xc44   :  { %v1770_v49 = vpop.xlane.xlu1 %1769 }
 0xc45   :  { %v1775_v41 = vrot.slane %v1770_v49, %v9025_v53  ;;  %v1779_v22 = vrot.slane %v1770_v49, %v9030_v21 }
 0xc47   :  { %v1782_v24 = vsub.f32 %v1753_v16, %v1775_v41  ;;  %v1783_v27 = vsub.f32 %v1755_v37, %v1779_v22 }
 0xc49   :  { %v1784_v3 = vmul.f32 1.442695, %v1782_v24  ;;  %v1786_v32 = vmul.f32 1.442695, %v1783_v27 }
 0xc4b   :  { %6479 = vpow2.f32 %v1784_v3 }
 0xc4c   :  { %6481 = vpow2.f32 %v1786_v32 }
 0xc55   :  { %v6480_v29 = vpop.eup %6479 }
 0xc56   :  { %1791 = vperm.xlu1 %6429, %v6480_v29   ;;  %v6482_v44 = vpop.eup %6481 }
 0xc5a   :  { %1794 = vperm.xlu1 %6429, %v6482_v44  }
 0xc7e   :  { %1619 = vmax.xlane.f32.xlu1 %v1618_v28 }
 0xcd5   :  { %v1792_v17 = vpop.permute.xlu1 %1791 }
 0xcd6   :  { %v1799_v20 = vrot.slane %v1792_v17, %v9029_v4 }
 0xcd9   :  { %v1795_v40 = vpop.permute.xlu1 %1794 }
 0xcda   :  { %v1803_v9 = vrot.slane %v1795_v40, %v9029_v4 }
 0xcdc   :  { %v1804_v16 = vsel %vm477_vm0, %v1803_v9, %v1799_v20 }
 0xcdd   :  { %v1806_v37 = vsel %vm480_vm1, %v1804_v16, 0.0 }
 0xcde   :  { %1807 = vadd.xlane.f32.xlu0 %v1806_v37 }
 0xd0b   :  { %v1620_v27 = vpop.xlane.xlu1 %1619 }
 0xd0c   :  { %vm1621_vm8 = vcmp.eq.f32.partialorder %v1588_v13, %v1620_v27 }
 0xd0d   :  { %v1622_v22 = vsel %vm1621_vm8, %v6883_v48, 128 }
 0xd0e   :  { %v1623_v49 = vsel %vm985_vm4, %v1622_v22, 2147483647 }
 0xd0f   :  { %v1625_v41 = vshra.s32 %v1623_v49, 16  ;;  %v1624_v13 = vand.u32 65535, %v1623_v49 }
 0xd11   :  { %v1627_v24 = vcvt.s32.f32 %v1625_v41  ;;  %v1626_v37 = vcvt.s32.f32 %v1624_v13  ;;  %v9031_v41 = vld [vmem:[#allocation94_spill] sm:$0xff] }
 0xd13   :  { %1628 = vmin.xlane.f32.xlu0 %v1627_v24 }
 0xd6b   :  { %v1808_v3 = vpop.xlane.xlu0 %1807 }
 0xd6c   :  { %v1813_v32 = vrot.slane %v1808_v3, %v9025_v53  ;;  %v1817_v28 = vrot.slane %v1808_v3, %v9030_v21 }
 0xd6e   :  { %6483 = vrcp.f32 %v1813_v32 }
 0xd6f   :  { %6485 = vrcp.f32 %v1817_v28 }
 0xd78   :  { %v6484_v9 = vpop.eup %6483 }
 0xd79   :  { %v1821_v17 = vmul.f32 %v6484_v9, %v6480_v29  ;;  %v6486_v40 = vpop.eup %6485 }
 0xd7a   :  { %v1823_v20 = vmul.f32 %v6486_v40, %v6482_v44 }
 0xd7b   :  { %1826 = vperm.xlu0 %6430, %v1821_v17  }
 0xd7f   :  { %1831 = vperm.xlu0 %6430, %v1823_v20  }
 0xda0   :  { %v1629_v16 = vpop.xlane.xlu0 %1628 }
 0xda1   :  { %vm1630_vm9 = vcmp.eq.f32.partialorder %v1627_v24, %v1629_v16 }
 0xda2   :  { %v1631_v27 = vsel %vm1630_vm9, %v1626_v37, inf }
 0xda3   :  { %1632 = vmin.xlane.f32.xlu0 %v1631_v27  ;;  %v1635_v27 = vcvt.f32.s32 %v1629_v16  ;;  %v9034_v16 = vld [vmem:[#allocation82_spill] sm:$0xff] }
 0xdfa   :  { %v1827_v22 = vpop.permute.xlu0 %1826 }
 0xdfb   :  { %v1834_v4 = vmul.f32 %v9031_v41, %v1827_v22  ;;  %v1636_v41 = vshll.u32 %v1635_v27, 16  ;;  %v9048_v27 = vld [vmem:[#allocation87_spill] sm:$0xff] }
 0xdfd   :  { %v1836_v53 = vrot.slane %v1834_v4, 4 }
 0xdfe   :  { %v1832_v18 = vpop.permute.xlu0 %1831 }
 0xdff   :  { %v1837_v3 = vadd.f32 %v1836_v53, %v1834_v4  ;;  %v1835_v32 = vmul.f32 %v7807_v38, %v1832_v18  ;;  %v9032_v18 = vld [vmem:[#allocation80_spill] sm:$0xff]  ;;  %v9033_v38 = vld [vmem:[#allocation81_spill] sm:$0xff] }
 0xe01   :  { %v1838_v28 = vrot.slane %v1837_v3, 2  ;;  %v1842_v29 = vrot.slane %v1835_v32, 4 }
 0xe03   :  { %v1839_v9 = vadd.f32 %v1838_v28, %v1837_v3  ;;  %v1843_v17 = vadd.f32 %v1842_v29, %v1835_v32  ;;  %v9035_v3 = vld [vmem:[#allocation2_spill] sm:$0xff]  ;;  %v9036_v32 = vld [vmem:[#allocation83_spill] sm:$0xff]  ;;  %v9038_v29 = vld [vmem:[#allocation4_spill] sm:$0xff] }
 0xe04   :  { %v9037_v28 = vld [vmem:[#allocation3_spill] sm:$0xff] }
 0xe05   :  { %v1844_v44 = vrot.slane %v1843_v17, 2  ;;  %v1840_v40 = vrot.slane %v1839_v9, 1 }
 0xe07   :  { %v1845_v49 = vadd.f32 %v1844_v44, %v1843_v17  ;;  %v1841_v13 = vadd.f32 %v1840_v40, %v1839_v9  ;;  %v9039_v9 = vld [vmem:[#allocation84_spill] sm:$0xff]  ;;  %v9040_v17 = vld [vmem:[#allocation5_spill] sm:$0xff]  ;;  %v9041_v44 = vld [vmem:[#allocation6_spill] sm:$0xff] }
 0xe08   :  { %v9042_v40 = vld [vmem:[#allocation85_spill] sm:$0xff] }
 0xe09   :  { %v1846_v20 = vrot.slane %v1845_v49, 1 }
 0xe0b   :  { %v1847_v24 = vadd.f32 %v1846_v20, %v1845_v49  ;;  %v9043_v49 = vld [vmem:[#allocation7_spill] sm:$0xff]  ;;  %v9044_v20 = vld [vmem:[#allocation8_spill] sm:$0xff] }
 0xe0d   :  { %v1850_v37 = vsel %vm477_vm0, %v1847_v24, %v1841_v13  ;;  %v9045_v13 = vld [vmem:[#allocation86_spill] sm:$0xff]  ;;  %v9046_v24 = vld [vmem:[#allocation9_spill] sm:$0xff] }
 0xe0e   :  { %1916 = vmatprep.mubr.f32.mxu0 %v1850_v37  ;;  %2058 = vmatprep.mubr.f32.mxu1 %v1850_v37  ;;  %v9047_v37 = vld [vmem:[#allocation10_spill] sm:$0xff] }
 0xe30   :  { %v1633_v22 = vpop.xlane.xlu0 %1632 }
 0xe31   :  { %v1634_v4 = vcvt.f32.s32 %v1633_v22  ;;  %v9049_v22 = vld [vmem:[#allocation11_spill] sm:$0xff] }
 0xe33   :  { %v1637_v53 = vadd.s32 %v1636_v41, %v1634_v4  ;;  %v9050_v41 = vld [vmem:[#allocation12_spill] sm:$0xff] }
 0xe34   :  { %v9051_v4 = vld [vmem:[#allocation88_spill] sm:$0xff] }
 0xe35   :  { %vm1638_vm10 = vcmp.eq.s32.totalorder %v6883_v48, %v1637_v53  ;;  %v9052_v53 = vld [vmem:[#allocation13_spill] sm:$0xff] }
 0xe36   :  { %4205 = vmatmul.mubr.msk.f32.vlgmr.msra.gmra.mrb[12].mxu0 %vm1638_vm10, %v8960_v12  ;;  %4206 = vmatmul.mubr.msk.f32.vlgmr.msra.gmra.mrb[12].mxu1 %vm1638_vm10, %v8960_v12 }
 0xe37   :  { %5666 = vmatpush1.bf16.msra.mxu0 %v7375_v45  ;;  %5729 = vmatpush3.bf16.msra.mxu1 %v7377_v15 }
 0xe38   :  { %5668 = vmatprep.subr.bf16.mxu0 %v7383_v35  ;;  %5730 = vmatprep.subr.bf16.mxu1 %v8904_v63 }
 0xe39   :  { %1987 = vmatprep.mubr.f32.mxu0 %v8906_v36  ;;  %4871 = vmatprep.mubr.msk.f32.mxu1 %vm6589_vm3, %v8906_v36 }
 0xe3b   :  { %5670 = vmatpush1.bf16.msra.mxu0 %v8961_v26  ;;  %5732 = vmatpush3.bf16.msra.mxu1 %v8962_v62 }
 0xe3c   :  { %5672 = vmatprep.subr.bf16.mxu0 %v8963_v56  ;;  %5733 = vmatprep.subr.bf16.mxu1 %v8904_v63 }
 0xe3f   :  { %5674 = vmatpush1.bf16.msra.mxu0 %v8964_v10  ;;  %5735 = vmatpush3.bf16.msra.mxu1 %v8965_v7 }
 0xe40   :  { %5676 = vmatprep.subr.bf16.mxu0 %v8966_v51  ;;  %5736 = vmatprep.subr.bf16.mxu1 %v8904_v63 }
 0xe43   :  { %5678 = vmatpush1.bf16.msra.mxu0 %v8967_v6  ;;  %5738 = vmatpush3.bf16.msra.mxu1 %v8968_v31 }
 0xe44   :  { %5680 = vmatprep.subr.bf16.mxu0 %v8969_v60  ;;  %5739 = vmatprep.subr.bf16.mxu1 %v8904_v63 }
 0xe47   :  { %5682 = vmatpush1.bf16.msra.mxu0 %v8970_v23  ;;  %5741 = vmatpush3.bf16.msra.mxu1 %v8971_v0 }
 0xe48   :  { %5684 = vmatprep.subr.bf16.mxu0 %v8972_v33  ;;  %5742 = vmatprep.subr.bf16.mxu1 %v8904_v63 }
 0xe4b   :  { %5686 = vmatpush1.bf16.msra.mxu0 %v8973_v43  ;;  %5744 = vmatpush3.bf16.msra.mxu1 %v7521_v57 }
 0xe4c   :  { %5688 = vmatprep.subr.bf16.mxu0 %v7528_v34  ;;  %5745 = vmatprep.subr.bf16.mxu1 %v8904_v63 }
 0xe4f   :  { %5690 = vmatpush1.bf16.msra.mxu0 %v7547_v50  ;;  %5747 = vmatpush3.bf16.msra.mxu1 %v7549_v1 }
 0xe50   :  { %5692 = vmatprep.subr.bf16.mxu0 %v9032_v18  ;;  %5748 = vmatprep.subr.bf16.mxu1 %v8904_v63 }
 0xe53   :  { %5694 = vmatpush1.bf16.msra.mxu0 %v9033_v38  ;;  %5750 = vmatpush3.bf16.msra.mxu1 %v9034_v16 }
 0xe54   :  { %5751 = vmatprep.subr.bf16.mxu1 %v8904_v63  ;;  %5776 = vmatprep.subr.bf16.mxu0 %v9035_v3 }
 0xe56   :  { %1988 = vmatmul.mubr.f32.vlgmr.msra.gmra.mrb[12].mxu0 %v7892_v25  ;;  %4872 = vmatmul.mubr.f32.vlgmr.msra.gmra.mrb[14].mxu1 %v7892_v25 }
 0xe57   :  { %5753 = vmatpush3.bf16.msra.mxu1 %v9036_v32  ;;  %5778 = vmatpush1.bf16.msra.mxu0 %v9037_v28 }
 0xe58   :  { %5754 = vmatprep.subr.bf16.mxu1 %v8904_v63  ;;  %5780 = vmatprep.subr.bf16.mxu0 %v9038_v29 }
 0xe59   :  { %4906 = vmatprep.mubr.msk.f32.mxu1 %vm6589_vm3, %v8906_v36  ;;  %2337 = vmatprep.mubr.f32.mxu0 %v8906_v36 }
 0xe5b   :  { %5756 = vmatpush3.bf16.msra.mxu1 %v9039_v9  ;;  %5782 = vmatpush1.bf16.msra.mxu0 %v9040_v17 }
 0xe5c   :  { %5757 = vmatprep.subr.bf16.mxu1 %v8904_v63  ;;  %5784 = vmatprep.subr.bf16.mxu0 %v9041_v44 }
 0xe5f   :  { %5759 = vmatpush3.bf16.msra.mxu1 %v9042_v40  ;;  %5786 = vmatpush1.bf16.msra.mxu0 %v9043_v49 }
 0xe60   :  { %5760 = vmatprep.subr.bf16.mxu1 %v8904_v63  ;;  %5788 = vmatprep.subr.bf16.mxu0 %v9044_v20  ;;  %v9055_v20 = vld [vmem:[#allocation15_spill] sm:$0xff] }
 0xe63   :  { %5762 = vmatpush3.bf16.msra.mxu1 %v9045_v13  ;;  %5790 = vmatpush1.bf16.msra.mxu0 %v9046_v24  ;;  %v9053_v13 = vld [vmem:[#allocation14_spill] sm:$0xff]  ;;  %v9054_v24 = vld [vmem:[#allocation89_spill] sm:$0xff] }
 0xe64   :  { %5763 = vmatprep.subr.bf16.mxu1 %v8904_v63  ;;  %5792 = vmatprep.subr.bf16.mxu0 %v9047_v37  ;;  %v9058_v37 = vld [vmem:[#allocation17_spill] sm:$0xff] }
 0xe67   :  { %5765 = vmatpush3.bf16.msra.mxu1 %v9048_v27  ;;  %5794 = vmatpush1.bf16.msra.mxu0 %v9049_v22  ;;  %v9056_v27 = vld [vmem:[#allocation16_spill] sm:$0xff]  ;;  %v9057_v22 = vld [vmem:[#allocation90_spill] sm:$0xff] }
 0xe68   :  { %5766 = vmatprep.subr.bf16.mxu1 %v8904_v63  ;;  %5796 = vmatprep.subr.bf16.mxu0 %v9050_v41  ;;  %v9059_v41 = vld [vmem:[#allocation24_spill] sm:$0xff] }
 0xe6b   :  { %5768 = vmatpush3.bf16.msra.mxu1 %v9051_v4  ;;  %5798 = vmatpush1.bf16.msra.mxu0 %v9052_v53  ;;  %v9060_v4 = vld [vmem:[#allocation30_spill] sm:$0xff] }
 0xe6c   :  { %5769 = vmatprep.subr.bf16.mxu1 %v8904_v63  ;;  %5800 = vmatprep.subr.bf16.mxu0 %v9053_v13  ;;  %v9061_v13 = vld [vmem:[#allocation91_spill] sm:$0xff] }
 0xe6f   :  { %5771 = vmatpush3.bf16.msra.mxu1 %v9054_v24  ;;  %5802 = vmatpush1.bf16.msra.mxu0 %v9055_v20 }
 0xe70   :  { %5772 = vmatprep.subr.bf16.mxu1 %v8904_v63  ;;  %5804 = vmatprep.subr.bf16.mxu0 %v9056_v27 }
 0xe73   :  { %5774 = vmatpush3.bf16.msra.mxu1 %v9057_v22  ;;  %5806 = vmatpush1.bf16.msra.mxu0 %v9058_v37 }
 0xe74   :  { %5808 = vmatprep.subr.bf16.mxu1 %v9059_v41  ;;  %5904 = vmatprep.subr.bf16.mxu0 %v9060_v4 }
 0xf09   :  { %v4420_v53 = vpop.f32.mrb[12].mxu1 }
 0xf0a   :  { %v4421_v49 = vpop.f32.mrb[13].mxu1 }
 0xf0b   :  { %v4422_v40 = vadd.f32 %v4421_v49, %v4420_v53  ;;  %v9067_v53 = vld [vmem:[#allocation56_spill] sm:$0xff] }
 0xf0d   :  { %v2061_v44 = vadd.f32 %v4422_v40, %v9061_v13  ;;  %v8062_v40 = vld [vmem:[%s8628_s7] ss:$0 sm:$0xff] }
 0xf29   :  { %v1989_v24 = vpop.f32.mrb[12].mxu0  ;;  %v2130_v17 = vpop.f32.mrb[14].mxu1 }
 0xf2a   :  { %v6403_v20 = vadd.f32 %v1989_v24, %v7687_v59  ;;  %v2131_v9 = vadd.f32 %v2130_v17, %v2061_v44  ;;  %v1991_v29 = vpop.f32.mrb[13].mxu0  ;;  %v4873_v27 = vpop.f32.mrb[15].mxu1  ;;  %v1712_v17 = vadd.f32 %v8062_v40, %v7946_v8  ;;  %v9063_v8 = vld [vmem:[#allocation52_spill] sm:$0xff] }
 0xf2b   :  { %v6404_v22 = vadd.f32 %v1991_v29, %v7691_v14 }
 0xf2c   :  { %v4207_v28 = vmul.f32 -1.442695, %v6403_v20 }
 0xf2d   :  { %v4208_v37 = vmul.f32 -1.442695, %v6404_v22 }
 0xf2e   :  { %6487 = vpow2.f32 %v4207_v28 }
 0xf2f   :  { %6489 = vpow2.f32 %v4208_v37 }
 0xf38   :  { %v6488_v41 = vpop.eup %6487 }
 0xf39   :  { %v2137_v4 = vadd.f32 1.0, %v6488_v41  ;;  %v6490_v32 = vpop.eup %6489  ;;  %v9065_v41 = vld [vmem:[#allocation53_spill] sm:$0xff] }
 0xf3a   :  { %v2143_v49 = vadd.f32 1.0, %v6490_v32 }
 0xf3b   :  { %6491 = vrcp.f32 %v2137_v4  ;;  %v9066_v4 = vld [vmem:[#allocation32_spill] sm:$0xff] }
 0xf3c   :  { %6493 = vrcp.f32 %v2143_v49  ;;  %v9068_v49 = vld [vmem:[#allocation34_spill] sm:$0xff] }
 0xf45   :  { %v6492_v44 = vpop.eup %6491 }
 0xf46   :  { %v2146_v20 = vmul.f32 %v6492_v44, %v1712_v17  ;;  %v6494_v28 = vpop.eup %6493  ;;  %v9069_v17 = vld [vmem:[#allocation57_spill] sm:$0xff]  ;;  %v9070_v44 = vld [vmem:[#allocation36_spill] sm:$0xff] }
 0xf47   :  { %v2149_v24 = vsub.f32 1.0, %v6494_v28  ;;  %v2151_v22 = vmul.f32 %v6494_v28, %v7892_v25  ;;  %v9062_v25 = vld [vmem:[#allocation29_spill] sm:$0xff] }
 0xf48   :  { %v2147_v29 = vadd.f32 %v2146_v20, %v2131_v9  ;;  %v9064_v9 = vld [vmem:[#allocation31_spill] sm:$0xff]  ;;  %v9071_v20 = vld [vmem:[#allocation60_spill] sm:$0xff]  ;;  %v9073_v28 = vld [vmem:[#allocation61_spill] sm:$0xff] }
 0xf4a   :  { %6495 = vtanh.f32 %v2147_v29  ;;  %v9072_v29 = vld [vmem:[#allocation37_spill] sm:$0xff] }
 0xf54   :  { %v6496_v37 = vpop.eup %6495 }
 0xf55   :  { %v2150_v27 = vmul.f32 %v6496_v37, %v2149_v24  ;;  %v9074_v24 = vld [vmem:[#allocation38_spill] sm:$0xff]  ;;  %v9075_v37 = vld [vmem:[#allocation64_spill] sm:$0xff] }
 0xf57   :  { %v8067_v32 = vadd.f32 %v2151_v22, %v2150_v27  ;;  %v9076_v27 = vld [vmem:[#allocation39_spill] sm:$0xff]  ;;  %v9077_v22 = vld [vmem:[#allocation65_spill] sm:$0xff] }
 0xf59   :  { %4907 = vmatmul.mubr.f32.vlgmr.msra.gmra.mrb[16].mxu1 %v8067_v32  ;;  %2338 = vmatmul.mubr.f32.vlgmr.msra.gmra.mrb[14].mxu0 %v8067_v32 }
 0xf5a   :  { %5810 = vmatpush1.bf16.msra.mxu1 %v6928_v39  ;;  %5906 = vmatpush3.bf16.msra.mxu0 %v7013_v30 }
 0xf5b   :  { %5812 = vmatprep.subr.bf16.mxu1 %v6930_v42  ;;  %5908 = vmatprep.subr.bf16.mxu0 %v7038_v54 }
 0xf5e   :  { %5814 = vmatpush1.bf16.msra.mxu1 %v6946_v47  ;;  %5910 = vmatpush3.bf16.msra.mxu0 %v7040_v55 }
 0xf5f   :  { %5816 = vmatprep.subr.bf16.mxu1 %v6949_v52  ;;  %5912 = vmatprep.subr.bf16.mxu0 %v7058_v2 }
 0xf62   :  { %5818 = vmatpush1.bf16.msra.mxu1 %v6964_v58  ;;  %5914 = vmatpush3.bf16.msra.mxu0 %v7070_v19 }
 0xf63   :  { %5820 = vmatprep.subr.bf16.mxu1 %v6967_v61  ;;  %5916 = vmatprep.subr.bf16.mxu0 %v7192_v11 }
 0xf66   :  { %5822 = vmatpush1.bf16.msra.mxu1 %v6982_v5  ;;  %5918 = vmatpush3.bf16.msra.mxu0 %v7194_v46 }
 0xf67   :  { %5824 = vmatprep.subr.bf16.mxu1 %v9062_v25  ;;  %5920 = vmatprep.subr.bf16.mxu0 %v9063_v8  ;;  %v9099_v8 = vld [vmem:[#allocation21_spill] sm:$0xff] }
 0xf6a   :  { %5826 = vmatpush1.bf16.msra.mxu1 %v9064_v9  ;;  %5922 = vmatpush3.bf16.msra.mxu0 %v9065_v41  ;;  %v9098_v9 = vld [vmem:[#allocation20_spill] sm:$0xff] }
 0xf6b   :  { %5828 = vmatprep.subr.bf16.mxu1 %v9066_v4  ;;  %5924 = vmatprep.subr.bf16.mxu0 %v9067_v53  ;;  %v9078_v53 = vld [vmem:[#allocation40_spill] sm:$0xff] }
 0xf6e   :  { %5830 = vmatpush1.bf16.msra.mxu1 %v9068_v49  ;;  %5926 = vmatpush3.bf16.msra.mxu0 %v9069_v17  ;;  %v9079_v17 = vld [vmem:[#allocation41_spill] sm:$0xff]  ;;  %v9089_v49 = vld [vmem:[#allocation55_spill] sm:$0xff] }
 0xf6f   :  { %5832 = vmatprep.subr.bf16.mxu1 %v9070_v44  ;;  %5928 = vmatprep.subr.bf16.mxu0 %v9071_v20  ;;  %v9080_v44 = vld [vmem:[#allocation42_spill] sm:$0xff]  ;;  %v9081_v20 = vld [vmem:[#allocation43_spill] sm:$0xff] }
 0xf72   :  { %5834 = vmatpush1.bf16.msra.mxu1 %v9072_v29  ;;  %5930 = vmatpush3.bf16.msra.mxu0 %v9073_v28  ;;  %v9082_v29 = vld [vmem:[#allocation44_spill] sm:$0xff]  ;;  %v9083_v28 = vld [vmem:[#allocation45_spill] sm:$0xff] }
 0xf73   :  { %5836 = vmatprep.subr.bf16.mxu1 %v9074_v24  ;;  %5932 = vmatprep.subr.bf16.mxu0 %v9075_v37  ;;  %v9084_v24 = vld [vmem:[#allocation46_spill] sm:$0xff]  ;;  %v9085_v37 = vld [vmem:[#allocation47_spill] sm:$0xff] }
 0xf76   :  { %5838 = vmatpush1.bf16.msra.mxu1 %v9076_v27  ;;  %5934 = vmatpush3.bf16.msra.mxu0 %v9077_v22  ;;  %v9086_v27 = vld [vmem:[#allocation50_spill] sm:$0xff]  ;;  %v9087_v22 = vld [vmem:[#allocation51_spill] sm:$0xff] }
 0xf77   :  { %5840 = vmatprep.subr.bf16.mxu1 %v9078_v53  ;;  %5935 = vmatprep.subr.bf16.mxu0 %v8904_v63  ;;  %v9088_v53 = vld [vmem:[#allocation54_spill] sm:$0xff] }
 0xf7a   :  { %5842 = vmatpush1.bf16.msra.mxu1 %v9079_v17  ;;  %v9090_v17 = vld [vmem:[#allocation58_spill] sm:$0xff] }
 0xf7b   :  { %5844 = vmatprep.subr.bf16.mxu1 %v9080_v44  ;;  %v9091_v44 = vld [vmem:[#allocation59_spill] sm:$0xff] }
 0xf7e   :  { %5846 = vmatpush1.bf16.msra.mxu1 %v9081_v20  ;;  %v9092_v20 = vld [vmem:[#allocation62_spill] sm:$0xff] }
 0xf7f   :  { %5848 = vmatprep.subr.bf16.mxu1 %v9082_v29  ;;  %v9093_v29 = vld [vmem:[#allocation63_spill] sm:$0xff] }
 0xf82   :  { %5850 = vmatpush1.bf16.msra.mxu1 %v9083_v28  ;;  %v9094_v28 = vld [vmem:[#allocation66_spill] sm:$0xff] }
 0xf83   :  { %5852 = vmatprep.subr.bf16.mxu1 %v9084_v24 }
 0xf86   :  { %5854 = vmatpush1.bf16.msra.mxu1 %v9085_v37 }
 0xf87   :  { %5856 = vmatprep.subr.bf16.mxu1 %v9086_v27 }
 0xf8a   :  { %5858 = vmatpush1.bf16.msra.mxu1 %v9087_v22  ;;  %v8122_v22 = vld [vmem:[%s8629_s9] ss:$0 sm:$0xff] }
 0xf8b   :  { %5860 = vmatprep.subr.bf16.mxu1 %v9088_v53  ;;  %9095 = vst [vmem:[#allocation67_spill] sm:$0xff] %v8122_v22 }
 0xf8e   :  { %5862 = vmatpush1.bf16.msra.mxu1 %v9089_v49  ;;  %v9096_v49 = vld [vmem:[#allocation18_spill] sm:$0xff] }
 0xf8f   :  { %5864 = vmatprep.subr.bf16.mxu1 %v9090_v17 }
 0xf92   :  { %5866 = vmatpush1.bf16.msra.mxu1 %v9091_v44 }
 0xf93   :  { %5868 = vmatprep.subr.bf16.mxu1 %v9092_v20 }
 0xf96   :  { %5870 = vmatpush1.bf16.msra.mxu1 %v9093_v29 }
 0xf97   :  { %5872 = vmatprep.subr.bf16.mxu1 %v9094_v28 }
0x102c   :  { %v2219_v24 = vpop.f32.mrb[16].mxu1  ;;  %v2339_v37 = vpop.f32.mrb[14].mxu0 }
0x102d   :  { %v2220_v53 = vadd.f32 %v8122_v22, %v2219_v24  ;;  %v2352_v27 = vrot.slane %v2339_v37, %v9096_v49  ;;  %v4908_v17 = vpop.f32.mrb[17].mxu1  ;;  %v8126_v4 = vpop.f32.mrb[15].mxu0  ;;  %v9097_v22 = vld [vmem:[#allocation19_spill] sm:$0xff] }
0x102f   :  { %v2230_v20 = vrot.slane %v2220_v53, %v9096_v49  ;;  %v2353_v44 = vcombine.high %v2352_v27, %v2352_v27  ;;  %v2360_v29 = vrot.slane %v2352_v27, %v9096_v49  ;;  %v2250_v28 = vsel %vm985_vm4, %v2220_v53, -inf }
0x1030   :  { %2251 = vmax.xlane.f32.xlu0 %v2250_v28 }
0x1031   :  { %v2231_v41 = vcombine.high %v2230_v20, %v2230_v20  ;;  %4209 = vst.sshfl [vmem:[%s8630_s10 + $0x2] sm:$0x1 pattern:$0x73625140] %v2230_v20  ;;  %v2367_v24 = vrot.slane %v2353_v44, %v9096_v49  ;;  %v2371_v37 = vrot.slane %v2360_v29, %v9097_v22  ;;  %v8145_v20 = vld [vmem:[%s8624_s3] ss:$0 sm:$0xff] }
0x1032   :  { %9100 = vst [vmem:[#allocation68_spill] sm:$0xff] %v8145_v20  ;;  %v9101_v49 = vld [vmem:[#allocation22_spill] sm:$0xff] }
0x1033   :  { %4210 = vst.sshfl [vmem:[%s8630_s10 + $0xa] sm:$0x1 pattern:$0x73625140] %v2231_v41  ;;  %v2375_v17 = vrot.slane %v2367_v24, %v9097_v22  ;;  %v2378_v27 = vadd.f32 %v2371_v37, %v9098_v9 }
0x1035   :  { %v2379_v25 = vadd.f32 %v2375_v17, %v9099_v8  ;;  %6497 = vtanh.f32 %v2378_v27 }
0x1037   :  { %6499 = vtanh.f32 %v2379_v25 }
0x103f   :  { %v6498_v28 = vpop.eup %6497 }
0x1040   :  { %v2382_v44 = vmul.f32 %v8145_v20, %v6498_v28 }
0x1041   :  { %v6500_v29 = vpop.eup %6499 }
0x1042   :  { %2384 = vadd.xlane.f32.xlu1 %v2382_v44  ;;  %v2383_v41 = vmul.f32 %v8145_v20, %v6500_v29 }
0x1046   :  { %2386 = vadd.xlane.f32.xlu1 %v2383_v41 }
0x10bd   :  { %v2252_v24 = vpop.xlane.xlu0 %2251 }
0x10be   :  { %vm2253_vm11 = vcmp.eq.f32.partialorder %v2220_v53, %v2252_v24 }
0x10bf   :  { %v2254_v37 = vsel %vm2253_vm11, %v6883_v48, 128 }
0x10c0   :  { %v2255_v17 = vsel %vm985_vm4, %v2254_v37, 2147483647 }
0x10c1   :  { %v2257_v25 = vshra.s32 %v2255_v17, 16 }
0x10c3   :  { %v2259_v27 = vcvt.s32.f32 %v2257_v25 }
0x10c5   :  { %2260 = vmin.xlane.f32.xlu0 %v2259_v27 }
0x10cf   :  { %v2385_v8 = vpop.xlane.xlu1 %2384 }
0x10d0   :  { %v2393_v46 = vrot.slane %v2385_v8, %v9101_v49 }
0x10d3   :  { %v2387_v9 = vpop.xlane.xlu1 %2386 }
0x10d4   :  { %v2397_v28 = vrot.slane %v2387_v9, %v9101_v49 }
0x10d6   :  { %v2398_v44 = vsel %vm477_vm0, %v2397_v28, %v2393_v46 }
0x10d7   :  { %v2400_v29 = vsel %vm480_vm1, %v2398_v44, -inf }
0x10d8   :  { %2401 = vmax.xlane.f32.xlu1 %v2400_v29 }
0x1165   :  { %v2402_v41 = vpop.xlane.xlu1 %2401 }
0x1166   :  { %v2407_v53 = vrot.slane %v2402_v41, %v9097_v22  ;;  %v2411_v24 = vrot.slane %v2402_v41, %v9030_v21 }
0x1168   :  { %v2414_v37 = vsub.f32 %v2385_v8, %v2407_v53  ;;  %v2415_v20 = vsub.f32 %v2387_v9, %v2411_v24 }
0x116a   :  { %v2416_v25 = vmul.f32 1.442695, %v2414_v37  ;;  %v2418_v5 = vmul.f32 1.442695, %v2415_v20 }
0x116c   :  { %6501 = vpow2.f32 %v2416_v25  ;;  %v2256_v25 = vand.u32 65535, %v2255_v17 }
0x116d   :  { %6503 = vpow2.f32 %v2418_v5 }
0x1176   :  { %v6502_v11 = vpop.eup %6501 }
0x1177   :  { %2423 = vperm.xlu1 %6429, %v6502_v11   ;;  %v6504_v61 = vpop.eup %6503 }
0x117b   :  { %2426 = vperm.xlu1 %6429, %v6504_v61  }
0x11f6   :  { %v2424_v19 = vpop.permute.xlu1 %2423 }
0x11f7   :  { %v2431_v28 = vrot.slane %v2424_v19, %v9101_v49  ;;  %v2261_v19 = vpop.xlane.xlu0 %2260 }
0x11f8   :  { %vm2262_vm12 = vcmp.eq.f32.partialorder %v2259_v27, %v2261_v19 }
0x11fa   :  { %v2427_v46 = vpop.permute.xlu1 %2426 }
0x11fb   :  { %v2435_v44 = vrot.slane %v2427_v46, %v9101_v49  ;;  %v2258_v46 = vcvt.s32.f32 %v2256_v25 }
0x11fd   :  { %v2436_v29 = vsel %vm477_vm0, %v2435_v44, %v2431_v28  ;;  %v2263_v28 = vsel %vm2262_vm12, %v2258_v46, inf }
0x11fe   :  { %v2438_v41 = vsel %vm480_vm1, %v2436_v29, 0.0  ;;  %v8166_v29 = vld [vmem:[%s8622_s0] sm:$0xff] }
0x11ff   :  { %2439 = vadd.xlane.f32.xlu1 %v2438_v41  ;;  %9102 = vst [vmem:[#allocation69_spill] sm:$0xff] %v8166_v29 }
0x128c   :  { %v2440_v8 = vpop.xlane.xlu1 %2439 }
0x128d   :  { %v2445_v9 = vrot.slane %v2440_v8, %v9097_v22  ;;  %v2449_v5 = vrot.slane %v2440_v8, %v9030_v21 }
0x128f   :  { %6505 = vrcp.f32 %v2445_v9 }
0x1290   :  { %6507 = vrcp.f32 %v2449_v5 }
0x1299   :  { %v6506_v20 = vpop.eup %6505 }
0x129a   :  { %v2453_v53 = vmul.f32 %v6506_v20, %v6502_v11  ;;  %v6508_v24 = vpop.eup %6507 }
0x129b   :  { %v2455_v37 = vmul.f32 %v6508_v24, %v6504_v61  ;;  %v8172_v61 = vld [vmem:[%s8622_s0 + $0x8] sm:$0xff] }
0x129c   :  { %2458 = vperm.xlu0 %6430, %v2453_v53  }
0x12a0   :  { %2463 = vperm.xlu0 %6430, %v2455_v37  }
0x12bf   :  { %2264 = vmin.xlane.f32.xlu0 %v2263_v28 }
0x131b   :  { %v2459_v44 = vpop.permute.xlu0 %2458 }
0x131c   :  { %v2466_v41 = vmul.f32 %v8166_v29, %v2459_v44 }
0x131e   :  { %v2468_v8 = vrot.slane %v2466_v41, 4 }
0x131f   :  { %v2464_v11 = vpop.permute.xlu0 %2463 }
0x1320   :  { %v2469_v9 = vadd.f32 %v2468_v8, %v2466_v41  ;;  %v2467_v17 = vmul.f32 %v8172_v61, %v2464_v11  ;;  %v2267_v41 = vcvt.f32.s32 %v2261_v19  ;;  %v9106_v19 = vld [vmem:[#allocation84_spill] sm:$0xff]  ;;  %v9108_v11 = vld [vmem:[#allocation6_spill] sm:$0xff] }
0x1322   :  { %v2470_v27 = vrot.slane %v2469_v9, 2  ;;  %v2474_v5 = vrot.slane %v2467_v17, 4  ;;  %v2268_v21 = vshll.u32 %v2267_v41, 16  ;;  %v9121_v41 = vld [vmem:[#allocation89_spill] sm:$0xff] }
0x1324   :  { %v2471_v20 = vadd.f32 %v2470_v27, %v2469_v9  ;;  %v2475_v53 = vadd.f32 %v2474_v5, %v2467_v17  ;;  %v9109_v9 = vld [vmem:[#allocation85_spill] sm:$0xff]  ;;  %v9110_v17 = vld [vmem:[#allocation7_spill] sm:$0xff]  ;;  %v9111_v27 = vld [vmem:[#allocation8_spill] sm:$0xff] }
0x1325   :  { %v9112_v5 = vld [vmem:[#allocation86_spill] sm:$0xff] }
0x1326   :  { %v2476_v24 = vrot.slane %v2475_v53, 2  ;;  %v2472_v37 = vrot.slane %v2471_v20, 1 }
0x1328   :  { %v2477_v25 = vadd.f32 %v2476_v24, %v2475_v53  ;;  %v2473_v28 = vadd.f32 %v2472_v37, %v2471_v20  ;;  %v9113_v20 = vld [vmem:[#allocation9_spill] sm:$0xff]  ;;  %v9114_v53 = vld [vmem:[#allocation10_spill] sm:$0xff]  ;;  %v9115_v24 = vld [vmem:[#allocation87_spill] sm:$0xff] }
0x1329   :  { %v9116_v37 = vld [vmem:[#allocation11_spill] sm:$0xff] }
0x132a   :  { %v2478_v46 = vrot.slane %v2477_v25, 1 }
0x132c   :  { %v2479_v44 = vadd.f32 %v2478_v46, %v2477_v25  ;;  %v9117_v25 = vld [vmem:[#allocation12_spill] sm:$0xff] }
0x132d   :  { %v9118_v46 = vld [vmem:[#allocation88_spill] sm:$0xff] }
0x132e   :  { %v2482_v29 = vsel %vm477_vm0, %v2479_v44, %v2473_v28  ;;  %v9119_v28 = vld [vmem:[#allocation13_spill] sm:$0xff]  ;;  %v9120_v44 = vld [vmem:[#allocation14_spill] sm:$0xff] }
0x132f   :  { %2548 = vmatprep.mubr.f32.mxu1 %v2482_v29  ;;  %2690 = vmatprep.mubr.f32.mxu0 %v2482_v29  ;;  %v9107_v29 = vld [vmem:[#allocation5_spill] sm:$0xff] }
0x134c   :  { %v2265_v8 = vpop.xlane.xlu0 %2264 }
0x134d   :  { %v2266_v49 = vcvt.f32.s32 %v2265_v8  ;;  %v9122_v8 = vld [vmem:[#allocation15_spill] sm:$0xff] }
0x134f   :  { %v2269_v22 = vadd.s32 %v2268_v21, %v2266_v49  ;;  %v9103_v21 = vld [vmem:[#allocation83_spill] sm:$0xff] }
0x1350   :  { %v9104_v49 = vld [vmem:[#allocation3_spill] sm:$0xff] }
0x1351   :  { %vm2270_vm13 = vcmp.eq.s32.totalorder %v6883_v48, %v2269_v22  ;;  %v9105_v22 = vld [vmem:[#allocation4_spill] sm:$0xff] }
0x1352   :  { %4212 = vmatmul.mubr.msk.f32.vlgmr.msra.gmra.mrb[18].mxu1 %vm2270_vm13, %v8960_v12  ;;  %4213 = vmatmul.mubr.msk.f32.vlgmr.msra.gmra.mrb[16].mxu0 %vm2270_vm13, %v8960_v12 }
0x1353   :  { %5874 = vmatpush1.bf16.msra.mxu1 %v7375_v45  ;;  %5937 = vmatpush3.bf16.msra.mxu0 %v7377_v15 }
0x1354   :  { %5876 = vmatprep.subr.bf16.mxu1 %v7383_v35  ;;  %5938 = vmatprep.subr.bf16.mxu0 %v8904_v63 }
0x1355   :  { %2619 = vmatprep.mubr.f32.mxu1 %v8906_v36  ;;  %4941 = vmatprep.mubr.msk.f32.mxu0 %vm6589_vm3, %v8906_v36 }
0x1357   :  { %5878 = vmatpush1.bf16.msra.mxu1 %v8961_v26  ;;  %5940 = vmatpush3.bf16.msra.mxu0 %v8962_v62 }
0x1358   :  { %5880 = vmatprep.subr.bf16.mxu1 %v8963_v56  ;;  %5941 = vmatprep.subr.bf16.mxu0 %v8904_v63 }
0x135b   :  { %5882 = vmatpush1.bf16.msra.mxu1 %v8964_v10  ;;  %5943 = vmatpush3.bf16.msra.mxu0 %v8965_v7 }
0x135c   :  { %5884 = vmatprep.subr.bf16.mxu1 %v8966_v51  ;;  %5944 = vmatprep.subr.bf16.mxu0 %v8904_v63 }
0x135f   :  { %5886 = vmatpush1.bf16.msra.mxu1 %v8967_v6  ;;  %5946 = vmatpush3.bf16.msra.mxu0 %v8968_v31 }
0x1360   :  { %5888 = vmatprep.subr.bf16.mxu1 %v8969_v60  ;;  %5947 = vmatprep.subr.bf16.mxu0 %v8904_v63 }
0x1363   :  { %5890 = vmatpush1.bf16.msra.mxu1 %v8970_v23  ;;  %5949 = vmatpush3.bf16.msra.mxu0 %v8971_v0 }
0x1364   :  { %5892 = vmatprep.subr.bf16.mxu1 %v8972_v33  ;;  %5950 = vmatprep.subr.bf16.mxu0 %v8904_v63 }
0x1367   :  { %5894 = vmatpush1.bf16.msra.mxu1 %v8973_v43  ;;  %5952 = vmatpush3.bf16.msra.mxu0 %v7521_v57 }
0x1368   :  { %5896 = vmatprep.subr.bf16.mxu1 %v7528_v34  ;;  %5953 = vmatprep.subr.bf16.mxu0 %v8904_v63 }
0x136b   :  { %5898 = vmatpush1.bf16.msra.mxu1 %v7547_v50  ;;  %5955 = vmatpush3.bf16.msra.mxu0 %v7549_v1 }
0x136c   :  { %5900 = vmatprep.subr.bf16.mxu1 %v9032_v18  ;;  %5956 = vmatprep.subr.bf16.mxu0 %v8904_v63 }
0x136f   :  { %5902 = vmatpush1.bf16.msra.mxu1 %v9033_v38  ;;  %5958 = vmatpush3.bf16.msra.mxu0 %v9034_v16 }
0x1370   :  { %5959 = vmatprep.subr.bf16.mxu0 %v8904_v63  ;;  %5984 = vmatprep.subr.bf16.mxu1 %v9035_v3 }
0x1372   :  { %2620 = vmatmul.mubr.f32.vlgmr.msra.gmra.mrb[18].mxu1 %v8067_v32  ;;  %4942 = vmatmul.mubr.f32.vlgmr.msra.gmra.mrb[18].mxu0 %v8067_v32 }
0x1373   :  { %5961 = vmatpush3.bf16.msra.mxu0 %v9103_v21  ;;  %5986 = vmatpush1.bf16.msra.mxu1 %v9104_v49 }
0x1374   :  { %5962 = vmatprep.subr.bf16.mxu0 %v8904_v63  ;;  %5988 = vmatprep.subr.bf16.mxu1 %v9105_v22 }
0x1375   :  { %4976 = vmatprep.mubr.msk.f32.mxu0 %vm6589_vm3, %v8906_v36  ;;  %2969 = vmatprep.mubr.f32.mxu1 %v8906_v36 }
0x1377   :  { %5964 = vmatpush3.bf16.msra.mxu0 %v9106_v19  ;;  %5990 = vmatpush1.bf16.msra.mxu1 %v9107_v29 }
0x1378   :  { %5965 = vmatprep.subr.bf16.mxu0 %v8904_v63  ;;  %5992 = vmatprep.subr.bf16.mxu1 %v9108_v11 }
0x137b   :  { %5967 = vmatpush3.bf16.msra.mxu0 %v9109_v9  ;;  %5994 = vmatpush1.bf16.msra.mxu1 %v9110_v17 }
0x137c   :  { %5968 = vmatprep.subr.bf16.mxu0 %v8904_v63  ;;  %5996 = vmatprep.subr.bf16.mxu1 %v9111_v27 }
0x137f   :  { %5970 = vmatpush3.bf16.msra.mxu0 %v9112_v5  ;;  %5998 = vmatpush1.bf16.msra.mxu1 %v9113_v20 }
0x1380   :  { %5971 = vmatprep.subr.bf16.mxu0 %v8904_v63  ;;  %6000 = vmatprep.subr.bf16.mxu1 %v9114_v53  ;;  %v9125_v53 = vld [vmem:[#allocation17_spill] sm:$0xff] }
0x1383   :  { %5973 = vmatpush3.bf16.msra.mxu0 %v9115_v24  ;;  %6002 = vmatpush1.bf16.msra.mxu1 %v9116_v37  ;;  %v9123_v24 = vld [vmem:[#allocation16_spill] sm:$0xff]  ;;  %v9124_v37 = vld [vmem:[#allocation90_spill] sm:$0xff] }
0x1384   :  { %5974 = vmatprep.subr.bf16.mxu0 %v8904_v63  ;;  %6004 = vmatprep.subr.bf16.mxu1 %v9117_v25  ;;  %v9126_v25 = vld [vmem:[#allocation24_spill] sm:$0xff] }
0x1387   :  { %5976 = vmatpush3.bf16.msra.mxu0 %v9118_v46  ;;  %6006 = vmatpush1.bf16.msra.mxu1 %v9119_v28  ;;  %v9127_v46 = vld [vmem:[#allocation30_spill] sm:$0xff] }
0x1388   :  { %5977 = vmatprep.subr.bf16.mxu0 %v8904_v63  ;;  %6008 = vmatprep.subr.bf16.mxu1 %v9120_v44 }
0x138b   :  { %5979 = vmatpush3.bf16.msra.mxu0 %v9121_v41  ;;  %6010 = vmatpush1.bf16.msra.mxu1 %v9122_v8 }
0x138c   :  { %5980 = vmatprep.subr.bf16.mxu0 %v8904_v63  ;;  %6012 = vmatprep.subr.bf16.mxu1 %v9123_v24 }
0x138f   :  { %5982 = vmatpush3.bf16.msra.mxu0 %v9124_v37  ;;  %6014 = vmatpush1.bf16.msra.mxu1 %v9125_v53 }
0x1390   :  { %6016 = vmatprep.subr.bf16.mxu0 %v9126_v25  ;;  %6112 = vmatprep.subr.bf16.mxu1 %v9127_v46 }
0x1425   :  { %v4489_v28 = vpop.f32.mrb[16].mxu0 }
0x1426   :  { %v4490_v20 = vpop.f32.mrb[17].mxu0 }
0x1427   :  { %v4491_v5 = vadd.f32 %v4490_v20, %v4489_v28 }
0x1429   :  { %v2693_v44 = vadd.f32 %v4491_v5, %v9061_v13  ;;  %v2344_v5 = vadd.f32 %v8062_v40, %v8126_v4  ;;  %v9129_v40 = vld [vmem:[#allocation27_spill] sm:$0xff]  ;;  %v9131_v4 = vld [vmem:[#allocation28_spill] sm:$0xff] }
0x1445   :  { %v2621_v41 = vpop.f32.mrb[18].mxu1  ;;  %v2762_v27 = vpop.f32.mrb[18].mxu0 }
0x1446   :  { %v6405_v8 = vadd.f32 %v2621_v41, %v7687_v59  ;;  %v2763_v17 = vadd.f32 %v2762_v27, %v2693_v44  ;;  %v2623_v9 = vpop.f32.mrb[19].mxu1  ;;  %v4943_v24 = vpop.f32.mrb[19].mxu0 }
0x1447   :  { %v6406_v37 = vadd.f32 %v2623_v9, %v7691_v14 }
0x1448   :  { %v4214_v11 = vmul.f32 -1.442695, %v6405_v8  ;;  %v9137_v8 = vld [vmem:[#allocation32_spill] sm:$0xff] }
0x1449   :  { %v4215_v53 = vmul.f32 -1.442695, %v6406_v37  ;;  %v9134_v37 = vld [vmem:[#allocation52_spill] sm:$0xff] }
0x144a   :  { %6509 = vpow2.f32 %v4214_v11 }
0x144b   :  { %6511 = vpow2.f32 %v4215_v53 }
0x1454   :  { %v6510_v25 = vpop.eup %6509 }
0x1455   :  { %v2769_v46 = vadd.f32 1.0, %v6510_v25  ;;  %v6512_v29 = vpop.eup %6511  ;;  %v9135_v25 = vld [vmem:[#allocation31_spill] sm:$0xff] }
0x1456   :  { %v2775_v20 = vadd.f32 1.0, %v6512_v29  ;;  %v9132_v29 = vld [vmem:[#allocation49_spill] sm:$0xff] }
0x1457   :  { %6513 = vrcp.f32 %v2769_v46  ;;  %v9136_v46 = vld [vmem:[#allocation53_spill] sm:$0xff] }
0x1458   :  { %6515 = vrcp.f32 %v2775_v20  ;;  %v9138_v20 = vld [vmem:[#allocation56_spill] sm:$0xff] }
0x1461   :  { %v6514_v28 = vpop.eup %6513 }
0x1462   :  { %v2778_v13 = vmul.f32 %v6514_v28, %v2344_v5  ;;  %v6516_v24 = vpop.eup %6515  ;;  %v9139_v5 = vld [vmem:[#allocation34_spill] sm:$0xff]  ;;  %v9140_v28 = vld [vmem:[#allocation57_spill] sm:$0xff] }
0x1463   :  { %v2781_v44 = vsub.f32 1.0, %v6516_v24  ;;  %v2783_v11 = vmul.f32 %v6516_v24, %v8067_v32  ;;  %v9130_v32 = vld [vmem:[#allocation48_spill] sm:$0xff] }
0x1464   :  { %v2779_v27 = vadd.f32 %v2778_v13, %v2763_v17  ;;  %v9128_v13 = vld [vmem:[#allocation35_spill] sm:$0xff]  ;;  %v9133_v17 = vld [vmem:[#allocation29_spill] sm:$0xff]  ;;  %v9142_v24 = vld [vmem:[#allocation60_spill] sm:$0xff] }
0x1466   :  { %6517 = vtanh.f32 %v2779_v27  ;;  %v9141_v27 = vld [vmem:[#allocation36_spill] sm:$0xff] }
0x1470   :  { %v6518_v41 = vpop.eup %6517 }
0x1471   :  { %v2782_v9 = vmul.f32 %v6518_v41, %v2781_v44  ;;  %v9143_v44 = vld [vmem:[#allocation37_spill] sm:$0xff] }
0x1472   :  { %v9144_v41 = vld [vmem:[#allocation61_spill] sm:$0xff] }
0x1473   :  { %v8257_v53 = vadd.f32 %v2783_v11, %v2782_v9  ;;  %v9145_v9 = vld [vmem:[#allocation38_spill] sm:$0xff]  ;;  %v9146_v11 = vld [vmem:[#allocation64_spill] sm:$0xff] }
0x1475   :  { %4977 = vmatmul.mubr.f32.vlgmr.msra.gmra.mrb[20].mxu0 %v8257_v53  ;;  %2970 = vmatmul.mubr.f32.vlgmr.msra.gmra.mrb[20].mxu1 %v8257_v53 }
0x1476   :  { %6018 = vmatpush1.bf16.msra.mxu0 %v6928_v39  ;;  %6114 = vmatpush3.bf16.msra.mxu1 %v7013_v30 }
0x1477   :  { %6020 = vmatprep.subr.bf16.mxu0 %v6930_v42  ;;  %6116 = vmatprep.subr.bf16.mxu1 %v7038_v54 }
0x147a   :  { %6022 = vmatpush1.bf16.msra.mxu0 %v6946_v47  ;;  %6118 = vmatpush3.bf16.msra.mxu1 %v7040_v55 }
0x147b   :  { %6024 = vmatprep.subr.bf16.mxu0 %v6949_v52  ;;  %6120 = vmatprep.subr.bf16.mxu1 %v7058_v2 }
0x147e   :  { %6026 = vmatpush1.bf16.msra.mxu0 %v6964_v58  ;;  %6122 = vmatpush3.bf16.msra.mxu1 %v9128_v13  ;;  %v9172_v13 = vld [vmem:[#allocation22_spill] sm:$0xff] }
0x147f   :  { %6028 = vmatprep.subr.bf16.mxu0 %v9129_v40  ;;  %6124 = vmatprep.subr.bf16.mxu1 %v9130_v32  ;;  %v9171_v32 = vld [vmem:[#allocation68_spill] sm:$0xff] }
0x1482   :  { %6030 = vmatpush1.bf16.msra.mxu0 %v9131_v4  ;;  %6126 = vmatpush3.bf16.msra.mxu1 %v9132_v29 }
0x1483   :  { %6032 = vmatprep.subr.bf16.mxu0 %v9133_v17  ;;  %6128 = vmatprep.subr.bf16.mxu1 %v9134_v37  ;;  %v9167_v37 = vld [vmem:[#allocation18_spill] sm:$0xff] }
0x1486   :  { %6034 = vmatpush1.bf16.msra.mxu0 %v9135_v25  ;;  %6130 = vmatpush3.bf16.msra.mxu1 %v9136_v46  ;;  %v9147_v46 = vld [vmem:[#allocation39_spill] sm:$0xff] }
0x1487   :  { %6036 = vmatprep.subr.bf16.mxu0 %v9137_v8  ;;  %6132 = vmatprep.subr.bf16.mxu1 %v9138_v20  ;;  %v9148_v8 = vld [vmem:[#allocation65_spill] sm:$0xff]  ;;  %v9149_v20 = vld [vmem:[#allocation40_spill] sm:$0xff]  ;;  %v9166_v25 = vld [vmem:[#allocation67_spill] sm:$0xff] }
0x148a   :  { %6038 = vmatpush1.bf16.msra.mxu0 %v9139_v5  ;;  %6134 = vmatpush3.bf16.msra.mxu1 %v9140_v28  ;;  %v9150_v28 = vld [vmem:[#allocation41_spill] sm:$0xff]  ;;  %v9160_v5 = vld [vmem:[#allocation55_spill] sm:$0xff] }
0x148b   :  { %6040 = vmatprep.subr.bf16.mxu0 %v9141_v27  ;;  %6136 = vmatprep.subr.bf16.mxu1 %v9142_v24  ;;  %v9151_v27 = vld [vmem:[#allocation42_spill] sm:$0xff]  ;;  %v9152_v24 = vld [vmem:[#allocation43_spill] sm:$0xff] }
0x148e   :  { %6042 = vmatpush1.bf16.msra.mxu0 %v9143_v44  ;;  %6138 = vmatpush3.bf16.msra.mxu1 %v9144_v41  ;;  %v9153_v44 = vld [vmem:[#allocation44_spill] sm:$0xff]  ;;  %v9154_v41 = vld [vmem:[#allocation45_spill] sm:$0xff] }
0x148f   :  { %6044 = vmatprep.subr.bf16.mxu0 %v9145_v9  ;;  %6140 = vmatprep.subr.bf16.mxu1 %v9146_v11  ;;  %v9155_v9 = vld [vmem:[#allocation46_spill] sm:$0xff]  ;;  %v9156_v11 = vld [vmem:[#allocation47_spill] sm:$0xff] }
0x1492   :  { %6046 = vmatpush1.bf16.msra.mxu0 %v9147_v46  ;;  %6142 = vmatpush3.bf16.msra.mxu1 %v9148_v8  ;;  %v9157_v46 = vld [vmem:[#allocation50_spill] sm:$0xff]  ;;  %v9158_v8 = vld [vmem:[#allocation51_spill] sm:$0xff] }
0x1493   :  { %6048 = vmatprep.subr.bf16.mxu0 %v9149_v20  ;;  %6143 = vmatprep.subr.bf16.mxu1 %v8904_v63  ;;  %v9159_v20 = vld [vmem:[#allocation54_spill] sm:$0xff] }
0x1496   :  { %6050 = vmatpush1.bf16.msra.mxu0 %v9150_v28  ;;  %v9161_v28 = vld [vmem:[#allocation58_spill] sm:$0xff] }
0x1497   :  { %6052 = vmatprep.subr.bf16.mxu0 %v9151_v27  ;;  %v9162_v27 = vld [vmem:[#allocation59_spill] sm:$0xff] }
0x149a   :  { %6054 = vmatpush1.bf16.msra.mxu0 %v9152_v24  ;;  %v9163_v24 = vld [vmem:[#allocation62_spill] sm:$0xff] }
0x149b   :  { %6056 = vmatprep.subr.bf16.mxu0 %v9153_v44  ;;  %v9164_v44 = vld [vmem:[#allocation63_spill] sm:$0xff] }
0x149e   :  { %6058 = vmatpush1.bf16.msra.mxu0 %v9154_v41  ;;  %v9165_v41 = vld [vmem:[#allocation66_spill] sm:$0xff] }
0x149f   :  { %6060 = vmatprep.subr.bf16.mxu0 %v9155_v9 }
0x14a2   :  { %6062 = vmatpush1.bf16.msra.mxu0 %v9156_v11 }
0x14a3   :  { %6064 = vmatprep.subr.bf16.mxu0 %v9157_v46 }
0x14a6   :  { %6066 = vmatpush1.bf16.msra.mxu0 %v9158_v8 }
0x14a7   :  { %6068 = vmatprep.subr.bf16.mxu0 %v9159_v20 }
0x14aa   :  { %6070 = vmatpush1.bf16.msra.mxu0 %v9160_v5 }
0x14ab   :  { %6072 = vmatprep.subr.bf16.mxu0 %v9161_v28 }
0x14ae   :  { %6074 = vmatpush1.bf16.msra.mxu0 %v9162_v27 }
0x14af   :  { %6076 = vmatprep.subr.bf16.mxu0 %v9163_v24 }
0x14b2   :  { %6078 = vmatpush1.bf16.msra.mxu0 %v9164_v44  ;;  %v9168_v44 = vld [vmem:[#allocation19_spill] sm:$0xff] }
0x14b3   :  { %6080 = vmatprep.subr.bf16.mxu0 %v9165_v41 }
0x1548   :  { %v2851_v9 = vpop.f32.mrb[20].mxu0  ;;  %v2971_v11 = vpop.f32.mrb[20].mxu1 }
0x1549   :  { %v2852_v46 = vadd.f32 %v9166_v25, %v2851_v9  ;;  %v2984_v8 = vrot.slane %v2971_v11, %v9167_v37  ;;  %v4978_v17 = vpop.f32.mrb[21].mxu0  ;;  %v8311_v20 = vpop.f32.mrb[21].mxu1  ;;  %v9169_v25 = vld [vmem:[#allocation20_spill] sm:$0xff]  ;;  %v9170_v11 = vld [vmem:[#allocation21_spill] sm:$0xff] }
0x154b   :  { %v2862_v5 = vrot.slane %v2852_v46, %v9167_v37  ;;  %v2985_v28 = vcombine.high %v2984_v8, %v2984_v8  ;;  %v2992_v27 = vrot.slane %v2984_v8, %v9167_v37 }
0x154d   :  { %v2863_v29 = vcombine.high %v2862_v5, %v2862_v5  ;;  %4216 = vst.sshfl [vmem:[%s8630_s10 + $0x3] sm:$0x1 pattern:$0x73625140] %v2862_v5  ;;  %v2999_v41 = vrot.slane %v2985_v28, %v9167_v37  ;;  %v3003_v24 = vrot.slane %v2992_v27, %v9168_v44 }
0x154f   :  { %4217 = vst.sshfl [vmem:[%s8630_s10 + $0xb] sm:$0x1 pattern:$0x73625140] %v2863_v29  ;;  %v3007_v17 = vrot.slane %v2999_v41, %v9168_v44  ;;  %v3010_v9 = vadd.f32 %v3003_v24, %v9169_v25 }
0x1551   :  { %v3011_v4 = vadd.f32 %v3007_v17, %v9170_v11  ;;  %6519 = vtanh.f32 %v3010_v9 }
0x1553   :  { %6521 = vtanh.f32 %v3011_v4 }
0x155b   :  { %v6520_v8 = vpop.eup %6519 }
0x155c   :  { %v3014_v40 = vmul.f32 %v9171_v32, %v6520_v8  ;;  %v9173_v8 = vld [vmem:[#allocation23_spill] sm:$0xff] }
0x155d   :  { %v6522_v5 = vpop.eup %6521 }
0x155e   :  { %3016 = vadd.xlane.f32.xlu1 %v3014_v40  ;;  %v3015_v28 = vmul.f32 %v9171_v32, %v6522_v5 }
0x1562   :  { %3018 = vadd.xlane.f32.xlu1 %v3015_v28 }
0x15eb   :  { %v3017_v27 = vpop.xlane.xlu1 %3016 }
0x15ec   :  { %v3025_v29 = vrot.slane %v3017_v27, %v9172_v13 }
0x15ef   :  { %v3019_v37 = vpop.xlane.xlu1 %3018 }
0x15f0   :  { %v3029_v41 = vrot.slane %v3019_v37, %v9172_v13 }
0x15f2   :  { %v3030_v24 = vsel %vm477_vm0, %v3029_v41, %v3025_v29  ;;  %v2882_v29 = vsel %vm985_vm4, %v2852_v46, -inf }
0x15f3   :  { %v3032_v17 = vsel %vm480_vm1, %v3030_v24, -inf }
0x15f4   :  { %3033 = vmax.xlane.f32.xlu1 %v3032_v17 }
0x1681   :  { %v3034_v4 = vpop.xlane.xlu1 %3033 }
0x1682   :  { %v3039_v9 = vrot.slane %v3034_v4, %v9168_v44  ;;  %v3043_v11 = vrot.slane %v3034_v4, %v9173_v8 }
0x1684   :  { %v3046_v40 = vsub.f32 %v3017_v27, %v3039_v9  ;;  %v3047_v25 = vsub.f32 %v3019_v37, %v3043_v11 }
0x1686   :  { %v3048_v32 = vmul.f32 1.442695, %v3046_v40  ;;  %v3050_v5 = vmul.f32 1.442695, %v3047_v25 }
0x1688   :  { %6523 = vpow2.f32 %v3048_v32 }
0x1689   :  { %6525 = vpow2.f32 %v3050_v5 }
0x1692   :  { %v6524_v28 = vpop.eup %6523 }
0x1693   :  { %v6526_v58 = vpop.eup %6525  ;;  %3055 = vperm.xlu1 %6429, %v6524_v28  }
0x1694   :  { %3058 = vperm.xlu0 %6430, %v6526_v58  }
0x16b7   :  { %2883 = vmax.xlane.f32.xlu1 %v2882_v29 }
0x1712   :  { %v3056_v41 = vpop.permute.xlu1 %3055 }
0x1713   :  { %v3059_v24 = vpop.permute.xlu0 %3058  ;;  %v3063_v17 = vrot.slane %v3056_v41, %v9172_v13 }
0x1714   :  { %v3067_v2 = vrot.slane %v3059_v24, %v9172_v13  ;;  %v9174_v13 = vld [vmem:[#allocation69_spill] sm:$0xff] }
0x1716   :  { %v3068_v27 = vsel %vm477_vm0, %v3067_v2, %v3063_v17 }
0x1717   :  { %v3070_v37 = vsel %vm480_vm1, %v3068_v27, 0.0 }
0x1718   :  { %3071 = vadd.xlane.f32.xlu0 %v3070_v37 }
0x1744   :  { %v2884_v25 = vpop.xlane.xlu1 %2883 }
0x1745   :  { %vm2885_vm14 = vcmp.eq.f32.partialorder %v2852_v46, %v2884_v25 }
0x1746   :  { %v2886_v11 = vsel %vm2885_vm14, %v6883_v48, 128 }
0x1747   :  { %v2887_v4 = vsel %vm985_vm4, %v2886_v11, 2147483647 }
0x1748   :  { %v2889_v9 = vshra.s32 %v2887_v4, 16  ;;  %v2888_v46 = vand.u32 65535, %v2887_v4 }
0x174a   :  { %v2891_v40 = vcvt.s32.f32 %v2889_v9  ;;  %v2890_v37 = vcvt.s32.f32 %v2888_v46 }
0x174c   :  { %2892 = vmin.xlane.f32.xlu1 %v2891_v40 }
0x17a5   :  { %v3072_v32 = vpop.xlane.xlu0 %3071 }
0x17a6   :  { %v3077_v5 = vrot.slane %v3072_v32, %v9168_v44  ;;  %v3081_v29 = vrot.slane %v3072_v32, %v9173_v8 }
0x17a8   :  { %6527 = vrcp.f32 %v3077_v5 }
0x17a9   :  { %6529 = vrcp.f32 %v3081_v29 }
0x17b2   :  { %v6528_v2 = vpop.eup %6527 }
0x17b3   :  { %v6530_v41 = vpop.eup %6529  ;;  %v3085_v24 = vmul.f32 %v6528_v2, %v6524_v28 }
0x17b4   :  { %v3087_v17 = vmul.f32 %v6530_v41, %v6526_v58 }
0x17b5   :  { %3090 = vperm.xlu1 %6429, %v3085_v24  }
0x17b6   :  { %3095 = vperm.xlu0 %6430, %v3087_v17  }
0x17d9   :  { %v2893_v27 = vpop.xlane.xlu1 %2892 }
0x17da   :  { %vm2894_vm15 = vcmp.eq.f32.partialorder %v2891_v40, %v2893_v27 }
0x17db   :  { %v2895_v25 = vsel %vm2894_vm15, %v2890_v37, inf  ;;  %v2899_v37 = vcvt.f32.s32 %v2893_v27  ;;  %v9181_v27 = vld [vmem:[#allocation9_spill] sm:$0xff] }
0x17dc   :  { %2896 = vmin.xlane.f32.xlu1 %v2895_v25 }
0x17dd   :  { %v2900_v25 = vshll.u32 %v2899_v37, 16  ;;  %v9195_v37 = vld [vmem:[#allocation30_spill] sm:$0xff] }
0x1834   :  { %v3091_v11 = vpop.permute.xlu1 %3090 }
0x1835   :  { %v3096_v9 = vpop.permute.xlu0 %3095  ;;  %v3098_v44 = vmul.f32 %v9174_v13, %v3091_v11 }
0x1836   :  { %v3099_v32 = vmul.f32 %v8172_v61, %v3096_v9  ;;  %v9182_v9 = vld [vmem:[#allocation10_spill] sm:$0xff] }
0x1837   :  { %v3100_v5 = vrot.slane %v3098_v44, 4 }
0x1838   :  { %v3106_v29 = vrot.slane %v3099_v32, 4 }
0x1839   :  { %v3101_v8 = vadd.f32 %v3100_v5, %v3098_v44  ;;  %v9177_v44 = vld [vmem:[#allocation85_spill] sm:$0xff]  ;;  %v9184_v5 = vld [vmem:[#allocation11_spill] sm:$0xff] }
0x183a   :  { %v3107_v52 = vadd.f32 %v3106_v29, %v3099_v32  ;;  %v9183_v32 = vld [vmem:[#allocation87_spill] sm:$0xff]  ;;  %v9185_v29 = vld [vmem:[#allocation12_spill] sm:$0xff] }
0x183b   :  { %v3102_v28 = vrot.slane %v3101_v8, 2 }
0x183c   :  { %v3108_v58 = vrot.slane %v3107_v52, 2 }
0x183d   :  { %v3103_v2 = vadd.f32 %v3102_v28, %v3101_v8  ;;  %v9180_v8 = vld [vmem:[#allocation86_spill] sm:$0xff]  ;;  %v9186_v28 = vld [vmem:[#allocation88_spill] sm:$0xff] }
0x183e   :  { %v3109_v41 = vadd.f32 %v3108_v58, %v3107_v52  ;;  %v9175_v52 = vld [vmem:[#allocation5_spill] sm:$0xff] }
0x183f   :  { %v3104_v4 = vrot.slane %v3103_v2, 1  ;;  %v9187_v58 = vld [vmem:[#allocation13_spill] sm:$0xff] }
0x1840   :  { %v3110_v24 = vrot.slane %v3109_v41, 1 }
0x1841   :  { %v3105_v17 = vadd.f32 %v3104_v4, %v3103_v2  ;;  %v9188_v2 = vld [vmem:[#allocation14_spill] sm:$0xff]  ;;  %v9190_v4 = vld [vmem:[#allocation15_spill] sm:$0xff] }
0x1842   :  { %v3111_v40 = vadd.f32 %v3110_v24, %v3109_v41  ;;  %v9189_v41 = vld [vmem:[#allocation89_spill] sm:$0xff]  ;;  %v9191_v24 = vld [vmem:[#allocation16_spill] sm:$0xff] }
0x1844   :  { %v3114_v46 = vsel %vm477_vm0, %v3111_v40, %v3105_v17  ;;  %v9192_v17 = vld [vmem:[#allocation90_spill] sm:$0xff]  ;;  %v9193_v40 = vld [vmem:[#allocation17_spill] sm:$0xff] }
0x1845   :  { %3180 = vmatprep.mubr.f32.mxu0 %v3114_v46  ;;  %3322 = vmatprep.mubr.f32.mxu1 %v3114_v46  ;;  %v9194_v46 = vld [vmem:[#allocation24_spill] sm:$0xff] }
0x1869   :  { %v2897_v13 = vpop.xlane.xlu1 %2896 }
0x186a   :  { %v2898_v61 = vcvt.f32.s32 %v2897_v13 }
0x186c   :  { %v2901_v11 = vadd.s32 %v2900_v25, %v2898_v61 }
0x186e   :  { %vm2902_vm2 = vcmp.eq.s32.totalorder %v6883_v48, %v2901_v11  ;;  %v9196_v11 = vld [vmem:[#allocation91_spill] sm:$0xff] }
0x186f   :  { %4219 = vmatmul.mubr.msk.f32.vlgmr.msra.gmra.mrb[22].mxu0 %vm2902_vm2, %v8960_v12  ;;  %4220 = vmatmul.mubr.msk.f32.vlgmr.msra.gmra.mrb[22].mxu1 %vm2902_vm2, %v8960_v12 }
0x1870   :  { %6082 = vmatpush1.bf16.msra.mxu0 %v7375_v45  ;;  %6145 = vmatpush3.bf16.msra.mxu1 %v7377_v15 }
0x1871   :  { %6084 = vmatprep.subr.bf16.mxu0 %v7383_v35  ;;  %6146 = vmatprep.subr.bf16.mxu1 %v8904_v63 }
0x1872   :  { %3251 = vmatprep.mubr.f32.mxu0 %v8906_v36  ;;  %5011 = vmatprep.mubr.msk.f32.mxu1 %vm6589_vm3, %v8906_v36 }
0x1874   :  { %6086 = vmatpush1.bf16.msra.mxu0 %v8961_v26  ;;  %6148 = vmatpush3.bf16.msra.mxu1 %v8962_v62 }
0x1875   :  { %6088 = vmatprep.subr.bf16.mxu0 %v8963_v56  ;;  %6149 = vmatprep.subr.bf16.mxu1 %v8904_v63 }
0x1878   :  { %6090 = vmatpush1.bf16.msra.mxu0 %v8964_v10  ;;  %6151 = vmatpush3.bf16.msra.mxu1 %v8965_v7 }
0x1879   :  { %6092 = vmatprep.subr.bf16.mxu0 %v8966_v51  ;;  %6152 = vmatprep.subr.bf16.mxu1 %v8904_v63 }
0x187c   :  { %6094 = vmatpush1.bf16.msra.mxu0 %v8967_v6  ;;  %6154 = vmatpush3.bf16.msra.mxu1 %v8968_v31 }
0x187d   :  { %6096 = vmatprep.subr.bf16.mxu0 %v8969_v60  ;;  %6155 = vmatprep.subr.bf16.mxu1 %v8904_v63 }
0x1880   :  { %6098 = vmatpush1.bf16.msra.mxu0 %v8970_v23  ;;  %6157 = vmatpush3.bf16.msra.mxu1 %v8971_v0 }
0x1881   :  { %6100 = vmatprep.subr.bf16.mxu0 %v8972_v33  ;;  %6158 = vmatprep.subr.bf16.mxu1 %v8904_v63 }
0x1884   :  { %6102 = vmatpush1.bf16.msra.mxu0 %v8973_v43  ;;  %6160 = vmatpush3.bf16.msra.mxu1 %v7521_v57 }
0x1885   :  { %6104 = vmatprep.subr.bf16.mxu0 %v7528_v34  ;;  %6161 = vmatprep.subr.bf16.mxu1 %v8904_v63 }
0x1888   :  { %6106 = vmatpush1.bf16.msra.mxu0 %v7547_v50  ;;  %6163 = vmatpush3.bf16.msra.mxu1 %v7549_v1 }
0x1889   :  { %6108 = vmatprep.subr.bf16.mxu0 %v9032_v18  ;;  %6164 = vmatprep.subr.bf16.mxu1 %v8904_v63 }
0x188c   :  { %6110 = vmatpush1.bf16.msra.mxu0 %v9033_v38  ;;  %6166 = vmatpush3.bf16.msra.mxu1 %v9034_v16 }
0x188d   :  { %6167 = vmatprep.subr.bf16.mxu1 %v8904_v63  ;;  %6192 = vmatprep.subr.bf16.mxu0 %v9035_v3  ;;  %v9176_v3 = vld [vmem:[#allocation6_spill] sm:$0xff] }
0x188f   :  { %3252 = vmatmul.mubr.f32.vlgmr.msra.gmra.mrb[22].mxu0 %v8257_v53  ;;  %5012 = vmatmul.mubr.f32.vlgmr.msra.gmra.mrb[24].mxu1 %v8257_v53 }
0x1890   :  { %6169 = vmatpush3.bf16.msra.mxu1 %v9103_v21  ;;  %6194 = vmatpush1.bf16.msra.mxu0 %v9104_v49  ;;  %v9178_v49 = vld [vmem:[#allocation7_spill] sm:$0xff] }
0x1891   :  { %6170 = vmatprep.subr.bf16.mxu1 %v8904_v63  ;;  %6196 = vmatprep.subr.bf16.mxu0 %v9105_v22  ;;  %v9179_v22 = vld [vmem:[#allocation8_spill] sm:$0xff] }
0x1892   :  { %5046 = vmatprep.mubr.msk.f32.mxu1 %vm6589_vm3, %v8906_v36  ;;  %3601 = vmatprep.mubr.f32.mxu0 %v8906_v36 }
0x1894   :  { %6172 = vmatpush3.bf16.msra.mxu1 %v9106_v19  ;;  %6198 = vmatpush1.bf16.msra.mxu0 %v9175_v52 }
0x1895   :  { %6173 = vmatprep.subr.bf16.mxu1 %v8904_v63  ;;  %6200 = vmatprep.subr.bf16.mxu0 %v9176_v3 }
0x1898   :  { %6175 = vmatpush3.bf16.msra.mxu1 %v9177_v44  ;;  %6202 = vmatpush1.bf16.msra.mxu0 %v9178_v49 }
0x1899   :  { %6176 = vmatprep.subr.bf16.mxu1 %v8904_v63  ;;  %6204 = vmatprep.subr.bf16.mxu0 %v9179_v22 }
0x189c   :  { %6178 = vmatpush3.bf16.msra.mxu1 %v9180_v8  ;;  %6206 = vmatpush1.bf16.msra.mxu0 %v9181_v27 }
0x189d   :  { %6179 = vmatprep.subr.bf16.mxu1 %v8904_v63  ;;  %6208 = vmatprep.subr.bf16.mxu0 %v9182_v9 }
0x18a0   :  { %6181 = vmatpush3.bf16.msra.mxu1 %v9183_v32  ;;  %6210 = vmatpush1.bf16.msra.mxu0 %v9184_v5 }
0x18a1   :  { %6182 = vmatprep.subr.bf16.mxu1 %v8904_v63  ;;  %6212 = vmatprep.subr.bf16.mxu0 %v9185_v29 }
0x18a4   :  { %6184 = vmatpush3.bf16.msra.mxu1 %v9186_v28  ;;  %6214 = vmatpush1.bf16.msra.mxu0 %v9187_v58 }
0x18a5   :  { %6185 = vmatprep.subr.bf16.mxu1 %v8904_v63  ;;  %6216 = vmatprep.subr.bf16.mxu0 %v9188_v2 }
0x18a8   :  { %6187 = vmatpush3.bf16.msra.mxu1 %v9189_v41  ;;  %6218 = vmatpush1.bf16.msra.mxu0 %v9190_v4 }
0x18a9   :  { %6188 = vmatprep.subr.bf16.mxu1 %v8904_v63  ;;  %6220 = vmatprep.subr.bf16.mxu0 %v9191_v24 }
0x18ac   :  { %6190 = vmatpush3.bf16.msra.mxu1 %v9192_v17  ;;  %6222 = vmatpush1.bf16.msra.mxu0 %v9193_v40 }
0x18ad   :  { %6224 = vmatprep.subr.bf16.mxu1 %v9194_v46  ;;  %6320 = vmatprep.subr.bf16.mxu0 %v9195_v37  ;;  %v8427_v37 = vld [vmem:[%s8628_s7] ss:$0 sm:$0xff] }
0x1942   :  { %v4558_v13 = vpop.f32.mrb[22].mxu1 }
0x1943   :  { %v4559_v25 = vpop.f32.mrb[23].mxu1 }
0x1944   :  { %v4560_v61 = vadd.f32 %v4559_v25, %v4558_v13  ;;  %v2976_v13 = vadd.f32 %v8427_v37, %v8311_v20  ;;  %v9197_v20 = vld [vmem:[#allocation25_spill] sm:$0xff] }
0x1946   :  { %v3325_v52 = vadd.f32 %v4560_v61, %v9196_v11 }
0x1962   :  { %v3253_v3 = vpop.f32.mrb[22].mxu0  ;;  %v3394_v49 = vpop.f32.mrb[24].mxu1 }
0x1963   :  { %v6407_v22 = vadd.f32 %v3253_v3, %v7687_v59  ;;  %v3395_v27 = vadd.f32 %v3394_v49, %v3325_v52  ;;  %v3255_v9 = vpop.f32.mrb[23].mxu0  ;;  %v5013_v5 = vpop.f32.mrb[25].mxu1 }
0x1964   :  { %v6408_v58 = vadd.f32 %v3255_v9, %v7691_v14 }
0x1965   :  { %v4221_v29 = vmul.f32 -1.442695, %v6407_v22 }
0x1966   :  { %v4222_v2 = vmul.f32 -1.442695, %v6408_v58  ;;  %v9200_v58 = vld [vmem:[#allocation35_spill] sm:$0xff] }
0x1967   :  { %6531 = vpow2.f32 %v4221_v29 }
0x1968   :  { %6533 = vpow2.f32 %v4222_v2  ;;  %v9201_v2 = vld [vmem:[#allocation27_spill] sm:$0xff] }
0x1971   :  { %v6532_v4 = vpop.eup %6531 }
0x1972   :  { %v3401_v24 = vadd.f32 1.0, %v6532_v4  ;;  %v6534_v40 = vpop.eup %6533  ;;  %v9208_v4 = vld [vmem:[#allocation53_spill] sm:$0xff] }
0x1973   :  { %v3407_v46 = vadd.f32 1.0, %v6534_v40  ;;  %v9210_v40 = vld [vmem:[#allocation56_spill] sm:$0xff] }
0x1974   :  { %6535 = vrcp.f32 %v3401_v24  ;;  %v9209_v24 = vld [vmem:[#allocation32_spill] sm:$0xff] }
0x1975   :  { %6537 = vrcp.f32 %v3407_v46  ;;  %v9211_v46 = vld [vmem:[#allocation34_spill] sm:$0xff] }
0x197e   :  { %v6536_v25 = vpop.eup %6535 }
0x197f   :  { %v3410_v61 = vmul.f32 %v6536_v25, %v2976_v13  ;;  %v6538_v3 = vpop.eup %6537  ;;  %v9212_v13 = vld [vmem:[#allocation57_spill] sm:$0xff]  ;;  %v9213_v25 = vld [vmem:[#allocation36_spill] sm:$0xff] }
0x1980   :  { %v3413_v49 = vsub.f32 1.0, %v6538_v3  ;;  %v3415_v5 = vmul.f32 %v6538_v3, %v8257_v53  ;;  %v9198_v53 = vld [vmem:[#allocation33_spill] sm:$0xff] }
0x1981   :  { %v3411_v52 = vadd.f32 %v3410_v61, %v3395_v27  ;;  %v9199_v27 = vld [vmem:[#allocation26_spill] sm:$0xff]  ;;  %v9214_v61 = vld [vmem:[#allocation60_spill] sm:$0xff]  ;;  %v9216_v3 = vld [vmem:[#allocation61_spill] sm:$0xff] }
0x1983   :  { %6539 = vtanh.f32 %v3411_v52  ;;  %v9215_v52 = vld [vmem:[#allocation37_spill] sm:$0xff] }
0x198d   :  { %v6540_v22 = vpop.eup %6539 }
0x198e   :  { %v3414_v9 = vmul.f32 %v6540_v22, %v3413_v49  ;;  %v9217_v49 = vld [vmem:[#allocation38_spill] sm:$0xff]  ;;  %v9218_v22 = vld [vmem:[#allocation64_spill] sm:$0xff] }
0x1990   :  { %v8432_v29 = vadd.f32 %v3415_v5, %v3414_v9  ;;  %v9219_v9 = vld [vmem:[#allocation39_spill] sm:$0xff]  ;;  %v9220_v5 = vld [vmem:[#allocation65_spill] sm:$0xff] }
0x1992   :  { %5047 = vmatmul.mubr.f32.vlgmr.msra.gmra.mrb[26].mxu1 %v8432_v29  ;;  %3602 = vmatmul.mubr.f32.vlgmr.msra.gmra.mrb[24].mxu0 %v8432_v29 }
0x1993   :  { %6226 = vmatpush1.bf16.msra.mxu1 %v6928_v39  ;;  %6322 = vmatpush3.bf16.msra.mxu0 %v7013_v30  ;;  %v9202_v39 = vld [vmem:[#allocation48_spill] sm:$0xff] }
0x1994   :  { %6228 = vmatprep.subr.bf16.mxu1 %v6930_v42  ;;  %6324 = vmatprep.subr.bf16.mxu0 %v7038_v54  ;;  %v9203_v30 = vld [vmem:[#allocation28_spill] sm:$0xff]  ;;  %v9204_v42 = vld [vmem:[#allocation49_spill] sm:$0xff] }
0x1995   :  { %v9205_v54 = vld [vmem:[#allocation29_spill] sm:$0xff] }
0x1997   :  { %6230 = vmatpush1.bf16.msra.mxu1 %v6946_v47  ;;  %6326 = vmatpush3.bf16.msra.mxu0 %v7040_v55  ;;  %v9206_v47 = vld [vmem:[#allocation52_spill] sm:$0xff]  ;;  %v9207_v55 = vld [vmem:[#allocation31_spill] sm:$0xff] }
0x1998   :  { %6232 = vmatprep.subr.bf16.mxu1 %v9197_v20  ;;  %6328 = vmatprep.subr.bf16.mxu0 %v9198_v53  ;;  %v9221_v20 = vld [vmem:[#allocation40_spill] sm:$0xff]  ;;  %v9222_v53 = vld [vmem:[#allocation41_spill] sm:$0xff] }
0x199b   :  { %6234 = vmatpush1.bf16.msra.mxu1 %v9199_v27  ;;  %6330 = vmatpush3.bf16.msra.mxu0 %v9200_v58  ;;  %v9223_v27 = vld [vmem:[#allocation42_spill] sm:$0xff]  ;;  %v9224_v58 = vld [vmem:[#allocation43_spill] sm:$0xff] }
0x199c   :  { %6236 = vmatprep.subr.bf16.mxu1 %v9201_v2  ;;  %6332 = vmatprep.subr.bf16.mxu0 %v9202_v39  ;;  %v9225_v2 = vld [vmem:[#allocation44_spill] sm:$0xff]  ;;  %v9226_v39 = vld [vmem:[#allocation45_spill] sm:$0xff] }
0x199f   :  { %6238 = vmatpush1.bf16.msra.mxu1 %v9203_v30  ;;  %6334 = vmatpush3.bf16.msra.mxu0 %v9204_v42  ;;  %v9227_v30 = vld [vmem:[#allocation46_spill] sm:$0xff]  ;;  %v9228_v42 = vld [vmem:[#allocation47_spill] sm:$0xff] }
0x19a0   :  { %6240 = vmatprep.subr.bf16.mxu1 %v9205_v54  ;;  %6336 = vmatprep.subr.bf16.mxu0 %v9206_v47  ;;  %v9229_v54 = vld [vmem:[#allocation50_spill] sm:$0xff]  ;;  %v9230_v47 = vld [vmem:[#allocation51_spill] sm:$0xff] }
0x19a3   :  { %6242 = vmatpush1.bf16.msra.mxu1 %v9207_v55  ;;  %6338 = vmatpush3.bf16.msra.mxu0 %v9208_v4  ;;  %v9231_v55 = vld [vmem:[#allocation54_spill] sm:$0xff]  ;;  %v9232_v4 = vld [vmem:[#allocation55_spill] sm:$0xff] }
0x19a4   :  { %6244 = vmatprep.subr.bf16.mxu1 %v9209_v24  ;;  %6340 = vmatprep.subr.bf16.mxu0 %v9210_v40  ;;  %v9233_v24 = vld [vmem:[#allocation58_spill] sm:$0xff]  ;;  %v9234_v40 = vld [vmem:[#allocation59_spill] sm:$0xff] }
0x19a7   :  { %6246 = vmatpush1.bf16.msra.mxu1 %v9211_v46  ;;  %6342 = vmatpush3.bf16.msra.mxu0 %v9212_v13  ;;  %v9235_v46 = vld [vmem:[#allocation62_spill] sm:$0xff]  ;;  %v9236_v13 = vld [vmem:[#allocation63_spill] sm:$0xff] }
0x19a8   :  { %6248 = vmatprep.subr.bf16.mxu1 %v9213_v25  ;;  %6344 = vmatprep.subr.bf16.mxu0 %v9214_v61  ;;  %v9237_v25 = vld [vmem:[#allocation66_spill] sm:$0xff] }
0x19ab   :  { %6250 = vmatpush1.bf16.msra.mxu1 %v9215_v52  ;;  %6346 = vmatpush3.bf16.msra.mxu0 %v9216_v3  ;;  %v8487_v3 = vld [vmem:[%s8629_s9] ss:$0 sm:$0xff] }
0x19ac   :  { %6252 = vmatprep.subr.bf16.mxu1 %v9217_v49  ;;  %6348 = vmatprep.subr.bf16.mxu0 %v9218_v22  ;;  %v9238_v22 = vld [vmem:[#allocation18_spill] sm:$0xff] }
0x19af   :  { %6254 = vmatpush1.bf16.msra.mxu1 %v9219_v9  ;;  %6350 = vmatpush3.bf16.msra.mxu0 %v9220_v5 }
0x19b0   :  { %6256 = vmatprep.subr.bf16.mxu1 %v9221_v20  ;;  %6351 = vmatprep.subr.bf16.mxu0 %v8904_v63 }
0x19b3   :  { %6258 = vmatpush1.bf16.msra.mxu1 %v9222_v53 }
0x19b4   :  { %6260 = vmatprep.subr.bf16.mxu1 %v9223_v27 }
0x19b7   :  { %6262 = vmatpush1.bf16.msra.mxu1 %v9224_v58 }
0x19b8   :  { %6264 = vmatprep.subr.bf16.mxu1 %v9225_v2 }
0x19bb   :  { %6266 = vmatpush1.bf16.msra.mxu1 %v9226_v39 }
0x19bc   :  { %6268 = vmatprep.subr.bf16.mxu1 %v9227_v30  ;;  %v9239_v30 = vld [vmem:[#allocation19_spill] sm:$0xff] }
0x19bf   :  { %6270 = vmatpush1.bf16.msra.mxu1 %v9228_v42 }
0x19c0   :  { %6272 = vmatprep.subr.bf16.mxu1 %v9229_v54 }
0x19c3   :  { %6274 = vmatpush1.bf16.msra.mxu1 %v9230_v47  ;;  %v9240_v47 = vld [vmem:[#allocation20_spill] sm:$0xff] }
0x19c4   :  { %6276 = vmatprep.subr.bf16.mxu1 %v9231_v55 }
0x19c7   :  { %6278 = vmatpush1.bf16.msra.mxu1 %v9232_v4  ;;  %v9241_v4 = vld [vmem:[#allocation21_spill] sm:$0xff] }
0x19c8   :  { %6280 = vmatprep.subr.bf16.mxu1 %v9233_v24 }
0x19cb   :  { %6282 = vmatpush1.bf16.msra.mxu1 %v9234_v40 }
0x19cc   :  { %6284 = vmatprep.subr.bf16.mxu1 %v9235_v46  ;;  %v6581_v46 = vld [vmem:[%s8624_s3] ss:$0 sm:$0xff] }
0x19cf   :  { %6286 = vmatpush1.bf16.msra.mxu1 %v9236_v13 }
0x19d0   :  { %6288 = vmatprep.subr.bf16.mxu1 %v9237_v25 }
0x1a65   :  { %v3483_v61 = vpop.f32.mrb[26].mxu1  ;;  %v3603_v52 = vpop.f32.mrb[24].mxu0 }
0x1a66   :  { %v3484_v49 = vadd.f32 %v8487_v3, %v3483_v61  ;;  %v3616_v9 = vrot.slane %v3603_v52, %v9238_v22  ;;  %v5048_v5 = vpop.f32.mrb[27].mxu1  ;;  %v8491_v20 = vpop.f32.mrb[25].mxu0 }
0x1a67   :  { %v9242_v5 = vld [vmem:[#allocation22_spill] sm:$0xff] }
0x1a68   :  { %v3494_v53 = vrot.slane %v3484_v49, %v9238_v22  ;;  %v3617_v27 = vcombine.high %v3616_v9, %v3616_v9  ;;  %v3624_v58 = vrot.slane %v3616_v9, %v9238_v22 }
0x1a6a   :  { %v3495_v2 = vcombine.high %v3494_v53, %v3494_v53  ;;  %4223 = vst.sshfl [vmem:[%s8630_s10 + $0x4] sm:$0x1 pattern:$0x73625140] %v3494_v53  ;;  %v3631_v39 = vrot.slane %v3617_v27, %v9238_v22  ;;  %v3635_v42 = vrot.slane %v3624_v58, %v9239_v30 }
0x1a6c   :  { %4224 = vst.sshfl [vmem:[%s8630_s10 + $0xc] sm:$0x1 pattern:$0x73625140] %v3495_v2  ;;  %v3639_v54 = vrot.slane %v3631_v39, %v9239_v30  ;;  %v3642_v55 = vadd.f32 %v3635_v42, %v9240_v47 }
0x1a6e   :  { %v3643_v24 = vadd.f32 %v3639_v54, %v9241_v4  ;;  %6541 = vtanh.f32 %v3642_v55  ;;  %v9243_v54 = vld [vmem:[#allocation23_spill] sm:$0xff] }
0x1a70   :  { %6543 = vtanh.f32 %v3643_v24 }
0x1a78   :  { %v6542_v40 = vpop.eup %6541 }
0x1a79   :  { %v3646_v13 = vmul.f32 %v6581_v46, %v6542_v40 }
0x1a7a   :  { %v6544_v25 = vpop.eup %6543 }
0x1a7b   :  { %3648 = vadd.xlane.f32.xlu0 %v3646_v13  ;;  %v3647_v61 = vmul.f32 %v6581_v46, %v6544_v25  ;;  %v3514_v25 = vsel %vm985_vm4, %v3484_v49, -inf }
0x1a7d   :  { %3650 = vadd.xlane.f32.xlu1 %v3647_v61 }
0x1b08   :  { %v3649_v52 = vpop.xlane.xlu0 %3648 }
0x1b09   :  { %v3657_v53 = vrot.slane %v3649_v52, %v9242_v5 }
0x1b0a   :  { %v3651_v9 = vpop.xlane.xlu1 %3650 }
0x1b0b   :  { %v3661_v27 = vrot.slane %v3651_v9, %v9242_v5 }
0x1b0d   :  { %v3662_v58 = vsel %vm477_vm0, %v3661_v27, %v3657_v53 }
0x1b0e   :  { %v3664_v2 = vsel %vm480_vm1, %v3662_v58, -inf }
0x1b0f   :  { %3665 = vmax.xlane.f32.xlu1 %v3664_v2 }
0x1b9c   :  { %v3666_v39 = vpop.xlane.xlu1 %3665 }
0x1b9d   :  { %v3671_v42 = vrot.slane %v3666_v39, %v9239_v30  ;;  %v3675_v47 = vrot.slane %v3666_v39, %v9243_v54 }
0x1b9f   :  { %v3678_v55 = vsub.f32 %v3649_v52, %v3671_v42  ;;  %v3679_v4 = vsub.f32 %v3651_v9, %v3675_v47 }
0x1ba1   :  { %v3680_v24 = vmul.f32 1.442695, %v3678_v55  ;;  %v3682_v40 = vmul.f32 1.442695, %v3679_v4 }
0x1ba3   :  { %6545 = vpow2.f32 %v3680_v24 }
0x1ba4   :  { %6547 = vpow2.f32 %v3682_v40 }
0x1bad   :  { %v6546_v46 = vpop.eup %6545 }
0x1bae   :  { %v6548_v13 = vpop.eup %6547  ;;  %3687 = vperm.xlu1 %6429, %v6546_v46  }
0x1baf   :  { %3690 = vperm.xlu0 %6430, %v6548_v13  }
0x1bd2   :  { %3515 = vmax.xlane.f32.xlu1 %v3514_v25 }
0x1c2d   :  { %v3688_v61 = vpop.permute.xlu1 %3687 }
0x1c2e   :  { %v3691_v53 = vpop.permute.xlu0 %3690  ;;  %v3695_v27 = vrot.slane %v3688_v61, %v9242_v5 }
0x1c2f   :  { %v3699_v58 = vrot.slane %v3691_v53, %v9242_v5 }
0x1c31   :  { %v3700_v52 = vsel %vm477_vm0, %v3699_v58, %v3695_v27 }
0x1c32   :  { %v3702_v9 = vsel %vm480_vm1, %v3700_v52, 0.0 }
0x1c33   :  { %3703 = vadd.xlane.f32.xlu0 %v3702_v9 }
0x1c5f   :  { %v3516_v2 = vpop.xlane.xlu1 %3515 }
0x1c60   :  { %vm3517_vm5 = vcmp.eq.f32.partialorder %v3484_v49, %v3516_v2 }
0x1c61   :  { %v3518_v39 = vsel %vm3517_vm5, %v6883_v48, 128 }
0x1c62   :  { %v3519_v42 = vsel %vm985_vm4, %v3518_v39, 2147483647 }
0x1c63   :  { %v3521_v47 = vshra.s32 %v3519_v42, 16  ;;  %v3520_v49 = vand.u32 65535, %v3519_v42 }
0x1c65   :  { %v3523_v55 = vcvt.s32.f32 %v3521_v47  ;;  %v3522_v58 = vcvt.s32.f32 %v3520_v49 }
0x1c67   :  { %3524 = vmin.xlane.f32.xlu1 %v3523_v55 }
0x1cc0   :  { %v3704_v4 = vpop.xlane.xlu0 %3703 }
0x1cc1   :  { %v3709_v24 = vrot.slane %v3704_v4, %v9239_v30  ;;  %v3713_v40 = vrot.slane %v3704_v4, %v9243_v54  ;;  %v6582_v30 = vld [vmem:[%s8622_s0] sm:$0xff] }
0x1cc3   :  { %6549 = vrcp.f32 %v3709_v24 }
0x1cc4   :  { %6551 = vrcp.f32 %v3713_v40 }
0x1ccd   :  { %v6550_v5 = vpop.eup %6549 }
0x1cce   :  { %v6552_v25 = vpop.eup %6551  ;;  %v3717_v61 = vmul.f32 %v6550_v5, %v6546_v46  ;;  %v6583_v46 = vld [vmem:[%s8622_s0 + $0x8] sm:$0xff] }
0x1ccf   :  { %v3719_v53 = vmul.f32 %v6552_v25, %v6548_v13 }
0x1cd0   :  { %3722 = vperm.xlu0 %6430, %v3717_v61  }
0x1cd1   :  { %3727 = vperm.xlu1 %6429, %v3719_v53  }
0x1cf4   :  { %v3525_v27 = vpop.xlane.xlu1 %3524 }
0x1cf5   :  { %vm3526_vm1 = vcmp.eq.f32.partialorder %v3523_v55, %v3525_v27 }
0x1cf6   :  { %v3527_v52 = vsel %vm3526_vm1, %v3522_v58, inf }
0x1cf7   :  { %3528 = vmin.xlane.f32.xlu1 %v3527_v52  ;;  %v3531_v52 = vcvt.f32.s32 %v3525_v27 }
0x1d4f   :  { %v3723_v9 = vpop.permute.xlu0 %3722 }
0x1d50   :  { %v3730_v54 = vmul.f32 %v6582_v30, %v3723_v9  ;;  %v3728_v2 = vpop.permute.xlu1 %3727  ;;  %v3532_v30 = vshll.u32 %v3531_v52, 16 }
0x1d51   :  { %v3731_v13 = vmul.f32 %v6583_v46, %v3728_v2 }
0x1d52   :  { %v3732_v39 = vrot.slane %v3730_v54, 4 }
0x1d53   :  { %v3738_v47 = vrot.slane %v3731_v13, 4 }
0x1d54   :  { %v3733_v42 = vadd.f32 %v3732_v39, %v3730_v54 }
0x1d55   :  { %v3739_v4 = vadd.f32 %v3738_v47, %v3731_v13 }
0x1d56   :  { %v3734_v24 = vrot.slane %v3733_v42, 2 }
0x1d57   :  { %v3740_v55 = vrot.slane %v3739_v4, 2 }
0x1d58   :  { %v3735_v40 = vadd.f32 %v3734_v24, %v3733_v42 }
0x1d59   :  { %v3741_v5 = vadd.f32 %v3740_v55, %v3739_v4 }
0x1d5a   :  { %v3736_v25 = vrot.slane %v3735_v40, 1 }
0x1d5b   :  { %v3742_v61 = vrot.slane %v3741_v5, 1 }
0x1d5c   :  { %v3737_v53 = vadd.f32 %v3736_v25, %v3735_v40 }
0x1d5d   :  { %v3743_v49 = vadd.f32 %v3742_v61, %v3741_v5 }
0x1d5f   :  { %v3746_v58 = vsel %vm477_vm0, %v3743_v49, %v3737_v53  ;;  %vm4148_vm0 = vcmask 1045504  }
0x1d60   :  { %3812 = vmatprep.mubr.f32.mxu1 %v3746_v58  ;;  %3954 = vmatprep.mubr.f32.mxu0 %v3746_v58 }
0x1d84   :  { %v3529_v9 = vpop.xlane.xlu1 %3528 }
0x1d85   :  { %v3530_v2 = vcvt.f32.s32 %v3529_v9 }
0x1d87   :  { %v3533_v46 = vadd.s32 %v3532_v30, %v3530_v2 }
0x1d89   :  { %vm3534_vm4 = vcmp.eq.s32.totalorder %v6883_v48, %v3533_v46 }
0x1d8a   :  { %4226 = vmatmul.mubr.msk.f32.vlgmr.msra.gmra.mrb[28].mxu1 %vm3534_vm4, %v8960_v12  ;;  %4227 = vmatmul.mubr.msk.f32.vlgmr.msra.gmra.mrb[26].mxu0 %vm3534_vm4, %v8960_v12 }
0x1d8b   :  { %6290 = vmatpush1.bf16.msra.mxu1 %v7375_v45  ;;  %6353 = vmatpush3.bf16.msra.mxu0 %v7377_v15 }
0x1d8c   :  { %6292 = vmatprep.subr.bf16.mxu1 %v7383_v35  ;;  %6354 = vmatprep.subr.bf16.mxu0 %v8904_v63 }
0x1d8d   :  { %3883 = vmatprep.mubr.f32.mxu1 %v8906_v36  ;;  %5081 = vmatprep.mubr.msk.f32.mxu0 %vm6589_vm3, %v8906_v36 }
0x1d8f   :  { %6294 = vmatpush1.bf16.msra.mxu1 %v8961_v26  ;;  %6356 = vmatpush3.bf16.msra.mxu0 %v8962_v62 }
0x1d90   :  { %6296 = vmatprep.subr.bf16.mxu1 %v8963_v56  ;;  %6357 = vmatprep.subr.bf16.mxu0 %v8904_v63 }
0x1d93   :  { %6298 = vmatpush1.bf16.msra.mxu1 %v8964_v10  ;;  %6359 = vmatpush3.bf16.msra.mxu0 %v8965_v7 }
0x1d94   :  { %6300 = vmatprep.subr.bf16.mxu1 %v8966_v51  ;;  %6360 = vmatprep.subr.bf16.mxu0 %v8904_v63 }
0x1d97   :  { %6302 = vmatpush1.bf16.msra.mxu1 %v8967_v6  ;;  %6362 = vmatpush3.bf16.msra.mxu0 %v8968_v31  ;;  %v3608_v6 = vadd.f32 %v8427_v37, %v8491_v20 }
0x1d98   :  { %6304 = vmatprep.subr.bf16.mxu1 %v8969_v60  ;;  %6363 = vmatprep.subr.bf16.mxu0 %v8904_v63 }
0x1d9b   :  { %6306 = vmatpush1.bf16.msra.mxu1 %v8970_v23  ;;  %6365 = vmatpush3.bf16.msra.mxu0 %v8971_v0 }
0x1d9c   :  { %6308 = vmatprep.subr.bf16.mxu1 %v8972_v33  ;;  %6366 = vmatprep.subr.bf16.mxu0 %v8904_v63 }
0x1d9f   :  { %6310 = vmatpush1.bf16.msra.mxu1 %v8973_v43  ;;  %6368 = vmatpush3.bf16.msra.mxu0 %v7521_v57 }
0x1da0   :  { %6312 = vmatprep.subr.bf16.mxu1 %v7528_v34  ;;  %6369 = vmatprep.subr.bf16.mxu0 %v8904_v63 }
0x1da3   :  { %6314 = vmatpush1.bf16.msra.mxu1 %v7547_v50  ;;  %6371 = vmatpush3.bf16.msra.mxu0 %v7549_v1 }
0x1da4   :  { %6316 = vmatprep.subr.bf16.mxu1 %v9032_v18  ;;  %6372 = vmatprep.subr.bf16.mxu0 %v8904_v63 }
0x1da7   :  { %6318 = vmatpush1.bf16.msra.mxu1 %v9033_v38  ;;  %6374 = vmatpush3.bf16.msra.mxu0 %v9034_v16 }
0x1da8   :  { %6375 = vmatprep.subr.bf16.mxu0 %v8904_v63 }
0x1daa   :  { %3884 = vmatmul.mubr.f32.vlgmr.msra.gmra.mrb[28].mxu1 %v8432_v29  ;;  %5082 = vmatmul.mubr.f32.vlgmr.msra.gmra.mrb[28].mxu0 %v8432_v29 }
0x1dab   :  { %6377 = vmatpush3.bf16.msra.mxu0 %v9103_v21  ;;  %5116 = vmatprep.mubr.msk.f32.mxu0 %vm6589_vm3, %v8906_v36 }
0x1dac   :  { %6378 = vmatprep.subr.bf16.mxu0 %v8904_v63 }
0x1daf   :  { %6380 = vmatpush3.bf16.msra.mxu0 %v9106_v19 }
0x1db0   :  { %6381 = vmatprep.subr.bf16.mxu0 %v8904_v63 }
0x1db3   :  { %6383 = vmatpush3.bf16.msra.mxu0 %v9177_v44 }
0x1db4   :  { %6384 = vmatprep.subr.bf16.mxu0 %v8904_v63 }
0x1db7   :  { %6386 = vmatpush3.bf16.msra.mxu0 %v9180_v8 }
0x1db8   :  { %6387 = vmatprep.subr.bf16.mxu0 %v8904_v63 }
0x1dbb   :  { %6389 = vmatpush3.bf16.msra.mxu0 %v9183_v32 }
0x1dbc   :  { %6390 = vmatprep.subr.bf16.mxu0 %v8904_v63 }
0x1dbf   :  { %6392 = vmatpush3.bf16.msra.mxu0 %v9186_v28 }
0x1dc0   :  { %6393 = vmatprep.subr.bf16.mxu0 %v8904_v63 }
0x1dc3   :  { %6395 = vmatpush3.bf16.msra.mxu0 %v9189_v41 }
0x1dc4   :  { %6396 = vmatprep.subr.bf16.mxu0 %v8904_v63 }
0x1dc7   :  { %6398 = vmatpush3.bf16.msra.mxu0 %v9192_v17 }
0x1e5d   :  { %v4627_v48 = vpop.f32.mrb[26].mxu0 }
0x1e5e   :  { %v4628_v45 = vpop.f32.mrb[27].mxu0 }
0x1e5f   :  { %v4629_v15 = vadd.f32 %v4628_v45, %v4627_v48 }
0x1e61   :  { %v3957_v35 = vadd.f32 %v4629_v15, %v9196_v11 }
0x1e7d   :  { %v3885_v36 = vpop.f32.mrb[28].mxu1  ;;  %v4026_v34 = vpop.f32.mrb[28].mxu0 }
0x1e7e   :  { %v6409_v57 = vadd.f32 %v3885_v36, %v7687_v59  ;;  %v4027_v50 = vadd.f32 %v4026_v34, %v3957_v35  ;;  %v3887_v1 = vpop.f32.mrb[29].mxu1  ;;  %v5083_v12 = vpop.f32.mrb[29].mxu0 }
0x1e7f   :  { %v6410_v62 = vadd.f32 %v3887_v1, %v7691_v14 }
0x1e80   :  { %v4228_v26 = vmul.f32 -1.442695, %v6409_v57 }
0x1e81   :  { %v4229_v56 = vmul.f32 -1.442695, %v6410_v62 }
0x1e82   :  { %6553 = vpow2.f32 %v4228_v26 }
0x1e83   :  { %6555 = vpow2.f32 %v4229_v56 }
0x1e8c   :  { %v6554_v63 = vpop.eup %6553 }
0x1e8d   :  { %v4033_v10 = vadd.f32 1.0, %v6554_v63  ;;  %v6556_v7 = vpop.eup %6555 }
0x1e8e   :  { %v4039_v51 = vadd.f32 1.0, %v6556_v7 }
0x1e8f   :  { %6557 = vrcp.f32 %v4033_v10 }
0x1e90   :  { %6559 = vrcp.f32 %v4039_v51 }
0x1e99   :  { %v6558_v31 = vpop.eup %6557 }
0x1e9a   :  { %v4042_v60 = vmul.f32 %v6558_v31, %v3608_v6  ;;  %v6560_v23 = vpop.eup %6559 }
0x1e9b   :  { %v4045_v0 = vsub.f32 1.0, %v6560_v23  ;;  %v4047_v43 = vmul.f32 %v6560_v23, %v8432_v29 }
0x1e9c   :  { %v4043_v59 = vadd.f32 %v4042_v60, %v4027_v50 }
0x1e9e   :  { %6561 = vtanh.f32 %v4043_v59 }
0x1ea8   :  { %v6562_v33 = vpop.eup %6561 }
0x1ea9   :  { %v4046_v14 = vmul.f32 %v6562_v33, %v4045_v0 }
0x1eab   :  { %v4048_v18 = vadd.f32 %v4047_v43, %v4046_v14 }
0x1ead   :  { %5117 = vmatmul.mubr.f32.vlgmr.msra.gmra.mrb[30].mxu0 %v4048_v18  ;;  %4177 = vst [vmem:[%s8631_s11] sm:$0x3] %v4048_v18 }
0x1f80   :  { %v4115_v38 = vpop.f32.mrb[30].mxu0 }
0x1f81   :  { %v4116_v16 = vadd.f32 %v8487_v3, %v4115_v38  ;;  %v5118_v21 = vpop.f32.mrb[31].mxu0 }
0x1f83   :  { %v4126_v19 = vrot.slane %v4116_v16, %v9238_v22 }
0x1f85   :  { %v4127_v44 = vcombine.high %v4126_v19, %v4126_v19  ;;  %4230 = vst.sshfl [vmem:[%s8630_s10 + $0x5] sm:$0x1 pattern:$0x73625140] %v4126_v19 }
0x1f87   :  { %4231 = vst.sshfl [vmem:[%s8630_s10 + $0xd] sm:$0x1 pattern:$0x73625140] %v4127_v44 }
0x1f8c   :  { %v4146_v8 = vld [vmem:[%s8630_s10] sm:$0x3f] }
0x1f8d   :  { %v4149_v32 = vsel %vm4148_vm0, %v4146_v8, -inf }
0x1f8e   :  { %4150 = vmax.xlane.f32.xlu0 %v4149_v32  ;;  %v4147_v28 = vld [vmem:[%s8630_s10 + $0x8] sm:$0x3f] }
0x1f8f   :  { %v4152_v41 = vsel %vm4148_vm0, %v4147_v28, -inf }
0x1f92   :  { %4153 = vmax.xlane.f32.xlu0 %v4152_v41 }
0x201b   :  { %v4151_v17 = vpop.xlane.xlu0 %4150 }
0x201c   :  { %v4155_v11 = vsub.f32 %v4146_v8, %v4151_v17 }
0x201e   :  { %v4157_v37 = vmul.f32 1.442695, %v4155_v11 }
0x201f   :  { %v4154_v29 = vpop.xlane.xlu0 %4153 }
0x2020   :  { %6563 = vpow2.f32 %v4157_v37  ;;  %v4156_v3 = vsub.f32 %v4147_v28, %v4154_v29 }
0x2022   :  { %v4159_v22 = vmul.f32 1.442695, %v4156_v3 }
0x2024   :  { %6565 = vpow2.f32 %v4159_v22 }
0x202a   :  { %v6564_v20 = vpop.eup %6563 }
0x202b   :  { %v4161_v27 = vsel %vm4148_vm0, %v6564_v20, 0.0 }
0x202c   :  { %4162 = vadd.xlane.f32.xlu1 %v4161_v27 }
0x202e   :  { %v6566_v54 = vpop.eup %6565 }
0x202f   :  { %v4164_v13 = vsel %vm4148_vm0, %v6566_v54, 0.0 }
0x2030   :  { %4165 = vadd.xlane.f32.xlu0 %v4164_v13 }
0x20b9   :  { %v4163_v39 = vpop.xlane.xlu1 %4162 }
0x20ba   :  { %6567 = vlog2.f32 %v4163_v39 }
0x20bd   :  { %v4166_v47 = vpop.xlane.xlu0 %4165 }
0x20be   :  { %6569 = vlog2.f32 %v4166_v47 }
0x20c4   :  { %v6568_v42 = vpop.eup %6567 }
0x20c5   :  { %v4168_v4 = vmul.f32 0.6931472, %v6568_v42 }
0x20c7   :  { %v4171_v24 = vadd.f32 %v4168_v4, %v4151_v17 }
0x20c8   :  { %v6570_v55 = vpop.eup %6569 }
0x20c9   :  { %v4173_v40 = vsub.f32 %v4146_v8, %v4171_v24  ;;  %v4170_v5 = vmul.f32 0.6931472, %v6570_v55 }
0x20cb   :  { %4175 = vst [vmem:[%s8630_s10] sm:$0x3f] %v4173_v40  ;;  %v4172_v25 = vadd.f32 %v4170_v5, %v4154_v29 }
0x20cd   :  { %v4174_v61 = vsub.f32 %v4147_v28, %v4172_v25 }
0x20cf   :  { %4176 = vst [vmem:[%s8630_s10 + $0x8] sm:$0x3f] %v4174_v61 }

</bundles_post_ra>
